<compile_context>
chip_gen: v5e
topology: v5e:2x2
jax: 0.10.0
libtpu: 0.0.40
codegen_flags: <defaults>
</compile_context>

<pallas_src>
import math
import functools

import jax
import jax.numpy as jnp
from jax.experimental import pallas as pl
from jax.experimental.pallas import tpu as pltpu

# ----------------------------- config (small) --------------------------------
D_MODEL = 32
N_HEADS = 4
D_FF = 32
E_LAYERS = 2          # -> 1 distil ConvLayer
D_LAYERS = 1
ENC_IN = 4
DEC_IN = 4
C_OUT = 4
SEQ_LEN = 16
LABEL_LEN = 8
PRED_LEN = 8

_PARALLEL = pltpu.CompilerParams(dimension_semantics=("parallel",))

# ----------------------------- BlockSpec helpers -----------------------------

def _full_spec(shape):
    nd = len(shape)
    return pl.BlockSpec(tuple(shape), lambda b: (0,) * nd)


def _batch_spec(shape):
    nd = len(shape)
    return pl.BlockSpec((1,) + tuple(shape[1:]), lambda b: (b,) + (0,) * (nd - 1))

# ----------------------------- in-kernel helpers ------------------------------

def _ln(x, g, b, eps=1e-5):
    """LayerNorm over the last dim of a (rows, D) tile; g/b are (1, D)."""
    mu = jnp.mean(x, axis=-1, keepdims=True)
    xc = x - mu
    var = jnp.mean(xc * xc, axis=-1, keepdims=True)
    return xc * jax.lax.rsqrt(var + eps) * g + b


def _softmax_rows(s):
    s = s - jnp.max(s, axis=-1, keepdims=True)
    p = jnp.exp(s)
    return p * pl.reciprocal(jnp.sum(p, axis=-1, keepdims=True), approx=True)


def _head_masks(H, E, D):
    """(1, D) 0/1 lane masks selecting head h's contiguous E-wide block."""
    lane = jax.lax.broadcasted_iota(jnp.int32, (1, D), 1)
    one, zero = jnp.float32(1.0), jnp.float32(0.0)
    return [jnp.where((lane >= h * E) & (lane < (h + 1) * E), one, zero)
            for h in range(H)]


def _attention(xq, xkv, wq, bq, wk, bk, wv, bv, wo, bo, masks, scale):
    """Multi-head attention, mix=False, no mask.  Fused lane-dense projections;
    per-head scores/context via lane masks (no narrow per-head matmuls)."""
    q = jnp.dot(xq, wq, preferred_element_type=jnp.float32) + bq
    k = jnp.dot(xkv, wk, preferred_element_type=jnp.float32) + bk
    v = jnp.dot(xkv, wv, preferred_element_type=jnp.float32) + bv
    ctx = jnp.zeros(q.shape, jnp.float32)
    for m in masks:
        s = jax.lax.dot_general(q * m, k, (((1,), (1,)), ((), ())),
                                preferred_element_type=jnp.float32) * scale
        p = _softmax_rows(s)
        ctx = ctx + jnp.dot(p, v * m, preferred_element_type=jnp.float32)
    return jnp.dot(ctx, wo, preferred_element_type=jnp.float32) + bo


def _self_attention_mix(x, wq, bq, wk, bk, wvh_ref, bvh_ref, li, wo, bo,
                        masks, scale, H, E):
    """Decoder causal self-attention with Informer's mix=True layout quirk:
    per-head outputs (H, L, E) are row-major reshaped to (L, H*E) before the
    output projection.  The reshape is expressed with tiny 0/1 selection
    matmuls (no value reshape / concat inside Mosaic)."""
    L, D = x.shape
    q = jnp.dot(x, wq, preferred_element_type=jnp.float32) + bq
    k = jnp.dot(x, wk, preferred_element_type=jnp.float32) + bk

    row = jax.lax.broadcasted_iota(jnp.int32, (L, L), 0)
    col = jax.lax.broadcasted_iota(jnp.int32, (L, L), 1)
    cbias = jnp.where(col > row, jnp.float32(-1e30), jnp.float32(0.0))

    one, zero = jnp.float32(1.0), jnp.float32(0.0)
    HL = H * L
    srow = jax.lax.broadcasted_iota(jnp.int32, (HL, L), 0)
    scol = jax.lax.broadcasted_iota(jnp.int32, (HL, L), 1)

    # stack[h*L + l, :] = attention output of head h at position l  (== (H,L,E) flat)
    stack = jnp.zeros((HL, E), jnp.float32)
    for h in range(H):
        s = jax.lax.dot_general(q * masks[h], k, (((1,), (1,)), ((), ())),
                                preferred_element_type=jnp.float32) * scale + cbias
        p = _softmax_rows(s)
        v_h = (jnp.dot(x, wvh_ref[li, h], preferred_element_type=jnp.float32)
               + bvh_ref[li, h])
        a_h = jnp.dot(p, v_h, preferred_element_type=jnp.float32)       # (L, E)
        up_h = jnp.where(srow == scol + h * L, one, zero)               # (HL, L)
        stack = stack + jnp.dot(up_h, a_h, preferred_element_type=jnp.float32)

    # mix=True: row-major reshape (H*L, E) -> (L, H*E):
    #   mixed[l', j*E + e] = stack[l'*(D//E) + j, e]
    nblk = D // E
    mrow = jax.lax.broadcasted_iota(jnp.int32, (L, HL), 0)
    mcol = jax.lax.broadcasted_iota(jnp.int32, (L, HL), 1)
    prow = jax.lax.broadcasted_iota(jnp.int32, (E, D), 0)
    pcol = jax.lax.broadcasted_iota(jnp.int32, (E, D), 1)
    mixed = jnp.zeros((L, D), jnp.float32)
    for j in range(nblk):
        sel_j = jnp.where(mcol == mrow * nblk + j, one, zero)           # (L, HL)
        place_j = jnp.where(pcol == j * E + prow, one, zero)            # (E, D)
        mixed = mixed + jnp.dot(
            jnp.dot(sel_j, stack, preferred_element_type=jnp.float32),
            place_j, preferred_element_type=jnp.float32)
    return jnp.dot(mixed, wo, preferred_element_type=jnp.float32) + bo


def _conv_distil(x, cw_ref, cb_ref, idx):
    """Distil ConvLayer: Conv1d(k=3, circular) -> BatchNorm1d (eval-fold) ->
    ELU -> MaxPool1d(3, 2, 1).  Shifts/downsample via tiny selection matmuls."""
    L, _ = x.shape
    L_out = (L - 1) // 2 + 1
    one, zero, neg = jnp.float32(1.0), jnp.float32(0.0), jnp.float32(-1e30)
    r = jax.lax.broadcasted_iota(jnp.int32, (L, L), 0)
    c = jax.lax.broadcasted_iota(jnp.int32, (L, L), 1)
    s_m1 = jnp.where((c == r - 1) | ((r == 0) & (c == L - 1)), one, zero)  # picks x[l-1 mod L]
    s_p1 = jnp.where((c == r + 1) | ((r == L - 1) & (c == 0)), one, zero)  # picks x[l+1 mod L]
    xm1 = jnp.dot(s_m1, x, preferred_element_type=jnp.float32)
    xp1 = jnp.dot(s_p1, x, preferred_element_type=jnp.float32)
    y = (jnp.dot(xm1, cw_ref[idx, 0], preferred_element_type=jnp.float32)
         + jnp.dot(x, cw_ref[idx, 1], preferred_element_type=jnp.float32)
         + jnp.dot(xp1, cw_ref[idx, 2], preferred_element_type=jnp.float32)
         + cb_ref[idx])
    # ELU(alpha=1)
    y = jnp.where(y > 0, y, jnp.exp(jnp.minimum(y, zero)) - one)
    # MaxPool1d(kernel=3, stride=2, padding=1): out[i] = max(y[2i-1], y[2i], y[2i+1])
    ridx = jax.lax.broadcasted_iota(jnp.int32, (L, 1), 0)
    y_prev = jnp.where(ridx == 0, neg,
                       jnp.dot(s_m1, y, preferred_element_type=jnp.float32))
    y_next = jnp.where(ridx == L - 1, neg,
                       jnp.dot(s_p1, y, preferred_element_type=jnp.float32))
    m = jnp.maximum(jnp.maximum(y_prev, y), y_next)                    # (L, C)
    ro = jax.lax.broadcasted_iota(jnp.int32, (L_out, L), 0)
    co = jax.lax.broadcasted_iota(jnp.int32, (L_out, L), 1)
    sel = jnp.where(co == 2 * ro, one, zero)                           # rows 0,2,4,...
    return jnp.dot(sel, m, preferred_element_type=jnp.float32)

# ----------------------------- Pallas kernels --------------------------------

def _encoder_kernel(n_layers,
                    x_ref, extra_ref, wtok_ref,
                    wq_ref, bq_ref, wk_ref, bk_ref, wv_ref, bv_ref, wo_ref, bo_ref,
                    ln1g_ref, ln1b_ref, w1_ref, b1_ref, w2_ref, b2_ref,
                    ln2g_ref, ln2b_ref,
                    cw_ref, cb_ref, fng_ref, fnb_ref, o_ref):
    """Token embed + n_layers encoder layers (with distil conv between) + final LN."""
    H = N_HEADS
    E = D_MODEL // H
    scale = 1.0 / math.sqrt(E)
    masks = _head_masks(H, E, D_MODEL)

    # TokenEmbedding (circular conv k=3 as one matmul on XLA-unfolded input)
    # + positional + fixed temporal embedding (already summed into extra).
    x = jnp.dot(x_ref[0], wtok_ref[...], preferred_element_type=jnp.float32) + extra_ref[0]

    for i in range(n_layers):
        attn = _attention(x, x, wq_ref[i], bq_ref[i], wk_ref[i], bk_ref[i],
                          wv_ref[i], bv_ref[i], wo_ref[i], bo_ref[i], masks, scale)
        x = _ln(x + attn, ln1g_ref[i], ln1b_ref[i])
        y = jnp.dot(x, w1_ref[i], preferred_element_type=jnp.float32) + b1_ref[i]
        y = jax.nn.gelu(y, approximate=True)
        y = jnp.dot(y, w2_ref[i], preferred_element_type=jnp.float32) + b2_ref[i]
        x = _ln(x + y, ln2g_ref[i], ln2b_ref[i])
        if i < n_layers - 1:
            x = _conv_distil(x, cw_ref, cb_ref, i)

    o_ref[0] = _ln(x, fng_ref[...], fnb_ref[...])


def _decoder_kernel(n_layers,
                    x_ref, extra_ref, cross_ref, wtok_ref,
                    swq_ref, sbq_ref, swk_ref, sbk_ref, swvh_ref, sbvh_ref,
                    swo_ref, sbo_ref,
                    cwq_ref, cbq_ref, cwk_ref, cbk_ref, cwv_ref, cbv_ref,
                    cwo_ref, cbo_ref,
                    ln1g_ref, ln1b_ref, ln2g_ref, ln2b_ref, ln3g_ref, ln3b_ref,
                    w1_ref, b1_ref, w2_ref, b2_ref,
                    fng_ref, fnb_ref, pw_ref, pb_ref, o_ref):
    """Token embed + decoder layers (causal self-attn mix=True, cross-attn, FFN)
    + final LN + output projection, all fused."""
    H = N_HEADS
    E = D_MODEL // H
    scale = 1.0 / math.sqrt(E)
    masks = _head_masks(H, E, D_MODEL)

    x = jnp.dot(x_ref[0], wtok_ref[...], preferred_element_type=jnp.float32) + extra_ref[0]
    cross = cross_ref[0]

    for i in range(n_layers):
        sa = _self_attention_mix(x, swq_ref[i], sbq_ref[i], swk_ref[i], sbk_ref[i],
                                 swvh_ref, sbvh_ref, i, swo_ref[i], sbo_ref[i],
                                 masks, scale, H, E)
        x = _ln(x + sa, ln1g_ref[i], ln1b_ref[i])
        ca = _attention(x, cross, cwq_ref[i], cbq_ref[i], cwk_ref[i], cbk_ref[i],
                        cwv_ref[i], cbv_ref[i], cwo_ref[i], cbo_ref[i], masks, scale)
        x = _ln(x + ca, ln2g_ref[i], ln2b_ref[i])
        y = jnp.dot(x, w1_ref[i], preferred_element_type=jnp.float32) + b1_ref[i]
        y = jax.nn.gelu(y, approximate=True)
        y = jnp.dot(y, w2_ref[i], preferred_element_type=jnp.float32) + b2_ref[i]
        x = _ln(x + y, ln3g_ref[i], ln3b_ref[i])

    x = _ln(x, fng_ref[...], fnb_ref[...])
    o_ref[0] = jnp.dot(x, pw_ref[...], preferred_element_type=jnp.float32) + pb_ref[...]

# ----------------------------- kernel wrappers --------------------------------

def encoder_forward(x_cat, extra, p):
    B, L, _ = x_cat.shape
    ep = p["enc"]
    weights = [p["enc_token_wcat"],
               ep["wq"], ep["bq"], ep["wk"], ep["bk"], ep["wv"], ep["bv"],
               ep["wo"], ep["bo"],
               ep["ln1_g"], ep["ln1_b"], ep["w1"], ep["b1"], ep["w2"], ep["b2"],
               ep["ln2_g"], ep["ln2_b"],
               p["conv_w"], p["conv_b"], p["enc_norm_g"], p["enc_norm_b"]]
    L_out = L
    for _ in range(E_LAYERS - 1):
        L_out = (L_out - 1) // 2 + 1
    return pl.pallas_call(
        functools.partial(_encoder_kernel, E_LAYERS),
        out_shape=jax.ShapeDtypeStruct((B, L_out, D_MODEL), jnp.float32),
        grid=(B,),
        in_specs=[_batch_spec(x_cat.shape), _batch_spec(extra.shape)]
                 + [_full_spec(w.shape) for w in weights],
        out_specs=_batch_spec((B, L_out, D_MODEL)),
        compiler_params=_PARALLEL,
    )(x_cat, extra, *weights)


def decoder_forward(x_cat, extra, cross, p):
    B, L, _ = x_cat.shape
    dp = p["dec"]
    weights = [p["dec_token_wcat"],
               dp["s_wq"], dp["s_bq"], dp["s_wk"], dp["s_bk"], dp["s_wvh"],
               dp["s_bvh"], dp["s_wo"], dp["s_bo"],
               dp["c_wq"], dp["c_bq"], dp["c_wk"], dp["c_bk"], dp["c_wv"],
               dp["c_bv"], dp["c_wo"], dp["c_bo"],
               dp["ln1_g"], dp["ln1_b"], dp["ln2_g"], dp["ln2_b"],
               dp["ln3_g"], dp["ln3_b"],
               dp["w1"], dp["b1"], dp["w2"], dp["b2"],
               p["dec_norm_g"], p["dec_norm_b"], p["proj_w"], p["proj_b"]]
    return pl.pallas_call(
        functools.partial(_decoder_kernel, D_LAYERS),
        out_shape=jax.ShapeDtypeStruct((B, L, C_OUT), jnp.float32),
        grid=(B,),
        in_specs=[_batch_spec(x_cat.shape), _batch_spec(extra.shape),
                  _batch_spec(cross.shape)]
                 + [_full_spec(w.shape) for w in weights],
        out_specs=_batch_spec((B, L, C_OUT)),
        compiler_params=_PARALLEL,
    )(x_cat, extra, cross, *weights)

# ----------------------------- XLA-side glue -----------------------------------

def _unfold_circular(x):
    """Circular k=3 unfold: concat([x[l-1], x[l], x[l+1]]) along channels."""
    return jnp.concatenate([jnp.roll(x, 1, axis=1), x, jnp.roll(x, -1, axis=1)],
                           axis=-1)


def _embed_extra(x_mark, L, params):
    """PositionalEmbedding + fixed TemporalEmbedding (summed).  Tiny gathers
    stay in XLA; added to the token embedding inside the fused kernel."""
    tt = params["temp_tabs"]
    return (params["pos_tab"][:L][None]
            + jnp.take(tt["month"], x_mark[:, :, 0], axis=0)
            + jnp.take(tt["day"], x_mark[:, :, 1], axis=0)
            + jnp.take(tt["weekday"], x_mark[:, :, 2], axis=0)
            + jnp.take(tt["hour"], x_mark[:, :, 3], axis=0))

# ----------------------------- model forward ----------------------------------

def informer_forward(params, x_enc, x_mark_enc, x_dec, x_mark_dec):
    # dropout p=0.0 everywhere -> identity
    enc_out = encoder_forward(_unfold_circular(x_enc),
                              _embed_extra(x_mark_enc, x_enc.shape[1], params),
                              params)
    dec_out = decoder_forward(_unfold_circular(x_dec),
                              _embed_extra(x_mark_dec, x_dec.shape[1], params),
                              enc_out, params)
    return dec_out[:, -PRED_LEN:, :]

# ----------------------------- parameter init --------------------------------

def _uniform(key, shape, fan_in):
    bound = 1.0 / math.sqrt(fan_in)
    return jax.random.uniform(key, shape, jnp.float32, -bound, bound)


def _linear(key, din, dout):
    kw, kb = jax.random.split(key)
    return _uniform(kw, (din, dout), din), _uniform(kb, (1, dout), din)


def _attn_params(key):
    D = D_MODEL
    ks = jax.random.split(key, 4)
    wq, bq = _linear(ks[0], D, D)
    wk, bk = _linear(ks[1], D, D)
    wv, bv = _linear(ks[2], D, D)
    wo, bo = _linear(ks[3], D, D)
    return wq, bq, wk, bk, wv, bv, wo, bo


def init_token_wcat(key, cin):
    """torch Conv1d(cin, D, k=3, circular, bias=False) weight (D,cin,3) packed as
    (3*cin, D) so that [x[l-1]|x[l]|x[l+1]] @ wcat reproduces the conv."""
    fan = cin * 3
    w = _uniform(key, (D_MODEL, cin, 3), fan)
    return jnp.concatenate([w[:, :, 0].T, w[:, :, 1].T, w[:, :, 2].T], axis=0)


def init_conv_params(key):
    """Distil ConvLayer conv (k=3 circular) with BatchNorm folded (eval defaults)."""
    kw, kb = jax.random.split(key)
    fan = D_MODEL * 3
    w = _uniform(kw, (D_MODEL, D_MODEL, 3), fan)
    b = _uniform(kb, (D_MODEL,), fan)
    bn_scale = 1.0 / math.sqrt(1.0 + 1e-5)
    w_stacked = jnp.stack([w[:, :, 0].T, w[:, :, 1].T, w[:, :, 2].T], axis=0) * bn_scale
    return w_stacked, (b * bn_scale).reshape(1, -1)


def init_enc_layer(key):
    ka, k1, k2 = jax.random.split(key, 3)
    wq, bq, wk, bk, wv, bv, wo, bo = _attn_params(ka)
    w1, b1 = _linear(k1, D_MODEL, D_FF)
    w2, b2 = _linear(k2, D_FF, D_MODEL)
    ones = jnp.ones((1, D_MODEL), jnp.float32)
    zeros = jnp.zeros((1, D_MODEL), jnp.float32)
    return dict(wq=wq, bq=bq, wk=wk, bk=bk, wv=wv, bv=bv, wo=wo, bo=bo,
                ln1_g=ones, ln1_b=zeros, w1=w1, b1=b1, w2=w2, b2=b2,
                ln2_g=ones, ln2_b=zeros)


def init_dec_layer(key):
    ks, kc, k1, k2 = jax.random.split(key, 4)
    H, E = N_HEADS, D_MODEL // N_HEADS
    s_wq, s_bq, s_wk, s_bk, s_wv, s_bv, s_wo, s_bo = _attn_params(ks)
    c_wq, c_bq, c_wk, c_bk, c_wv, c_bv, c_wo, c_bo = _attn_params(kc)
    # per-head V projection for the mix=True self-attention path
    s_wvh = jnp.transpose(s_wv.reshape(D_MODEL, H, E), (1, 0, 2))   # (H, D, E)
    s_bvh = s_bv.reshape(H, 1, E)
    w1, b1 = _linear(k1, D_MODEL, D_FF)
    w2, b2 = _linear(k2, D_FF, D_MODEL)
    ones = jnp.ones((1, D_MODEL), jnp.float32)
    zeros = jnp.zeros((1, D_MODEL), jnp.float32)
    return dict(s_wq=s_wq, s_bq=s_bq, s_wk=s_wk, s_bk=s_bk,
                s_wvh=s_wvh, s_bvh=s_bvh, s_wo=s_wo, s_bo=s_bo,
                c_wq=c_wq, c_bq=c_bq, c_wk=c_wk, c_bk=c_bk,
                c_wv=c_wv, c_bv=c_bv, c_wo=c_wo, c_bo=c_bo,
                ln1_g=ones, ln1_b=zeros, ln2_g=ones, ln2_b=zeros,
                ln3_g=ones, ln3_b=zeros, w1=w1, b1=b1, w2=w2, b2=b2)


def sinusoid_table(n, d):
    pos = jnp.arange(n, dtype=jnp.float32)[:, None]
    div = jnp.exp(jnp.arange(0, d, 2, dtype=jnp.float32) * (-math.log(10000.0) / d))
    tab = jnp.zeros((n, d), jnp.float32)
    tab = tab.at[:, 0::2].set(jnp.sin(pos * div))
    tab = tab.at[:, 1::2].set(jnp.cos(pos * div))
    return tab


def _stack_dicts(dicts):
    return {k: jnp.stack([d[k] for d in dicts], axis=0) for k in dicts[0]}


def init_params(key):
    keys = iter(jax.random.split(key, 8 + E_LAYERS + D_LAYERS))
    p = {}
    p["enc_token_wcat"] = init_token_wcat(next(keys), ENC_IN)     # (3*ENC_IN, D)
    p["dec_token_wcat"] = init_token_wcat(next(keys), DEC_IN)
    p["pos_tab"] = sinusoid_table(5000, D_MODEL)
    p["temp_tabs"] = {
        "month": sinusoid_table(13, D_MODEL),
        "day": sinusoid_table(32, D_MODEL),
        "weekday": sinusoid_table(7, D_MODEL),
        "hour": sinusoid_table(24, D_MODEL),
    }
    p["enc"] = _stack_dicts([init_enc_layer(next(keys)) for _ in range(E_LAYERS)])
    convs = [init_conv_params(next(keys)) for _ in range(E_LAYERS - 1)]
    p["conv_w"] = jnp.stack([c[0] for c in convs], axis=0)        # (E_LAYERS-1, 3, D, D)
    p["conv_b"] = jnp.stack([c[1] for c in convs], axis=0)        # (E_LAYERS-1, 1, D)
    p["enc_norm_g"] = jnp.ones((1, D_MODEL), jnp.float32)
    p["enc_norm_b"] = jnp.zeros((1, D_MODEL), jnp.float32)
    p["dec"] = _stack_dicts([init_dec_layer(next(keys)) for _ in range(D_LAYERS)])
    p["dec_norm_g"] = jnp.ones((1, D_MODEL), jnp.float32)
    p["dec_norm_b"] = jnp.zeros((1, D_MODEL), jnp.float32)
    p["proj_w"], p["proj_b"] = _linear(next(keys), D_MODEL, C_OUT)
    return p

# ----------------------------- main -------------------------------------------

if __name__ == "__main__":
    B = 2
    key = jax.random.PRNGKey(0)
    kp, kx1, kx2, km1, km2 = jax.random.split(key, 5)
    params = init_params(kp)

    x_enc = jax.random.normal(kx1, (B, SEQ_LEN, ENC_IN), jnp.float32)
    x_dec = jax.random.normal(kx2, (B, LABEL_LEN + PRED_LEN, DEC_IN), jnp.float32)

    def make_mark(k, L):
        k0, k1, k2, k3 = jax.random.split(k, 4)
        month = jax.random.randint(k0, (B, L), 0, 13)
        day = jax.random.randint(k1, (B, L), 0, 32)
        weekday = jax.random.randint(k2, (B, L), 0, 7)
        hour = jax.random.randint(k3, (B, L), 0, 24)
        return jnp.stack([month, day, weekday, hour], axis=-1).astype(jnp.int32)

    x_mark_enc = make_mark(km1, SEQ_LEN)
    x_mark_dec = make_mark(km2, LABEL_LEN + PRED_LEN)

    fwd = jax.jit(informer_forward)
    out = fwd(params, x_enc, x_mark_enc, x_dec, x_mark_dec)
    jax.block_until_ready(out)
    assert out.shape == (B, PRED_LEN, C_OUT), out.shape
    assert bool(jnp.all(jnp.isfinite(out)))
    print("KERNEL_OK")
</pallas_src>

<mosaic_0001>
module attributes {stable_mosaic.version = 11 : i64} {
  func.func @_encoder_kernel(%arg0: i32, %arg1: memref<1x16x12xf32, #tpu.memory_space<vmem>>, %arg2: memref<1x16x32xf32, #tpu.memory_space<vmem>>, %arg3: memref<12x32xf32, #tpu.memory_space<vmem>>, %arg4: memref<2x32x32xf32, #tpu.memory_space<vmem>>, %arg5: memref<2x1x32xf32, #tpu.memory_space<vmem>>, %arg6: memref<2x32x32xf32, #tpu.memory_space<vmem>>, %arg7: memref<2x1x32xf32, #tpu.memory_space<vmem>>, %arg8: memref<2x32x32xf32, #tpu.memory_space<vmem>>, %arg9: memref<2x1x32xf32, #tpu.memory_space<vmem>>, %arg10: memref<2x32x32xf32, #tpu.memory_space<vmem>>, %arg11: memref<2x1x32xf32, #tpu.memory_space<vmem>>, %arg12: memref<2x1x32xf32, #tpu.memory_space<vmem>>, %arg13: memref<2x1x32xf32, #tpu.memory_space<vmem>>, %arg14: memref<2x32x32xf32, #tpu.memory_space<vmem>>, %arg15: memref<2x1x32xf32, #tpu.memory_space<vmem>>, %arg16: memref<2x32x32xf32, #tpu.memory_space<vmem>>, %arg17: memref<2x1x32xf32, #tpu.memory_space<vmem>>, %arg18: memref<2x1x32xf32, #tpu.memory_space<vmem>>, %arg19: memref<2x1x32xf32, #tpu.memory_space<vmem>>, %arg20: memref<1x3x32x32xf32, #tpu.memory_space<vmem>>, %arg21: memref<1x1x32xf32, #tpu.memory_space<vmem>>, %arg22: memref<1x32xf32, #tpu.memory_space<vmem>>, %arg23: memref<1x32xf32, #tpu.memory_space<vmem>>, %arg24: memref<1x8x32xf32, #tpu.memory_space<vmem>>) attributes {dimension_semantics = [#tpu.dimension_semantics<parallel>], iteration_bounds = array<i64: 2>, scalar_prefetch = 0 : i64, scratch_operands = 0 : i64, tpu.core_type = #tpu.core_type<tc>, window_params = [{transform_indices = @transform_0, window_bounds = array<i64: 1, 16, 12>}, {transform_indices = @transform_1, window_bounds = array<i64: 1, 16, 32>}, {pipeline_mode = #tpu.pipeline_mode<synchronous>, transform_indices = @transform_2, window_bounds = array<i64: 12, 32>}, {pipeline_mode = #tpu.pipeline_mode<synchronous>, transform_indices = @transform_3, window_bounds = array<i64: 2, 32, 32>}, {pipeline_mode = #tpu.pipeline_mode<synchronous>, transform_indices = @transform_4, window_bounds = array<i64: 2, 1, 32>}, {pipeline_mode = #tpu.pipeline_mode<synchronous>, transform_indices = @transform_5, window_bounds = array<i64: 2, 32, 32>}, {pipeline_mode = #tpu.pipeline_mode<synchronous>, transform_indices = @transform_6, window_bounds = array<i64: 2, 1, 32>}, {pipeline_mode = #tpu.pipeline_mode<synchronous>, transform_indices = @transform_7, window_bounds = array<i64: 2, 32, 32>}, {pipeline_mode = #tpu.pipeline_mode<synchronous>, transform_indices = @transform_8, window_bounds = array<i64: 2, 1, 32>}, {pipeline_mode = #tpu.pipeline_mode<synchronous>, transform_indices = @transform_9, window_bounds = array<i64: 2, 32, 32>}, {pipeline_mode = #tpu.pipeline_mode<synchronous>, transform_indices = @transform_10, window_bounds = array<i64: 2, 1, 32>}, {pipeline_mode = #tpu.pipeline_mode<synchronous>, transform_indices = @transform_11, window_bounds = array<i64: 2, 1, 32>}, {pipeline_mode = #tpu.pipeline_mode<synchronous>, transform_indices = @transform_12, window_bounds = array<i64: 2, 1, 32>}, {pipeline_mode = #tpu.pipeline_mode<synchronous>, transform_indices = @transform_13, window_bounds = array<i64: 2, 32, 32>}, {pipeline_mode = #tpu.pipeline_mode<synchronous>, transform_indices = @transform_14, window_bounds = array<i64: 2, 1, 32>}, {pipeline_mode = #tpu.pipeline_mode<synchronous>, transform_indices = @transform_15, window_bounds = array<i64: 2, 32, 32>}, {pipeline_mode = #tpu.pipeline_mode<synchronous>, transform_indices = @transform_16, window_bounds = array<i64: 2, 1, 32>}, {pipeline_mode = #tpu.pipeline_mode<synchronous>, transform_indices = @transform_17, window_bounds = array<i64: 2, 1, 32>}, {pipeline_mode = #tpu.pipeline_mode<synchronous>, transform_indices = @transform_18, window_bounds = array<i64: 2, 1, 32>}, {pipeline_mode = #tpu.pipeline_mode<synchronous>, transform_indices = @transform_19, window_bounds = array<i64: 1, 3, 32, 32>}, {pipeline_mode = #tpu.pipeline_mode<synchronous>, transform_indices = @transform_20, window_bounds = array<i64: 1, 1, 32>}, {pipeline_mode = #tpu.pipeline_mode<synchronous>, transform_indices = @transform_21, window_bounds = array<i64: 1, 32>}, {pipeline_mode = #tpu.pipeline_mode<synchronous>, transform_indices = @transform_22, window_bounds = array<i64: 1, 32>}, {transform_indices = @transform_23, window_bounds = array<i64: 1, 8, 32>}]} {
    %0 = tpu.iota {dimensions = array<i32: 1>} : vector<1x32xi32>
    %c0_i32 = arith.constant 0 : i32
    %1 = vector.broadcast %c0_i32 : i32 to vector<1x32xi32>
    %2 = arith.cmpi sge, %0, %1 : vector<1x32xi32>
    %c8_i32 = arith.constant 8 : i32
    %3 = vector.broadcast %c8_i32 : i32 to vector<1x32xi32>
    %4 = arith.cmpi slt, %0, %3 : vector<1x32xi32>
    %5 = arith.andi %2, %4 : vector<1x32xi1>
    %cst = arith.constant 1.000000e+00 : f32
    %cst_0 = arith.constant 0.000000e+00 : f32
    %6 = vector.broadcast %cst : f32 to vector<1x32xf32>
    %7 = vector.broadcast %cst_0 : f32 to vector<1x32xf32>
    %8 = arith.select %5, %6, %7 : vector<1x32xi1>, vector<1x32xf32>
    %c8_i32_1 = arith.constant 8 : i32
    %9 = vector.broadcast %c8_i32_1 : i32 to vector<1x32xi32>
    %10 = arith.cmpi sge, %0, %9 : vector<1x32xi32>
    %c16_i32 = arith.constant 16 : i32
    %11 = vector.broadcast %c16_i32 : i32 to vector<1x32xi32>
    %12 = arith.cmpi slt, %0, %11 : vector<1x32xi32>
    %13 = arith.andi %10, %12 : vector<1x32xi1>
    %cst_2 = arith.constant 1.000000e+00 : f32
    %cst_3 = arith.constant 0.000000e+00 : f32
    %14 = vector.broadcast %cst_2 : f32 to vector<1x32xf32>
    %15 = vector.broadcast %cst_3 : f32 to vector<1x32xf32>
    %16 = arith.select %13, %14, %15 : vector<1x32xi1>, vector<1x32xf32>
    %c16_i32_4 = arith.constant 16 : i32
    %17 = vector.broadcast %c16_i32_4 : i32 to vector<1x32xi32>
    %18 = arith.cmpi sge, %0, %17 : vector<1x32xi32>
    %c24_i32 = arith.constant 24 : i32
    %19 = vector.broadcast %c24_i32 : i32 to vector<1x32xi32>
    %20 = arith.cmpi slt, %0, %19 : vector<1x32xi32>
    %21 = arith.andi %18, %20 : vector<1x32xi1>
    %cst_5 = arith.constant 1.000000e+00 : f32
    %cst_6 = arith.constant 0.000000e+00 : f32
    %22 = vector.broadcast %cst_5 : f32 to vector<1x32xf32>
    %23 = vector.broadcast %cst_6 : f32 to vector<1x32xf32>
    %24 = arith.select %21, %22, %23 : vector<1x32xi1>, vector<1x32xf32>
    %c24_i32_7 = arith.constant 24 : i32
    %25 = vector.broadcast %c24_i32_7 : i32 to vector<1x32xi32>
    %26 = arith.cmpi sge, %0, %25 : vector<1x32xi32>
    %c32_i32 = arith.constant 32 : i32
    %27 = vector.broadcast %c32_i32 : i32 to vector<1x32xi32>
    %28 = arith.cmpi slt, %0, %27 : vector<1x32xi32>
    %29 = arith.andi %26, %28 : vector<1x32xi1>
    %cst_8 = arith.constant 1.000000e+00 : f32
    %cst_9 = arith.constant 0.000000e+00 : f32
    %30 = vector.broadcast %cst_8 : f32 to vector<1x32xf32>
    %31 = vector.broadcast %cst_9 : f32 to vector<1x32xf32>
    %32 = arith.select %29, %30, %31 : vector<1x32xi1>, vector<1x32xf32>
    %c0 = arith.constant 0 : index
    %c0_10 = arith.constant 0 : index
    %c0_11 = arith.constant 0 : index
    %33 = vector.load %arg1[%c0, %c0_10, %c0_11] : memref<1x16x12xf32, #tpu.memory_space<vmem>>, vector<1x16x12xf32>
    %34 = vector.shape_cast %33 : vector<1x16x12xf32> to vector<16x12xf32>
    %c0_12 = arith.constant 0 : index
    %c0_13 = arith.constant 0 : index
    %35 = vector.load %arg3[%c0_12, %c0_13] : memref<12x32xf32, #tpu.memory_space<vmem>>, vector<12x32xf32>
    %cst_14 = arith.constant dense<0.000000e+00> : vector<16x32xf32>
    %36 = tpu.matmul %34, %35, %cst_14 {dimension_numbers = #tpu.dot_dimension_numbers<[1], [0], [0], [1], [0, 0, 1, 1], [], []>} : vector<16x12xf32>, vector<12x32xf32>, vector<16x32xf32> -> vector<16x32xf32>
    %c0_15 = arith.constant 0 : index
    %c0_16 = arith.constant 0 : index
    %c0_17 = arith.constant 0 : index
    %37 = vector.load %arg2[%c0_15, %c0_16, %c0_17] : memref<1x16x32xf32, #tpu.memory_space<vmem>>, vector<1x16x32xf32>
    %38 = vector.shape_cast %37 : vector<1x16x32xf32> to vector<16x32xf32>
    %39 = arith.addf %36, %38 : vector<16x32xf32>
    %c0_18 = arith.constant 0 : index
    %c0_19 = arith.constant 0 : index
    %c0_20 = arith.constant 0 : index
    %40 = vector.load %arg4[%c0_18, %c0_19, %c0_20] : memref<2x32x32xf32, #tpu.memory_space<vmem>>, vector<1x32x32xf32>
    %41 = vector.shape_cast %40 : vector<1x32x32xf32> to vector<32x32xf32>
    %c0_21 = arith.constant 0 : index
    %c0_22 = arith.constant 0 : index
    %c0_23 = arith.constant 0 : index
    %42 = vector.load %arg5[%c0_21, %c0_22, %c0_23] : memref<2x1x32xf32, #tpu.memory_space<vmem>>, vector<1x1x32xf32>
    %43 = vector.shape_cast %42 : vector<1x1x32xf32> to vector<1x32xf32>
    %c0_24 = arith.constant 0 : index
    %c0_25 = arith.constant 0 : index
    %c0_26 = arith.constant 0 : index
    %44 = vector.load %arg6[%c0_24, %c0_25, %c0_26] : memref<2x32x32xf32, #tpu.memory_space<vmem>>, vector<1x32x32xf32>
    %45 = vector.shape_cast %44 : vector<1x32x32xf32> to vector<32x32xf32>
    %c0_27 = arith.constant 0 : index
    %c0_28 = arith.constant 0 : index
    %c0_29 = arith.constant 0 : index
    %46 = vector.load %arg7[%c0_27, %c0_28, %c0_29] : memref<2x1x32xf32, #tpu.memory_space<vmem>>, vector<1x1x32xf32>
    %47 = vector.shape_cast %46 : vector<1x1x32xf32> to vector<1x32xf32>
    %c0_30 = arith.constant 0 : index
    %c0_31 = arith.constant 0 : index
    %c0_32 = arith.constant 0 : index
    %48 = vector.load %arg8[%c0_30, %c0_31, %c0_32] : memref<2x32x32xf32, #tpu.memory_space<vmem>>, vector<1x32x32xf32>
    %49 = vector.shape_cast %48 : vector<1x32x32xf32> to vector<32x32xf32>
    %c0_33 = arith.constant 0 : index
    %c0_34 = arith.constant 0 : index
    %c0_35 = arith.constant 0 : index
    %50 = vector.load %arg9[%c0_33, %c0_34, %c0_35] : memref<2x1x32xf32, #tpu.memory_space<vmem>>, vector<1x1x32xf32>
    %51 = vector.shape_cast %50 : vector<1x1x32xf32> to vector<1x32xf32>
    %c0_36 = arith.constant 0 : index
    %c0_37 = arith.constant 0 : index
    %c0_38 = arith.constant 0 : index
    %52 = vector.load %arg10[%c0_36, %c0_37, %c0_38] : memref<2x32x32xf32, #tpu.memory_space<vmem>>, vector<1x32x32xf32>
    %53 = vector.shape_cast %52 : vector<1x32x32xf32> to vector<32x32xf32>
    %c0_39 = arith.constant 0 : index
    %c0_40 = arith.constant 0 : index
    %c0_41 = arith.constant 0 : index
    %54 = vector.load %arg11[%c0_39, %c0_40, %c0_41] : memref<2x1x32xf32, #tpu.memory_space<vmem>>, vector<1x1x32xf32>
    %55 = vector.shape_cast %54 : vector<1x1x32xf32> to vector<1x32xf32>
    %cst_42 = arith.constant dense<0.000000e+00> : vector<16x32xf32>
    %56 = tpu.matmul %39, %41, %cst_42 {dimension_numbers = #tpu.dot_dimension_numbers<[1], [0], [0], [1], [0, 0, 1, 1], [], []>} : vector<16x32xf32>, vector<32x32xf32>, vector<16x32xf32> -> vector<16x32xf32>
    %57 = vector.broadcast %43 : vector<1x32xf32> to vector<16x32xf32>
    %58 = arith.addf %56, %57 : vector<16x32xf32>
    %cst_43 = arith.constant dense<0.000000e+00> : vector<16x32xf32>
    %59 = tpu.matmul %39, %45, %cst_43 {dimension_numbers = #tpu.dot_dimension_numbers<[1], [0], [0], [1], [0, 0, 1, 1], [], []>} : vector<16x32xf32>, vector<32x32xf32>, vector<16x32xf32> -> vector<16x32xf32>
    %60 = vector.broadcast %47 : vector<1x32xf32> to vector<16x32xf32>
    %61 = arith.addf %59, %60 : vector<16x32xf32>
    %cst_44 = arith.constant dense<0.000000e+00> : vector<16x32xf32>
    %62 = tpu.matmul %39, %49, %cst_44 {dimension_numbers = #tpu.dot_dimension_numbers<[1], [0], [0], [1], [0, 0, 1, 1], [], []>} : vector<16x32xf32>, vector<32x32xf32>, vector<16x32xf32> -> vector<16x32xf32>
    %63 = vector.broadcast %51 : vector<1x32xf32> to vector<16x32xf32>
    %64 = arith.addf %62, %63 : vector<16x32xf32>
    %cst_45 = arith.constant 0.000000e+00 : f32
    %65 = vector.broadcast %cst_45 : f32 to vector<16x32xf32>
    %66 = vector.broadcast %8 : vector<1x32xf32> to vector<16x32xf32>
    %67 = arith.mulf %58, %66 : vector<16x32xf32>
    %cst_46 = arith.constant dense<0.000000e+00> : vector<16x16xf32>
    %68 = tpu.matmul %67, %61, %cst_46 {dimension_numbers = #tpu.dot_dimension_numbers<[1], [1], [0], [0], [0, 0, 1, 0], [], []>} : vector<16x32xf32>, vector<16x32xf32>, vector<16x16xf32> -> vector<16x16xf32>
    %cst_47 = arith.constant 0.353553385 : f32
    %69 = vector.broadcast %cst_47 : f32 to vector<16x16xf32>
    %70 = arith.mulf %68, %69 : vector<16x16xf32>
    %cst_48 = arith.constant dense<0xFF800000> : vector<16xf32>
    %71 = vector.multi_reduction <maximumf>, %70, %cst_48 [1] : vector<16x16xf32> to vector<16xf32>
    %72 = vector.shape_cast %71 : vector<16xf32> to vector<16x1xf32>
    %73 = vector.broadcast %72 : vector<16x1xf32> to vector<16x16xf32>
    %74 = arith.subf %70, %73 : vector<16x16xf32>
    %75 = math.exp %74 : vector<16x16xf32>
    %cst_49 = arith.constant dense<0.000000e+00> : vector<16xf32>
    %76 = vector.multi_reduction <add>, %75, %cst_49 [1] : vector<16x16xf32> to vector<16xf32>
    %77 = vector.shape_cast %76 : vector<16xf32> to vector<16x1xf32>
    %78 = tpu.reciprocal %77 {approx = true} : vector<16x1xf32> -> vector<16x1xf32>
    %79 = vector.broadcast %78 : vector<16x1xf32> to vector<16x16xf32>
    %80 = arith.mulf %75, %79 : vector<16x16xf32>
    %81 = vector.broadcast %8 : vector<1x32xf32> to vector<16x32xf32>
    %82 = arith.mulf %64, %81 : vector<16x32xf32>
    %cst_50 = arith.constant dense<0.000000e+00> : vector<16x32xf32>
    %83 = tpu.matmul %80, %82, %cst_50 {dimension_numbers = #tpu.dot_dimension_numbers<[1], [0], [0], [1], [0, 0, 1, 1], [], []>} : vector<16x16xf32>, vector<16x32xf32>, vector<16x32xf32> -> vector<16x32xf32>
    %84 = arith.addf %65, %83 : vector<16x32xf32>
    %85 = vector.broadcast %16 : vector<1x32xf32> to vector<16x32xf32>
    %86 = arith.mulf %58, %85 : vector<16x32xf32>
    %cst_51 = arith.constant dense<0.000000e+00> : vector<16x16xf32>
    %87 = tpu.matmul %86, %61, %cst_51 {dimension_numbers = #tpu.dot_dimension_numbers<[1], [1], [0], [0], [0, 0, 1, 0], [], []>} : vector<16x32xf32>, vector<16x32xf32>, vector<16x16xf32> -> vector<16x16xf32>
    %cst_52 = arith.constant 0.353553385 : f32
    %88 = vector.broadcast %cst_52 : f32 to vector<16x16xf32>
    %89 = arith.mulf %87, %88 : vector<16x16xf32>
    %cst_53 = arith.constant dense<0xFF800000> : vector<16xf32>
    %90 = vector.multi_reduction <maximumf>, %89, %cst_53 [1] : vector<16x16xf32> to vector<16xf32>
    %91 = vector.shape_cast %90 : vector<16xf32> to vector<16x1xf32>
    %92 = vector.broadcast %91 : vector<16x1xf32> to vector<16x16xf32>
    %93 = arith.subf %89, %92 : vector<16x16xf32>
    %94 = math.exp %93 : vector<16x16xf32>
    %cst_54 = arith.constant dense<0.000000e+00> : vector<16xf32>
    %95 = vector.multi_reduction <add>, %94, %cst_54 [1] : vector<16x16xf32> to vector<16xf32>
    %96 = vector.shape_cast %95 : vector<16xf32> to vector<16x1xf32>
    %97 = tpu.reciprocal %96 {approx = true} : vector<16x1xf32> -> vector<16x1xf32>
    %98 = vector.broadcast %97 : vector<16x1xf32> to vector<16x16xf32>
    %99 = arith.mulf %94, %98 : vector<16x16xf32>
    %100 = vector.broadcast %16 : vector<1x32xf32> to vector<16x32xf32>
    %101 = arith.mulf %64, %100 : vector<16x32xf32>
    %cst_55 = arith.constant dense<0.000000e+00> : vector<16x32xf32>
    %102 = tpu.matmul %99, %101, %cst_55 {dimension_numbers = #tpu.dot_dimension_numbers<[1], [0], [0], [1], [0, 0, 1, 1], [], []>} : vector<16x16xf32>, vector<16x32xf32>, vector<16x32xf32> -> vector<16x32xf32>
    %103 = arith.addf %84, %102 : vector<16x32xf32>
    %104 = vector.broadcast %24 : vector<1x32xf32> to vector<16x32xf32>
    %105 = arith.mulf %58, %104 : vector<16x32xf32>
    %cst_56 = arith.constant dense<0.000000e+00> : vector<16x16xf32>
    %106 = tpu.matmul %105, %61, %cst_56 {dimension_numbers = #tpu.dot_dimension_numbers<[1], [1], [0], [0], [0, 0, 1, 0], [], []>} : vector<16x32xf32>, vector<16x32xf32>, vector<16x16xf32> -> vector<16x16xf32>
    %cst_57 = arith.constant 0.353553385 : f32
    %107 = vector.broadcast %cst_57 : f32 to vector<16x16xf32>
    %108 = arith.mulf %106, %107 : vector<16x16xf32>
    %cst_58 = arith.constant dense<0xFF800000> : vector<16xf32>
    %109 = vector.multi_reduction <maximumf>, %108, %cst_58 [1] : vector<16x16xf32> to vector<16xf32>
    %110 = vector.shape_cast %109 : vector<16xf32> to vector<16x1xf32>
    %111 = vector.broadcast %110 : vector<16x1xf32> to vector<16x16xf32>
    %112 = arith.subf %108, %111 : vector<16x16xf32>
    %113 = math.exp %112 : vector<16x16xf32>
    %cst_59 = arith.constant dense<0.000000e+00> : vector<16xf32>
    %114 = vector.multi_reduction <add>, %113, %cst_59 [1] : vector<16x16xf32> to vector<16xf32>
    %115 = vector.shape_cast %114 : vector<16xf32> to vector<16x1xf32>
    %116 = tpu.reciprocal %115 {approx = true} : vector<16x1xf32> -> vector<16x1xf32>
    %117 = vector.broadcast %116 : vector<16x1xf32> to vector<16x16xf32>
    %118 = arith.mulf %113, %117 : vector<16x16xf32>
    %119 = vector.broadcast %24 : vector<1x32xf32> to vector<16x32xf32>
    %120 = arith.mulf %64, %119 : vector<16x32xf32>
    %cst_60 = arith.constant dense<0.000000e+00> : vector<16x32xf32>
    %121 = tpu.matmul %118, %120, %cst_60 {dimension_numbers = #tpu.dot_dimension_numbers<[1], [0], [0], [1], [0, 0, 1, 1], [], []>} : vector<16x16xf32>, vector<16x32xf32>, vector<16x32xf32> -> vector<16x32xf32>
    %122 = arith.addf %103, %121 : vector<16x32xf32>
    %123 = vector.broadcast %32 : vector<1x32xf32> to vector<16x32xf32>
    %124 = arith.mulf %58, %123 : vector<16x32xf32>
    %cst_61 = arith.constant dense<0.000000e+00> : vector<16x16xf32>
    %125 = tpu.matmul %124, %61, %cst_61 {dimension_numbers = #tpu.dot_dimension_numbers<[1], [1], [0], [0], [0, 0, 1, 0], [], []>} : vector<16x32xf32>, vector<16x32xf32>, vector<16x16xf32> -> vector<16x16xf32>
    %cst_62 = arith.constant 0.353553385 : f32
    %126 = vector.broadcast %cst_62 : f32 to vector<16x16xf32>
    %127 = arith.mulf %125, %126 : vector<16x16xf32>
    %cst_63 = arith.constant dense<0xFF800000> : vector<16xf32>
    %128 = vector.multi_reduction <maximumf>, %127, %cst_63 [1] : vector<16x16xf32> to vector<16xf32>
    %129 = vector.shape_cast %128 : vector<16xf32> to vector<16x1xf32>
    %130 = vector.broadcast %129 : vector<16x1xf32> to vector<16x16xf32>
    %131 = arith.subf %127, %130 : vector<16x16xf32>
    %132 = math.exp %131 : vector<16x16xf32>
    %cst_64 = arith.constant dense<0.000000e+00> : vector<16xf32>
    %133 = vector.multi_reduction <add>, %132, %cst_64 [1] : vector<16x16xf32> to vector<16xf32>
    %134 = vector.shape_cast %133 : vector<16xf32> to vector<16x1xf32>
    %135 = tpu.reciprocal %134 {approx = true} : vector<16x1xf32> -> vector<16x1xf32>
    %136 = vector.broadcast %135 : vector<16x1xf32> to vector<16x16xf32>
    %137 = arith.mulf %132, %136 : vector<16x16xf32>
    %138 = vector.broadcast %32 : vector<1x32xf32> to vector<16x32xf32>
    %139 = arith.mulf %64, %138 : vector<16x32xf32>
    %cst_65 = arith.constant dense<0.000000e+00> : vector<16x32xf32>
    %140 = tpu.matmul %137, %139, %cst_65 {dimension_numbers = #tpu.dot_dimension_numbers<[1], [0], [0], [1], [0, 0, 1, 1], [], []>} : vector<16x16xf32>, vector<16x32xf32>, vector<16x32xf32> -> vector<16x32xf32>
    %141 = arith.addf %122, %140 : vector<16x32xf32>
    %cst_66 = arith.constant dense<0.000000e+00> : vector<16x32xf32>
    %142 = tpu.matmul %141, %53, %cst_66 {dimension_numbers = #tpu.dot_dimension_numbers<[1], [0], [0], [1], [0, 0, 1, 1], [], []>} : vector<16x32xf32>, vector<32x32xf32>, vector<16x32xf32> -> vector<16x32xf32>
    %143 = vector.broadcast %55 : vector<1x32xf32> to vector<16x32xf32>
    %144 = arith.addf %142, %143 : vector<16x32xf32>
    %145 = arith.addf %39, %144 : vector<16x32xf32>
    %c0_67 = arith.constant 0 : index
    %c0_68 = arith.constant 0 : index
    %c0_69 = arith.constant 0 : index
    %146 = vector.load %arg12[%c0_67, %c0_68, %c0_69] : memref<2x1x32xf32, #tpu.memory_space<vmem>>, vector<1x1x32xf32>
    %147 = vector.shape_cast %146 : vector<1x1x32xf32> to vector<1x32xf32>
    %c0_70 = arith.constant 0 : index
    %c0_71 = arith.constant 0 : index
    %c0_72 = arith.constant 0 : index
    %148 = vector.load %arg13[%c0_70, %c0_71, %c0_72] : memref<2x1x32xf32, #tpu.memory_space<vmem>>, vector<1x1x32xf32>
    %149 = vector.shape_cast %148 : vector<1x1x32xf32> to vector<1x32xf32>
    %cst_73 = arith.constant dense<0.000000e+00> : vector<16xf32>
    %150 = vector.multi_reduction <add>, %145, %cst_73 [1] : vector<16x32xf32> to vector<16xf32>
    %151 = vector.shape_cast %150 : vector<16xf32> to vector<16x1xf32>
    %cst_74 = arith.constant 3.200000e+01 : f32
    %152 = vector.broadcast %cst_74 : f32 to vector<16x1xf32>
    %153 = arith.divf %151, %152 : vector<16x1xf32>
    %154 = vector.broadcast %153 : vector<16x1xf32> to vector<16x32xf32>
    %155 = arith.subf %145, %154 : vector<16x32xf32>
    %156 = arith.mulf %155, %155 : vector<16x32xf32>
    %cst_75 = arith.constant dense<0.000000e+00> : vector<16xf32>
    %157 = vector.multi_reduction <add>, %156, %cst_75 [1] : vector<16x32xf32> to vector<16xf32>
    %158 = vector.shape_cast %157 : vector<16xf32> to vector<16x1xf32>
    %cst_76 = arith.constant 3.200000e+01 : f32
    %159 = vector.broadcast %cst_76 : f32 to vector<16x1xf32>
    %160 = arith.divf %158, %159 : vector<16x1xf32>
    %cst_77 = arith.constant 9.99999974E-6 : f32
    %161 = vector.broadcast %cst_77 : f32 to vector<16x1xf32>
    %162 = arith.addf %160, %161 : vector<16x1xf32>
    %163 = math.rsqrt %162 : vector<16x1xf32>
    %164 = vector.broadcast %163 : vector<16x1xf32> to vector<16x32xf32>
    %165 = arith.mulf %155, %164 : vector<16x32xf32>
    %166 = vector.broadcast %147 : vector<1x32xf32> to vector<16x32xf32>
    %167 = arith.mulf %165, %166 : vector<16x32xf32>
    %168 = vector.broadcast %149 : vector<1x32xf32> to vector<16x32xf32>
    %169 = arith.addf %167, %168 : vector<16x32xf32>
    %c0_78 = arith.constant 0 : index
    %c0_79 = arith.constant 0 : index
    %c0_80 = arith.constant 0 : index
    %170 = vector.load %arg14[%c0_78, %c0_79, %c0_80] : memref<2x32x32xf32, #tpu.memory_space<vmem>>, vector<1x32x32xf32>
    %171 = vector.shape_cast %170 : vector<1x32x32xf32> to vector<32x32xf32>
    %cst_81 = arith.constant dense<0.000000e+00> : vector<16x32xf32>
    %172 = tpu.matmul %169, %171, %cst_81 {dimension_numbers = #tpu.dot_dimension_numbers<[1], [0], [0], [1], [0, 0, 1, 1], [], []>} : vector<16x32xf32>, vector<32x32xf32>, vector<16x32xf32> -> vector<16x32xf32>
    %c0_82 = arith.constant 0 : index
    %c0_83 = arith.constant 0 : index
    %c0_84 = arith.constant 0 : index
    %173 = vector.load %arg15[%c0_82, %c0_83, %c0_84] : memref<2x1x32xf32, #tpu.memory_space<vmem>>, vector<1x1x32xf32>
    %174 = vector.shape_cast %173 : vector<1x1x32xf32> to vector<1x32xf32>
    %175 = vector.broadcast %174 : vector<1x32xf32> to vector<16x32xf32>
    %176 = arith.addf %172, %175 : vector<16x32xf32>
    %177 = arith.mulf %176, %176 : vector<16x32xf32>
    %178 = arith.mulf %176, %177 : vector<16x32xf32>
    %cst_85 = arith.constant 4.471500e-02 : f32
    %179 = vector.broadcast %cst_85 : f32 to vector<16x32xf32>
    %180 = arith.mulf %179, %178 : vector<16x32xf32>
    %181 = arith.addf %176, %180 : vector<16x32xf32>
    %cst_86 = arith.constant 0.797884583 : f32
    %182 = vector.broadcast %cst_86 : f32 to vector<16x32xf32>
    %183 = arith.mulf %182, %181 : vector<16x32xf32>
    %184 = math.tanh %183 : vector<16x32xf32>
    %cst_87 = arith.constant 1.000000e+00 : f32
    %185 = vector.broadcast %cst_87 : f32 to vector<16x32xf32>
    %186 = arith.addf %185, %184 : vector<16x32xf32>
    %cst_88 = arith.constant 5.000000e-01 : f32
    %187 = vector.broadcast %cst_88 : f32 to vector<16x32xf32>
    %188 = arith.mulf %187, %186 : vector<16x32xf32>
    %189 = arith.mulf %176, %188 : vector<16x32xf32>
    %c0_89 = arith.constant 0 : index
    %c0_90 = arith.constant 0 : index
    %c0_91 = arith.constant 0 : index
    %190 = vector.load %arg16[%c0_89, %c0_90, %c0_91] : memref<2x32x32xf32, #tpu.memory_space<vmem>>, vector<1x32x32xf32>
    %191 = vector.shape_cast %190 : vector<1x32x32xf32> to vector<32x32xf32>
    %cst_92 = arith.constant dense<0.000000e+00> : vector<16x32xf32>
    %192 = tpu.matmul %189, %191, %cst_92 {dimension_numbers = #tpu.dot_dimension_numbers<[1], [0], [0], [1], [0, 0, 1, 1], [], []>} : vector<16x32xf32>, vector<32x32xf32>, vector<16x32xf32> -> vector<16x32xf32>
    %c0_93 = arith.constant 0 : index
    %c0_94 = arith.constant 0 : index
    %c0_95 = arith.constant 0 : index
    %193 = vector.load %arg17[%c0_93, %c0_94, %c0_95] : memref<2x1x32xf32, #tpu.memory_space<vmem>>, vector<1x1x32xf32>
    %194 = vector.shape_cast %193 : vector<1x1x32xf32> to vector<1x32xf32>
    %195 = vector.broadcast %194 : vector<1x32xf32> to vector<16x32xf32>
    %196 = arith.addf %192, %195 : vector<16x32xf32>
    %197 = arith.addf %169, %196 : vector<16x32xf32>
    %c0_96 = arith.constant 0 : index
    %c0_97 = arith.constant 0 : index
    %c0_98 = arith.constant 0 : index
    %198 = vector.load %arg18[%c0_96, %c0_97, %c0_98] : memref<2x1x32xf32, #tpu.memory_space<vmem>>, vector<1x1x32xf32>
    %199 = vector.shape_cast %198 : vector<1x1x32xf32> to vector<1x32xf32>
    %c0_99 = arith.constant 0 : index
    %c0_100 = arith.constant 0 : index
    %c0_101 = arith.constant 0 : index
    %200 = vector.load %arg19[%c0_99, %c0_100, %c0_101] : memref<2x1x32xf32, #tpu.memory_space<vmem>>, vector<1x1x32xf32>
    %201 = vector.shape_cast %200 : vector<1x1x32xf32> to vector<1x32xf32>
    %cst_102 = arith.constant dense<0.000000e+00> : vector<16xf32>
    %202 = vector.multi_reduction <add>, %197, %cst_102 [1] : vector<16x32xf32> to vector<16xf32>
    %203 = vector.shape_cast %202 : vector<16xf32> to vector<16x1xf32>
    %cst_103 = arith.constant 3.200000e+01 : f32
    %204 = vector.broadcast %cst_103 : f32 to vector<16x1xf32>
    %205 = arith.divf %203, %204 : vector<16x1xf32>
    %206 = vector.broadcast %205 : vector<16x1xf32> to vector<16x32xf32>
    %207 = arith.subf %197, %206 : vector<16x32xf32>
    %208 = arith.mulf %207, %207 : vector<16x32xf32>
    %cst_104 = arith.constant dense<0.000000e+00> : vector<16xf32>
    %209 = vector.multi_reduction <add>, %208, %cst_104 [1] : vector<16x32xf32> to vector<16xf32>
    %210 = vector.shape_cast %209 : vector<16xf32> to vector<16x1xf32>
    %cst_105 = arith.constant 3.200000e+01 : f32
    %211 = vector.broadcast %cst_105 : f32 to vector<16x1xf32>
    %212 = arith.divf %210, %211 : vector<16x1xf32>
    %cst_106 = arith.constant 9.99999974E-6 : f32
    %213 = vector.broadcast %cst_106 : f32 to vector<16x1xf32>
    %214 = arith.addf %212, %213 : vector<16x1xf32>
    %215 = math.rsqrt %214 : vector<16x1xf32>
    %216 = vector.broadcast %215 : vector<16x1xf32> to vector<16x32xf32>
    %217 = arith.mulf %207, %216 : vector<16x32xf32>
    %218 = vector.broadcast %199 : vector<1x32xf32> to vector<16x32xf32>
    %219 = arith.mulf %217, %218 : vector<16x32xf32>
    %220 = vector.broadcast %201 : vector<1x32xf32> to vector<16x32xf32>
    %221 = arith.addf %219, %220 : vector<16x32xf32>
    %222 = tpu.iota {dimensions = array<i32: 0>} : vector<16x16xi32>
    %223 = tpu.iota {dimensions = array<i32: 1>} : vector<16x16xi32>
    %c1_i32 = arith.constant 1 : i32
    %224 = vector.broadcast %c1_i32 : i32 to vector<16x16xi32>
    %225 = arith.subi %222, %224 : vector<16x16xi32>
    %226 = arith.cmpi eq, %223, %225 : vector<16x16xi32>
    %c0_i32_107 = arith.constant 0 : i32
    %227 = vector.broadcast %c0_i32_107 : i32 to vector<16x16xi32>
    %228 = arith.cmpi eq, %222, %227 : vector<16x16xi32>
    %c15_i32 = arith.constant 15 : i32
    %229 = vector.broadcast %c15_i32 : i32 to vector<16x16xi32>
    %230 = arith.cmpi eq, %223, %229 : vector<16x16xi32>
    %231 = arith.andi %228, %230 : vector<16x16xi1>
    %232 = arith.ori %226, %231 : vector<16x16xi1>
    %cst_108 = arith.constant 1.000000e+00 : f32
    %cst_109 = arith.constant 0.000000e+00 : f32
    %233 = vector.broadcast %cst_108 : f32 to vector<16x16xf32>
    %234 = vector.broadcast %cst_109 : f32 to vector<16x16xf32>
    %235 = arith.select %232, %233, %234 : vector<16x16xi1>, vector<16x16xf32>
    %c1_i32_110 = arith.constant 1 : i32
    %236 = vector.broadcast %c1_i32_110 : i32 to vector<16x16xi32>
    %237 = arith.addi %222, %236 : vector<16x16xi32>
    %238 = arith.cmpi eq, %223, %237 : vector<16x16xi32>
    %c15_i32_111 = arith.constant 15 : i32
    %239 = vector.broadcast %c15_i32_111 : i32 to vector<16x16xi32>
    %240 = arith.cmpi eq, %222, %239 : vector<16x16xi32>
    %c0_i32_112 = arith.constant 0 : i32
    %241 = vector.broadcast %c0_i32_112 : i32 to vector<16x16xi32>
    %242 = arith.cmpi eq, %223, %241 : vector<16x16xi32>
    %243 = arith.andi %240, %242 : vector<16x16xi1>
    %244 = arith.ori %238, %243 : vector<16x16xi1>
    %cst_113 = arith.constant 1.000000e+00 : f32
    %cst_114 = arith.constant 0.000000e+00 : f32
    %245 = vector.broadcast %cst_113 : f32 to vector<16x16xf32>
    %246 = vector.broadcast %cst_114 : f32 to vector<16x16xf32>
    %247 = arith.select %244, %245, %246 : vector<16x16xi1>, vector<16x16xf32>
    %cst_115 = arith.constant dense<0.000000e+00> : vector<16x32xf32>
    %248 = tpu.matmul %235, %221, %cst_115 {dimension_numbers = #tpu.dot_dimension_numbers<[1], [0], [0], [1], [0, 0, 1, 1], [], []>} : vector<16x16xf32>, vector<16x32xf32>, vector<16x32xf32> -> vector<16x32xf32>
    %cst_116 = arith.constant dense<0.000000e+00> : vector<16x32xf32>
    %249 = tpu.matmul %247, %221, %cst_116 {dimension_numbers = #tpu.dot_dimension_numbers<[1], [0], [0], [1], [0, 0, 1, 1], [], []>} : vector<16x16xf32>, vector<16x32xf32>, vector<16x32xf32> -> vector<16x32xf32>
    %c0_117 = arith.constant 0 : index
    %c0_118 = arith.constant 0 : index
    %c0_119 = arith.constant 0 : index
    %c0_120 = arith.constant 0 : index
    %250 = vector.load %arg20[%c0_117, %c0_118, %c0_119, %c0_120] : memref<1x3x32x32xf32, #tpu.memory_space<vmem>>, vector<1x1x32x32xf32>
    %251 = vector.shape_cast %250 : vector<1x1x32x32xf32> to vector<32x32xf32>
    %cst_121 = arith.constant dense<0.000000e+00> : vector<16x32xf32>
    %252 = tpu.matmul %248, %251, %cst_121 {dimension_numbers = #tpu.dot_dimension_numbers<[1], [0], [0], [1], [0, 0, 1, 1], [], []>} : vector<16x32xf32>, vector<32x32xf32>, vector<16x32xf32> -> vector<16x32xf32>
    %c0_122 = arith.constant 0 : index
    %c1 = arith.constant 1 : index
    %c0_123 = arith.constant 0 : index
    %c0_124 = arith.constant 0 : index
    %253 = vector.load %arg20[%c0_122, %c1, %c0_123, %c0_124] : memref<1x3x32x32xf32, #tpu.memory_space<vmem>>, vector<1x1x32x32xf32>
    %254 = vector.shape_cast %253 : vector<1x1x32x32xf32> to vector<32x32xf32>
    %cst_125 = arith.constant dense<0.000000e+00> : vector<16x32xf32>
    %255 = tpu.matmul %221, %254, %cst_125 {dimension_numbers = #tpu.dot_dimension_numbers<[1], [0], [0], [1], [0, 0, 1, 1], [], []>} : vector<16x32xf32>, vector<32x32xf32>, vector<16x32xf32> -> vector<16x32xf32>
    %256 = arith.addf %252, %255 : vector<16x32xf32>
    %c0_126 = arith.constant 0 : index
    %c2 = arith.constant 2 : index
    %c0_127 = arith.constant 0 : index
    %c0_128 = arith.constant 0 : index
    %257 = vector.load %arg20[%c0_126, %c2, %c0_127, %c0_128] : memref<1x3x32x32xf32, #tpu.memory_space<vmem>>, vector<1x1x32x32xf32>
    %258 = vector.shape_cast %257 : vector<1x1x32x32xf32> to vector<32x32xf32>
    %cst_129 = arith.constant dense<0.000000e+00> : vector<16x32xf32>
    %259 = tpu.matmul %249, %258, %cst_129 {dimension_numbers = #tpu.dot_dimension_numbers<[1], [0], [0], [1], [0, 0, 1, 1], [], []>} : vector<16x32xf32>, vector<32x32xf32>, vector<16x32xf32> -> vector<16x32xf32>
    %260 = arith.addf %256, %259 : vector<16x32xf32>
    %c0_130 = arith.constant 0 : index
    %c0_131 = arith.constant 0 : index
    %c0_132 = arith.constant 0 : index
    %261 = vector.load %arg21[%c0_130, %c0_131, %c0_132] : memref<1x1x32xf32, #tpu.memory_space<vmem>>, vector<1x1x32xf32>
    %262 = vector.shape_cast %261 : vector<1x1x32xf32> to vector<1x32xf32>
    %263 = vector.broadcast %262 : vector<1x32xf32> to vector<16x32xf32>
    %264 = arith.addf %260, %263 : vector<16x32xf32>
    %cst_133 = arith.constant 0.000000e+00 : f32
    %265 = vector.broadcast %cst_133 : f32 to vector<16x32xf32>
    %266 = arith.cmpf ogt, %264, %265 : vector<16x32xf32>
    %cst_134 = arith.constant 0.000000e+00 : f32
    %267 = vector.broadcast %cst_134 : f32 to vector<16x32xf32>
    %268 = arith.minimumf %264, %267 : vector<16x32xf32>
    %269 = math.exp %268 : vector<16x32xf32>
    %cst_135 = arith.constant 1.000000e+00 : f32
    %270 = vector.broadcast %cst_135 : f32 to vector<16x32xf32>
    %271 = arith.subf %269, %270 : vector<16x32xf32>
    %272 = arith.select %266, %264, %271 : vector<16x32xi1>, vector<16x32xf32>
    %273 = tpu.iota {dimensions = array<i32: 0>} : vector<16x1xi32>
    %c0_i32_136 = arith.constant 0 : i32
    %274 = vector.broadcast %c0_i32_136 : i32 to vector<16x1xi32>
    %275 = arith.cmpi eq, %273, %274 : vector<16x1xi32>
    %cst_137 = arith.constant dense<0.000000e+00> : vector<16x32xf32>
    %276 = tpu.matmul %235, %272, %cst_137 {dimension_numbers = #tpu.dot_dimension_numbers<[1], [0], [0], [1], [0, 0, 1, 1], [], []>} : vector<16x16xf32>, vector<16x32xf32>, vector<16x32xf32> -> vector<16x32xf32>
    %cst_138 = arith.constant -1.000000e+30 : f32
    %277 = vector.shape_cast %275 : vector<16x1xi1> to vector<16x1xi1>
    %278 = vector.broadcast %277 : vector<16x1xi1> to vector<16x32xi1>
    %279 = vector.broadcast %cst_138 : f32 to vector<16x32xf32>
    %280 = arith.select %278, %279, %276 : vector<16x32xi1>, vector<16x32xf32>
    %c15_i32_139 = arith.constant 15 : i32
    %281 = vector.broadcast %c15_i32_139 : i32 to vector<16x1xi32>
    %282 = arith.cmpi eq, %273, %281 : vector<16x1xi32>
    %cst_140 = arith.constant dense<0.000000e+00> : vector<16x32xf32>
    %283 = tpu.matmul %247, %272, %cst_140 {dimension_numbers = #tpu.dot_dimension_numbers<[1], [0], [0], [1], [0, 0, 1, 1], [], []>} : vector<16x16xf32>, vector<16x32xf32>, vector<16x32xf32> -> vector<16x32xf32>
    %cst_141 = arith.constant -1.000000e+30 : f32
    %284 = vector.shape_cast %282 : vector<16x1xi1> to vector<16x1xi1>
    %285 = vector.broadcast %284 : vector<16x1xi1> to vector<16x32xi1>
    %286 = vector.broadcast %cst_141 : f32 to vector<16x32xf32>
    %287 = arith.select %285, %286, %283 : vector<16x32xi1>, vector<16x32xf32>
    %288 = arith.maximumf %280, %272 : vector<16x32xf32>
    %289 = arith.maximumf %288, %287 : vector<16x32xf32>
    %290 = tpu.iota {dimensions = array<i32: 0>} : vector<8x16xi32>
    %291 = tpu.iota {dimensions = array<i32: 1>} : vector<8x16xi32>
    %c2_i32 = arith.constant 2 : i32
    %292 = vector.broadcast %c2_i32 : i32 to vector<8x16xi32>
    %293 = arith.muli %292, %290 : vector<8x16xi32>
    %294 = arith.cmpi eq, %291, %293 : vector<8x16xi32>
    %cst_142 = arith.constant 1.000000e+00 : f32
    %cst_143 = arith.constant 0.000000e+00 : f32
    %295 = vector.broadcast %cst_142 : f32 to vector<8x16xf32>
    %296 = vector.broadcast %cst_143 : f32 to vector<8x16xf32>
    %297 = arith.select %294, %295, %296 : vector<8x16xi1>, vector<8x16xf32>
    %cst_144 = arith.constant dense<0.000000e+00> : vector<8x32xf32>
    %298 = tpu.matmul %297, %289, %cst_144 {dimension_numbers = #tpu.dot_dimension_numbers<[1], [0], [0], [1], [0, 0, 1, 1], [], []>} : vector<8x16xf32>, vector<16x32xf32>, vector<8x32xf32> -> vector<8x32xf32>
    %c1_145 = arith.constant 1 : index
    %c0_146 = arith.constant 0 : index
    %c0_147 = arith.constant 0 : index
    %299 = vector.load %arg4[%c1_145, %c0_146, %c0_147] : memref<2x32x32xf32, #tpu.memory_space<vmem>>, vector<1x32x32xf32>
    %300 = vector.shape_cast %299 : vector<1x32x32xf32> to vector<32x32xf32>
    %c1_148 = arith.constant 1 : index
    %c0_149 = arith.constant 0 : index
    %c0_150 = arith.constant 0 : index
    %301 = vector.load %arg5[%c1_148, %c0_149, %c0_150] : memref<2x1x32xf32, #tpu.memory_space<vmem>>, vector<1x1x32xf32>
    %302 = vector.shape_cast %301 : vector<1x1x32xf32> to vector<1x32xf32>
    %c1_151 = arith.constant 1 : index
    %c0_152 = arith.constant 0 : index
    %c0_153 = arith.constant 0 : index
    %303 = vector.load %arg6[%c1_151, %c0_152, %c0_153] : memref<2x32x32xf32, #tpu.memory_space<vmem>>, vector<1x32x32xf32>
    %304 = vector.shape_cast %303 : vector<1x32x32xf32> to vector<32x32xf32>
    %c1_154 = arith.constant 1 : index
    %c0_155 = arith.constant 0 : index
    %c0_156 = arith.constant 0 : index
    %305 = vector.load %arg7[%c1_154, %c0_155, %c0_156] : memref<2x1x32xf32, #tpu.memory_space<vmem>>, vector<1x1x32xf32>
    %306 = vector.shape_cast %305 : vector<1x1x32xf32> to vector<1x32xf32>
    %c1_157 = arith.constant 1 : index
    %c0_158 = arith.constant 0 : index
    %c0_159 = arith.constant 0 : index
    %307 = vector.load %arg8[%c1_157, %c0_158, %c0_159] : memref<2x32x32xf32, #tpu.memory_space<vmem>>, vector<1x32x32xf32>
    %308 = vector.shape_cast %307 : vector<1x32x32xf32> to vector<32x32xf32>
    %c1_160 = arith.constant 1 : index
    %c0_161 = arith.constant 0 : index
    %c0_162 = arith.constant 0 : index
    %309 = vector.load %arg9[%c1_160, %c0_161, %c0_162] : memref<2x1x32xf32, #tpu.memory_space<vmem>>, vector<1x1x32xf32>
    %310 = vector.shape_cast %309 : vector<1x1x32xf32> to vector<1x32xf32>
    %c1_163 = arith.constant 1 : index
    %c0_164 = arith.constant 0 : index
    %c0_165 = arith.constant 0 : index
    %311 = vector.load %arg10[%c1_163, %c0_164, %c0_165] : memref<2x32x32xf32, #tpu.memory_space<vmem>>, vector<1x32x32xf32>
    %312 = vector.shape_cast %311 : vector<1x32x32xf32> to vector<32x32xf32>
    %c1_166 = arith.constant 1 : index
    %c0_167 = arith.constant 0 : index
    %c0_168 = arith.constant 0 : index
    %313 = vector.load %arg11[%c1_166, %c0_167, %c0_168] : memref<2x1x32xf32, #tpu.memory_space<vmem>>, vector<1x1x32xf32>
    %314 = vector.shape_cast %313 : vector<1x1x32xf32> to vector<1x32xf32>
    %cst_169 = arith.constant dense<0.000000e+00> : vector<8x32xf32>
    %315 = tpu.matmul %298, %300, %cst_169 {dimension_numbers = #tpu.dot_dimension_numbers<[1], [0], [0], [1], [0, 0, 1, 1], [], []>} : vector<8x32xf32>, vector<32x32xf32>, vector<8x32xf32> -> vector<8x32xf32>
    %316 = vector.broadcast %302 : vector<1x32xf32> to vector<8x32xf32>
    %317 = arith.addf %315, %316 : vector<8x32xf32>
    %cst_170 = arith.constant dense<0.000000e+00> : vector<8x32xf32>
    %318 = tpu.matmul %298, %304, %cst_170 {dimension_numbers = #tpu.dot_dimension_numbers<[1], [0], [0], [1], [0, 0, 1, 1], [], []>} : vector<8x32xf32>, vector<32x32xf32>, vector<8x32xf32> -> vector<8x32xf32>
    %319 = vector.broadcast %306 : vector<1x32xf32> to vector<8x32xf32>
    %320 = arith.addf %318, %319 : vector<8x32xf32>
    %cst_171 = arith.constant dense<0.000000e+00> : vector<8x32xf32>
    %321 = tpu.matmul %298, %308, %cst_171 {dimension_numbers = #tpu.dot_dimension_numbers<[1], [0], [0], [1], [0, 0, 1, 1], [], []>} : vector<8x32xf32>, vector<32x32xf32>, vector<8x32xf32> -> vector<8x32xf32>
    %322 = vector.broadcast %310 : vector<1x32xf32> to vector<8x32xf32>
    %323 = arith.addf %321, %322 : vector<8x32xf32>
    %cst_172 = arith.constant 0.000000e+00 : f32
    %324 = vector.broadcast %cst_172 : f32 to vector<8x32xf32>
    %325 = vector.broadcast %8 : vector<1x32xf32> to vector<8x32xf32>
    %326 = arith.mulf %317, %325 : vector<8x32xf32>
    %cst_173 = arith.constant dense<0.000000e+00> : vector<8x8xf32>
    %327 = tpu.matmul %326, %320, %cst_173 {dimension_numbers = #tpu.dot_dimension_numbers<[1], [1], [0], [0], [0, 0, 1, 0], [], []>} : vector<8x32xf32>, vector<8x32xf32>, vector<8x8xf32> -> vector<8x8xf32>
    %cst_174 = arith.constant 0.353553385 : f32
    %328 = vector.broadcast %cst_174 : f32 to vector<8x8xf32>
    %329 = arith.mulf %327, %328 : vector<8x8xf32>
    %cst_175 = arith.constant dense<0xFF800000> : vector<8xf32>
    %330 = vector.multi_reduction <maximumf>, %329, %cst_175 [1] : vector<8x8xf32> to vector<8xf32>
    %331 = vector.shape_cast %330 : vector<8xf32> to vector<8x1xf32>
    %332 = vector.broadcast %331 : vector<8x1xf32> to vector<8x8xf32>
    %333 = arith.subf %329, %332 : vector<8x8xf32>
    %334 = math.exp %333 : vector<8x8xf32>
    %cst_176 = arith.constant dense<0.000000e+00> : vector<8xf32>
    %335 = vector.multi_reduction <add>, %334, %cst_176 [1] : vector<8x8xf32> to vector<8xf32>
    %336 = vector.shape_cast %335 : vector<8xf32> to vector<8x1xf32>
    %337 = tpu.reciprocal %336 {approx = true} : vector<8x1xf32> -> vector<8x1xf32>
    %338 = vector.broadcast %337 : vector<8x1xf32> to vector<8x8xf32>
    %339 = arith.mulf %334, %338 : vector<8x8xf32>
    %340 = vector.broadcast %8 : vector<1x32xf32> to vector<8x32xf32>
    %341 = arith.mulf %323, %340 : vector<8x32xf32>
    %cst_177 = arith.constant dense<0.000000e+00> : vector<8x32xf32>
    %342 = tpu.matmul %339, %341, %cst_177 {dimension_numbers = #tpu.dot_dimension_numbers<[1], [0], [0], [1], [0, 0, 1, 1], [], []>} : vector<8x8xf32>, vector<8x32xf32>, vector<8x32xf32> -> vector<8x32xf32>
    %343 = arith.addf %324, %342 : vector<8x32xf32>
    %344 = vector.broadcast %16 : vector<1x32xf32> to vector<8x32xf32>
    %345 = arith.mulf %317, %344 : vector<8x32xf32>
    %cst_178 = arith.constant dense<0.000000e+00> : vector<8x8xf32>
    %346 = tpu.matmul %345, %320, %cst_178 {dimension_numbers = #tpu.dot_dimension_numbers<[1], [1], [0], [0], [0, 0, 1, 0], [], []>} : vector<8x32xf32>, vector<8x32xf32>, vector<8x8xf32> -> vector<8x8xf32>
    %cst_179 = arith.constant 0.353553385 : f32
    %347 = vector.broadcast %cst_179 : f32 to vector<8x8xf32>
    %348 = arith.mulf %346, %347 : vector<8x8xf32>
    %cst_180 = arith.constant dense<0xFF800000> : vector<8xf32>
    %349 = vector.multi_reduction <maximumf>, %348, %cst_180 [1] : vector<8x8xf32> to vector<8xf32>
    %350 = vector.shape_cast %349 : vector<8xf32> to vector<8x1xf32>
    %351 = vector.broadcast %350 : vector<8x1xf32> to vector<8x8xf32>
    %352 = arith.subf %348, %351 : vector<8x8xf32>
    %353 = math.exp %352 : vector<8x8xf32>
    %cst_181 = arith.constant dense<0.000000e+00> : vector<8xf32>
    %354 = vector.multi_reduction <add>, %353, %cst_181 [1] : vector<8x8xf32> to vector<8xf32>
    %355 = vector.shape_cast %354 : vector<8xf32> to vector<8x1xf32>
    %356 = tpu.reciprocal %355 {approx = true} : vector<8x1xf32> -> vector<8x1xf32>
    %357 = vector.broadcast %356 : vector<8x1xf32> to vector<8x8xf32>
    %358 = arith.mulf %353, %357 : vector<8x8xf32>
    %359 = vector.broadcast %16 : vector<1x32xf32> to vector<8x32xf32>
    %360 = arith.mulf %323, %359 : vector<8x32xf32>
    %cst_182 = arith.constant dense<0.000000e+00> : vector<8x32xf32>
    %361 = tpu.matmul %358, %360, %cst_182 {dimension_numbers = #tpu.dot_dimension_numbers<[1], [0], [0], [1], [0, 0, 1, 1], [], []>} : vector<8x8xf32>, vector<8x32xf32>, vector<8x32xf32> -> vector<8x32xf32>
    %362 = arith.addf %343, %361 : vector<8x32xf32>
    %363 = vector.broadcast %24 : vector<1x32xf32> to vector<8x32xf32>
    %364 = arith.mulf %317, %363 : vector<8x32xf32>
    %cst_183 = arith.constant dense<0.000000e+00> : vector<8x8xf32>
    %365 = tpu.matmul %364, %320, %cst_183 {dimension_numbers = #tpu.dot_dimension_numbers<[1], [1], [0], [0], [0, 0, 1, 0], [], []>} : vector<8x32xf32>, vector<8x32xf32>, vector<8x8xf32> -> vector<8x8xf32>
    %cst_184 = arith.constant 0.353553385 : f32
    %366 = vector.broadcast %cst_184 : f32 to vector<8x8xf32>
    %367 = arith.mulf %365, %366 : vector<8x8xf32>
    %cst_185 = arith.constant dense<0xFF800000> : vector<8xf32>
    %368 = vector.multi_reduction <maximumf>, %367, %cst_185 [1] : vector<8x8xf32> to vector<8xf32>
    %369 = vector.shape_cast %368 : vector<8xf32> to vector<8x1xf32>
    %370 = vector.broadcast %369 : vector<8x1xf32> to vector<8x8xf32>
    %371 = arith.subf %367, %370 : vector<8x8xf32>
    %372 = math.exp %371 : vector<8x8xf32>
    %cst_186 = arith.constant dense<0.000000e+00> : vector<8xf32>
    %373 = vector.multi_reduction <add>, %372, %cst_186 [1] : vector<8x8xf32> to vector<8xf32>
    %374 = vector.shape_cast %373 : vector<8xf32> to vector<8x1xf32>
    %375 = tpu.reciprocal %374 {approx = true} : vector<8x1xf32> -> vector<8x1xf32>
    %376 = vector.broadcast %375 : vector<8x1xf32> to vector<8x8xf32>
    %377 = arith.mulf %372, %376 : vector<8x8xf32>
    %378 = vector.broadcast %24 : vector<1x32xf32> to vector<8x32xf32>
    %379 = arith.mulf %323, %378 : vector<8x32xf32>
    %cst_187 = arith.constant dense<0.000000e+00> : vector<8x32xf32>
    %380 = tpu.matmul %377, %379, %cst_187 {dimension_numbers = #tpu.dot_dimension_numbers<[1], [0], [0], [1], [0, 0, 1, 1], [], []>} : vector<8x8xf32>, vector<8x32xf32>, vector<8x32xf32> -> vector<8x32xf32>
    %381 = arith.addf %362, %380 : vector<8x32xf32>
    %382 = vector.broadcast %32 : vector<1x32xf32> to vector<8x32xf32>
    %383 = arith.mulf %317, %382 : vector<8x32xf32>
    %cst_188 = arith.constant dense<0.000000e+00> : vector<8x8xf32>
    %384 = tpu.matmul %383, %320, %cst_188 {dimension_numbers = #tpu.dot_dimension_numbers<[1], [1], [0], [0], [0, 0, 1, 0], [], []>} : vector<8x32xf32>, vector<8x32xf32>, vector<8x8xf32> -> vector<8x8xf32>
    %cst_189 = arith.constant 0.353553385 : f32
    %385 = vector.broadcast %cst_189 : f32 to vector<8x8xf32>
    %386 = arith.mulf %384, %385 : vector<8x8xf32>
    %cst_190 = arith.constant dense<0xFF800000> : vector<8xf32>
    %387 = vector.multi_reduction <maximumf>, %386, %cst_190 [1] : vector<8x8xf32> to vector<8xf32>
    %388 = vector.shape_cast %387 : vector<8xf32> to vector<8x1xf32>
    %389 = vector.broadcast %388 : vector<8x1xf32> to vector<8x8xf32>
    %390 = arith.subf %386, %389 : vector<8x8xf32>
    %391 = math.exp %390 : vector<8x8xf32>
    %cst_191 = arith.constant dense<0.000000e+00> : vector<8xf32>
    %392 = vector.multi_reduction <add>, %391, %cst_191 [1] : vector<8x8xf32> to vector<8xf32>
    %393 = vector.shape_cast %392 : vector<8xf32> to vector<8x1xf32>
    %394 = tpu.reciprocal %393 {approx = true} : vector<8x1xf32> -> vector<8x1xf32>
    %395 = vector.broadcast %394 : vector<8x1xf32> to vector<8x8xf32>
    %396 = arith.mulf %391, %395 : vector<8x8xf32>
    %397 = vector.broadcast %32 : vector<1x32xf32> to vector<8x32xf32>
    %398 = arith.mulf %323, %397 : vector<8x32xf32>
    %cst_192 = arith.constant dense<0.000000e+00> : vector<8x32xf32>
    %399 = tpu.matmul %396, %398, %cst_192 {dimension_numbers = #tpu.dot_dimension_numbers<[1], [0], [0], [1], [0, 0, 1, 1], [], []>} : vector<8x8xf32>, vector<8x32xf32>, vector<8x32xf32> -> vector<8x32xf32>
    %400 = arith.addf %381, %399 : vector<8x32xf32>
    %cst_193 = arith.constant dense<0.000000e+00> : vector<8x32xf32>
    %401 = tpu.matmul %400, %312, %cst_193 {dimension_numbers = #tpu.dot_dimension_numbers<[1], [0], [0], [1], [0, 0, 1, 1], [], []>} : vector<8x32xf32>, vector<32x32xf32>, vector<8x32xf32> -> vector<8x32xf32>
    %402 = vector.broadcast %314 : vector<1x32xf32> to vector<8x32xf32>
    %403 = arith.addf %401, %402 : vector<8x32xf32>
    %404 = arith.addf %298, %403 : vector<8x32xf32>
    %c1_194 = arith.constant 1 : index
    %c0_195 = arith.constant 0 : index
    %c0_196 = arith.constant 0 : index
    %405 = vector.load %arg12[%c1_194, %c0_195, %c0_196] : memref<2x1x32xf32, #tpu.memory_space<vmem>>, vector<1x1x32xf32>
    %406 = vector.shape_cast %405 : vector<1x1x32xf32> to vector<1x32xf32>
    %c1_197 = arith.constant 1 : index
    %c0_198 = arith.constant 0 : index
    %c0_199 = arith.constant 0 : index
    %407 = vector.load %arg13[%c1_197, %c0_198, %c0_199] : memref<2x1x32xf32, #tpu.memory_space<vmem>>, vector<1x1x32xf32>
    %408 = vector.shape_cast %407 : vector<1x1x32xf32> to vector<1x32xf32>
    %cst_200 = arith.constant dense<0.000000e+00> : vector<8xf32>
    %409 = vector.multi_reduction <add>, %404, %cst_200 [1] : vector<8x32xf32> to vector<8xf32>
    %410 = vector.shape_cast %409 : vector<8xf32> to vector<8x1xf32>
    %cst_201 = arith.constant 3.200000e+01 : f32
    %411 = vector.broadcast %cst_201 : f32 to vector<8x1xf32>
    %412 = arith.divf %410, %411 : vector<8x1xf32>
    %413 = vector.broadcast %412 : vector<8x1xf32> to vector<8x32xf32>
    %414 = arith.subf %404, %413 : vector<8x32xf32>
    %415 = arith.mulf %414, %414 : vector<8x32xf32>
    %cst_202 = arith.constant dense<0.000000e+00> : vector<8xf32>
    %416 = vector.multi_reduction <add>, %415, %cst_202 [1] : vector<8x32xf32> to vector<8xf32>
    %417 = vector.shape_cast %416 : vector<8xf32> to vector<8x1xf32>
    %cst_203 = arith.constant 3.200000e+01 : f32
    %418 = vector.broadcast %cst_203 : f32 to vector<8x1xf32>
    %419 = arith.divf %417, %418 : vector<8x1xf32>
    %cst_204 = arith.constant 9.99999974E-6 : f32
    %420 = vector.broadcast %cst_204 : f32 to vector<8x1xf32>
    %421 = arith.addf %419, %420 : vector<8x1xf32>
    %422 = math.rsqrt %421 : vector<8x1xf32>
    %423 = vector.broadcast %422 : vector<8x1xf32> to vector<8x32xf32>
    %424 = arith.mulf %414, %423 : vector<8x32xf32>
    %425 = vector.broadcast %406 : vector<1x32xf32> to vector<8x32xf32>
    %426 = arith.mulf %424, %425 : vector<8x32xf32>
    %427 = vector.broadcast %408 : vector<1x32xf32> to vector<8x32xf32>
    %428 = arith.addf %426, %427 : vector<8x32xf32>
    %c1_205 = arith.constant 1 : index
    %c0_206 = arith.constant 0 : index
    %c0_207 = arith.constant 0 : index
    %429 = vector.load %arg14[%c1_205, %c0_206, %c0_207] : memref<2x32x32xf32, #tpu.memory_space<vmem>>, vector<1x32x32xf32>
    %430 = vector.shape_cast %429 : vector<1x32x32xf32> to vector<32x32xf32>
    %cst_208 = arith.constant dense<0.000000e+00> : vector<8x32xf32>
    %431 = tpu.matmul %428, %430, %cst_208 {dimension_numbers = #tpu.dot_dimension_numbers<[1], [0], [0], [1], [0, 0, 1, 1], [], []>} : vector<8x32xf32>, vector<32x32xf32>, vector<8x32xf32> -> vector<8x32xf32>
    %c1_209 = arith.constant 1 : index
    %c0_210 = arith.constant 0 : index
    %c0_211 = arith.constant 0 : index
    %432 = vector.load %arg15[%c1_209, %c0_210, %c0_211] : memref<2x1x32xf32, #tpu.memory_space<vmem>>, vector<1x1x32xf32>
    %433 = vector.shape_cast %432 : vector<1x1x32xf32> to vector<1x32xf32>
    %434 = vector.broadcast %433 : vector<1x32xf32> to vector<8x32xf32>
    %435 = arith.addf %431, %434 : vector<8x32xf32>
    %436 = arith.mulf %435, %435 : vector<8x32xf32>
    %437 = arith.mulf %435, %436 : vector<8x32xf32>
    %cst_212 = arith.constant 4.471500e-02 : f32
    %438 = vector.broadcast %cst_212 : f32 to vector<8x32xf32>
    %439 = arith.mulf %438, %437 : vector<8x32xf32>
    %440 = arith.addf %435, %439 : vector<8x32xf32>
    %cst_213 = arith.constant 0.797884583 : f32
    %441 = vector.broadcast %cst_213 : f32 to vector<8x32xf32>
    %442 = arith.mulf %441, %440 : vector<8x32xf32>
    %443 = math.tanh %442 : vector<8x32xf32>
    %cst_214 = arith.constant 1.000000e+00 : f32
    %444 = vector.broadcast %cst_214 : f32 to vector<8x32xf32>
    %445 = arith.addf %444, %443 : vector<8x32xf32>
    %cst_215 = arith.constant 5.000000e-01 : f32
    %446 = vector.broadcast %cst_215 : f32 to vector<8x32xf32>
    %447 = arith.mulf %446, %445 : vector<8x32xf32>
    %448 = arith.mulf %435, %447 : vector<8x32xf32>
    %c1_216 = arith.constant 1 : index
    %c0_217 = arith.constant 0 : index
    %c0_218 = arith.constant 0 : index
    %449 = vector.load %arg16[%c1_216, %c0_217, %c0_218] : memref<2x32x32xf32, #tpu.memory_space<vmem>>, vector<1x32x32xf32>
    %450 = vector.shape_cast %449 : vector<1x32x32xf32> to vector<32x32xf32>
    %cst_219 = arith.constant dense<0.000000e+00> : vector<8x32xf32>
    %451 = tpu.matmul %448, %450, %cst_219 {dimension_numbers = #tpu.dot_dimension_numbers<[1], [0], [0], [1], [0, 0, 1, 1], [], []>} : vector<8x32xf32>, vector<32x32xf32>, vector<8x32xf32> -> vector<8x32xf32>
    %c1_220 = arith.constant 1 : index
    %c0_221 = arith.constant 0 : index
    %c0_222 = arith.constant 0 : index
    %452 = vector.load %arg17[%c1_220, %c0_221, %c0_222] : memref<2x1x32xf32, #tpu.memory_space<vmem>>, vector<1x1x32xf32>
    %453 = vector.shape_cast %452 : vector<1x1x32xf32> to vector<1x32xf32>
    %454 = vector.broadcast %453 : vector<1x32xf32> to vector<8x32xf32>
    %455 = arith.addf %451, %454 : vector<8x32xf32>
    %456 = arith.addf %428, %455 : vector<8x32xf32>
    %c1_223 = arith.constant 1 : index
    %c0_224 = arith.constant 0 : index
    %c0_225 = arith.constant 0 : index
    %457 = vector.load %arg18[%c1_223, %c0_224, %c0_225] : memref<2x1x32xf32, #tpu.memory_space<vmem>>, vector<1x1x32xf32>
    %458 = vector.shape_cast %457 : vector<1x1x32xf32> to vector<1x32xf32>
    %c1_226 = arith.constant 1 : index
    %c0_227 = arith.constant 0 : index
    %c0_228 = arith.constant 0 : index
    %459 = vector.load %arg19[%c1_226, %c0_227, %c0_228] : memref<2x1x32xf32, #tpu.memory_space<vmem>>, vector<1x1x32xf32>
    %460 = vector.shape_cast %459 : vector<1x1x32xf32> to vector<1x32xf32>
    %cst_229 = arith.constant dense<0.000000e+00> : vector<8xf32>
    %461 = vector.multi_reduction <add>, %456, %cst_229 [1] : vector<8x32xf32> to vector<8xf32>
    %462 = vector.shape_cast %461 : vector<8xf32> to vector<8x1xf32>
    %cst_230 = arith.constant 3.200000e+01 : f32
    %463 = vector.broadcast %cst_230 : f32 to vector<8x1xf32>
    %464 = arith.divf %462, %463 : vector<8x1xf32>
    %465 = vector.broadcast %464 : vector<8x1xf32> to vector<8x32xf32>
    %466 = arith.subf %456, %465 : vector<8x32xf32>
    %467 = arith.mulf %466, %466 : vector<8x32xf32>
    %cst_231 = arith.constant dense<0.000000e+00> : vector<8xf32>
    %468 = vector.multi_reduction <add>, %467, %cst_231 [1] : vector<8x32xf32> to vector<8xf32>
    %469 = vector.shape_cast %468 : vector<8xf32> to vector<8x1xf32>
    %cst_232 = arith.constant 3.200000e+01 : f32
    %470 = vector.broadcast %cst_232 : f32 to vector<8x1xf32>
    %471 = arith.divf %469, %470 : vector<8x1xf32>
    %cst_233 = arith.constant 9.99999974E-6 : f32
    %472 = vector.broadcast %cst_233 : f32 to vector<8x1xf32>
    %473 = arith.addf %471, %472 : vector<8x1xf32>
    %474 = math.rsqrt %473 : vector<8x1xf32>
    %475 = vector.broadcast %474 : vector<8x1xf32> to vector<8x32xf32>
    %476 = arith.mulf %466, %475 : vector<8x32xf32>
    %477 = vector.broadcast %458 : vector<1x32xf32> to vector<8x32xf32>
    %478 = arith.mulf %476, %477 : vector<8x32xf32>
    %479 = vector.broadcast %460 : vector<1x32xf32> to vector<8x32xf32>
    %480 = arith.addf %478, %479 : vector<8x32xf32>
    %c0_234 = arith.constant 0 : index
    %c0_235 = arith.constant 0 : index
    %481 = vector.load %arg22[%c0_234, %c0_235] : memref<1x32xf32, #tpu.memory_space<vmem>>, vector<1x32xf32>
    %c0_236 = arith.constant 0 : index
    %c0_237 = arith.constant 0 : index
    %482 = vector.load %arg23[%c0_236, %c0_237] : memref<1x32xf32, #tpu.memory_space<vmem>>, vector<1x32xf32>
    %cst_238 = arith.constant dense<0.000000e+00> : vector<8xf32>
    %483 = vector.multi_reduction <add>, %480, %cst_238 [1] : vector<8x32xf32> to vector<8xf32>
    %484 = vector.shape_cast %483 : vector<8xf32> to vector<8x1xf32>
    %cst_239 = arith.constant 3.200000e+01 : f32
    %485 = vector.broadcast %cst_239 : f32 to vector<8x1xf32>
    %486 = arith.divf %484, %485 : vector<8x1xf32>
    %487 = vector.broadcast %486 : vector<8x1xf32> to vector<8x32xf32>
    %488 = arith.subf %480, %487 : vector<8x32xf32>
    %489 = arith.mulf %488, %488 : vector<8x32xf32>
    %cst_240 = arith.constant dense<0.000000e+00> : vector<8xf32>
    %490 = vector.multi_reduction <add>, %489, %cst_240 [1] : vector<8x32xf32> to vector<8xf32>
    %491 = vector.shape_cast %490 : vector<8xf32> to vector<8x1xf32>
    %cst_241 = arith.constant 3.200000e+01 : f32
    %492 = vector.broadcast %cst_241 : f32 to vector<8x1xf32>
    %493 = arith.divf %491, %492 : vector<8x1xf32>
    %cst_242 = arith.constant 9.99999974E-6 : f32
    %494 = vector.broadcast %cst_242 : f32 to vector<8x1xf32>
    %495 = arith.addf %493, %494 : vector<8x1xf32>
    %496 = math.rsqrt %495 : vector<8x1xf32>
    %497 = vector.broadcast %496 : vector<8x1xf32> to vector<8x32xf32>
    %498 = arith.mulf %488, %497 : vector<8x32xf32>
    %499 = vector.broadcast %481 : vector<1x32xf32> to vector<8x32xf32>
    %500 = arith.mulf %498, %499 : vector<8x32xf32>
    %501 = vector.broadcast %482 : vector<1x32xf32> to vector<8x32xf32>
    %502 = arith.addf %500, %501 : vector<8x32xf32>
    %c0_243 = arith.constant 0 : index
    %c0_244 = arith.constant 0 : index
    %c0_245 = arith.constant 0 : index
    %503 = vector.load %arg24[%c0_243, %c0_244, %c0_245] : memref<1x8x32xf32, #tpu.memory_space<vmem>>, vector<1x8x32xf32>
    %504 = vector.shape_cast %503 : vector<1x8x32xf32> to vector<8x32xf32>
    %505 = vector.shape_cast %502 : vector<8x32xf32> to vector<1x8x32xf32>
    tpu.vector_store %arg24[%c0_243, %c0_244, %c0_245], %505 {strides = array<i32>} : memref<1x8x32xf32, #tpu.memory_space<vmem>>, vector<1x8x32xf32>,
    return
  }
  func.func @transform_0(%arg0: i32) -> (i32, i32, i32) {
    %c0_i32 = arith.constant 0 : i32
    %c0_i32_0 = arith.constant 0 : i32
    %c0_i32_1 = arith.constant 0 : i32
    return %arg0, %c0_i32, %c0_i32_0 : i32, i32, i32
  }
  func.func @transform_1(%arg0: i32) -> (i32, i32, i32) {
    %c0_i32 = arith.constant 0 : i32
    %c0_i32_0 = arith.constant 0 : i32
    %c0_i32_1 = arith.constant 0 : i32
    return %arg0, %c0_i32, %c0_i32_0 : i32, i32, i32
  }
  func.func @transform_2(%arg0: i32) -> (i32, i32) {
    %c0_i32 = arith.constant 0 : i32
    %c0_i32_0 = arith.constant 0 : i32
    %c0_i32_1 = arith.constant 0 : i32
    return %c0_i32, %c0_i32_0 : i32, i32
  }
  func.func @transform_3(%arg0: i32) -> (i32, i32, i32) {
    %c0_i32 = arith.constant 0 : i32
    %c0_i32_0 = arith.constant 0 : i32
    %c0_i32_1 = arith.constant 0 : i32
    %c0_i32_2 = arith.constant 0 : i32
    return %c0_i32, %c0_i32_0, %c0_i32_1 : i32, i32, i32
  }
  func.func @transform_4(%arg0: i32) -> (i32, i32, i32) {
    %c0_i32 = arith.constant 0 : i32
    %c0_i32_0 = arith.constant 0 : i32
    %c0_i32_1 = arith.constant 0 : i32
    %c0_i32_2 = arith.constant 0 : i32
    return %c0_i32, %c0_i32_0, %c0_i32_1 : i32, i32, i32
  }
  func.func @transform_5(%arg0: i32) -> (i32, i32, i32) {
    %c0_i32 = arith.constant 0 : i32
    %c0_i32_0 = arith.constant 0 : i32
    %c0_i32_1 = arith.constant 0 : i32
    %c0_i32_2 = arith.constant 0 : i32
    return %c0_i32, %c0_i32_0, %c0_i32_1 : i32, i32, i32
  }
  func.func @transform_6(%arg0: i32) -> (i32, i32, i32) {
    %c0_i32 = arith.constant 0 : i32
    %c0_i32_0 = arith.constant 0 : i32
    %c0_i32_1 = arith.constant 0 : i32
    %c0_i32_2 = arith.constant 0 : i32
    return %c0_i32, %c0_i32_0, %c0_i32_1 : i32, i32, i32
  }
  func.func @transform_7(%arg0: i32) -> (i32, i32, i32) {
    %c0_i32 = arith.constant 0 : i32
    %c0_i32_0 = arith.constant 0 : i32
    %c0_i32_1 = arith.constant 0 : i32
    %c0_i32_2 = arith.constant 0 : i32
    return %c0_i32, %c0_i32_0, %c0_i32_1 : i32, i32, i32
  }
  func.func @transform_8(%arg0: i32) -> (i32, i32, i32) {
    %c0_i32 = arith.constant 0 : i32
    %c0_i32_0 = arith.constant 0 : i32
    %c0_i32_1 = arith.constant 0 : i32
    %c0_i32_2 = arith.constant 0 : i32
    return %c0_i32, %c0_i32_0, %c0_i32_1 : i32, i32, i32
  }
  func.func @transform_9(%arg0: i32) -> (i32, i32, i32) {
    %c0_i32 = arith.constant 0 : i32
    %c0_i32_0 = arith.constant 0 : i32
    %c0_i32_1 = arith.constant 0 : i32
    %c0_i32_2 = arith.constant 0 : i32
    return %c0_i32, %c0_i32_0, %c0_i32_1 : i32, i32, i32
  }
  func.func @transform_10(%arg0: i32) -> (i32, i32, i32) {
    %c0_i32 = arith.constant 0 : i32
    %c0_i32_0 = arith.constant 0 : i32
    %c0_i32_1 = arith.constant 0 : i32
    %c0_i32_2 = arith.constant 0 : i32
    return %c0_i32, %c0_i32_0, %c0_i32_1 : i32, i32, i32
  }
  func.func @transform_11(%arg0: i32) -> (i32, i32, i32) {
    %c0_i32 = arith.constant 0 : i32
    %c0_i32_0 = arith.constant 0 : i32
    %c0_i32_1 = arith.constant 0 : i32
    %c0_i32_2 = arith.constant 0 : i32
    return %c0_i32, %c0_i32_0, %c0_i32_1 : i32, i32, i32
  }
  func.func @transform_12(%arg0: i32) -> (i32, i32, i32) {
    %c0_i32 = arith.constant 0 : i32
    %c0_i32_0 = arith.constant 0 : i32
    %c0_i32_1 = arith.constant 0 : i32
    %c0_i32_2 = arith.constant 0 : i32
    return %c0_i32, %c0_i32_0, %c0_i32_1 : i32, i32, i32
  }
  func.func @transform_13(%arg0: i32) -> (i32, i32, i32) {
    %c0_i32 = arith.constant 0 : i32
    %c0_i32_0 = arith.constant 0 : i32
    %c0_i32_1 = arith.constant 0 : i32
    %c0_i32_2 = arith.constant 0 : i32
    return %c0_i32, %c0_i32_0, %c0_i32_1 : i32, i32, i32
  }
  func.func @transform_14(%arg0: i32) -> (i32, i32, i32) {
    %c0_i32 = arith.constant 0 : i32
    %c0_i32_0 = arith.constant 0 : i32
    %c0_i32_1 = arith.constant 0 : i32
    %c0_i32_2 = arith.constant 0 : i32
    return %c0_i32, %c0_i32_0, %c0_i32_1 : i32, i32, i32
  }
  func.func @transform_15(%arg0: i32) -> (i32, i32, i32) {
    %c0_i32 = arith.constant 0 : i32
    %c0_i32_0 = arith.constant 0 : i32
    %c0_i32_1 = arith.constant 0 : i32
    %c0_i32_2 = arith.constant 0 : i32
    return %c0_i32, %c0_i32_0, %c0_i32_1 : i32, i32, i32
  }
  func.func @transform_16(%arg0: i32) -> (i32, i32, i32) {
    %c0_i32 = arith.constant 0 : i32
    %c0_i32_0 = arith.constant 0 : i32
    %c0_i32_1 = arith.constant 0 : i32
    %c0_i32_2 = arith.constant 0 : i32
    return %c0_i32, %c0_i32_0, %c0_i32_1 : i32, i32, i32
  }
  func.func @transform_17(%arg0: i32) -> (i32, i32, i32) {
    %c0_i32 = arith.constant 0 : i32
    %c0_i32_0 = arith.constant 0 : i32
    %c0_i32_1 = arith.constant 0 : i32
    %c0_i32_2 = arith.constant 0 : i32
    return %c0_i32, %c0_i32_0, %c0_i32_1 : i32, i32, i32
  }
  func.func @transform_18(%arg0: i32) -> (i32, i32, i32) {
    %c0_i32 = arith.constant 0 : i32
    %c0_i32_0 = arith.constant 0 : i32
    %c0_i32_1 = arith.constant 0 : i32
    %c0_i32_2 = arith.constant 0 : i32
    return %c0_i32, %c0_i32_0, %c0_i32_1 : i32, i32, i32
  }
  func.func @transform_19(%arg0: i32) -> (i32, i32, i32, i32) {
    %c0_i32 = arith.constant 0 : i32
    %c0_i32_0 = arith.constant 0 : i32
    %c0_i32_1 = arith.constant 0 : i32
    %c0_i32_2 = arith.constant 0 : i32
    %c0_i32_3 = arith.constant 0 : i32
    return %c0_i32, %c0_i32_0, %c0_i32_1, %c0_i32_2 : i32, i32, i32, i32
  }
  func.func @transform_20(%arg0: i32) -> (i32, i32, i32) {
    %c0_i32 = arith.constant 0 : i32
    %c0_i32_0 = arith.constant 0 : i32
    %c0_i32_1 = arith.constant 0 : i32
    %c0_i32_2 = arith.constant 0 : i32
    return %c0_i32, %c0_i32_0, %c0_i32_1 : i32, i32, i32
  }
  func.func @transform_21(%arg0: i32) -> (i32, i32) {
    %c0_i32 = arith.constant 0 : i32
    %c0_i32_0 = arith.constant 0 : i32
    %c0_i32_1 = arith.constant 0 : i32
    return %c0_i32, %c0_i32_0 : i32, i32
  }
  func.func @transform_22(%arg0: i32) -> (i32, i32) {
    %c0_i32 = arith.constant 0 : i32
    %c0_i32_0 = arith.constant 0 : i32
    %c0_i32_1 = arith.constant 0 : i32
    return %c0_i32, %c0_i32_0 : i32, i32
  }
  func.func @transform_23(%arg0: i32) -> (i32, i32, i32) {
    %c0_i32 = arith.constant 0 : i32
    %c0_i32_0 = arith.constant 0 : i32
    %c0_i32_1 = arith.constant 0 : i32
    return %arg0, %c0_i32, %c0_i32_0 : i32, i32, i32
  }
}

module attributes {stable_mosaic.version = 11 : i64} {
  func.func @_decoder_kernel(%arg0: i32, %arg1: memref<1x16x12xf32, #tpu.memory_space<vmem>>, %arg2: memref<1x16x32xf32, #tpu.memory_space<vmem>>, %arg3: memref<1x8x32xf32, #tpu.memory_space<vmem>>, %arg4: memref<12x32xf32, #tpu.memory_space<vmem>>, %arg5: memref<1x32x32xf32, #tpu.memory_space<vmem>>, %arg6: memref<1x1x32xf32, #tpu.memory_space<vmem>>, %arg7: memref<1x32x32xf32, #tpu.memory_space<vmem>>, %arg8: memref<1x1x32xf32, #tpu.memory_space<vmem>>, %arg9: memref<1x4x32x8xf32, #tpu.memory_space<vmem>>, %arg10: memref<1x4x1x8xf32, #tpu.memory_space<vmem>>, %arg11: memref<1x32x32xf32, #tpu.memory_space<vmem>>, %arg12: memref<1x1x32xf32, #tpu.memory_space<vmem>>, %arg13: memref<1x32x32xf32, #tpu.memory_space<vmem>>, %arg14: memref<1x1x32xf32, #tpu.memory_space<vmem>>, %arg15: memref<1x32x32xf32, #tpu.memory_space<vmem>>, %arg16: memref<1x1x32xf32, #tpu.memory_space<vmem>>, %arg17: memref<1x32x32xf32, #tpu.memory_space<vmem>>, %arg18: memref<1x1x32xf32, #tpu.memory_space<vmem>>, %arg19: memref<1x32x32xf32, #tpu.memory_space<vmem>>, %arg20: memref<1x1x32xf32, #tpu.memory_space<vmem>>, %arg21: memref<1x1x32xf32, #tpu.memory_space<vmem>>, %arg22: memref<1x1x32xf32, #tpu.memory_space<vmem>>, %arg23: memref<1x1x32xf32, #tpu.memory_space<vmem>>, %arg24: memref<1x1x32xf32, #tpu.memory_space<vmem>>, %arg25: memref<1x1x32xf32, #tpu.memory_space<vmem>>, %arg26: memref<1x1x32xf32, #tpu.memory_space<vmem>>, %arg27: memref<1x32x32xf32, #tpu.memory_space<vmem>>, %arg28: memref<1x1x32xf32, #tpu.memory_space<vmem>>, %arg29: memref<1x32x32xf32, #tpu.memory_space<vmem>>, %arg30: memref<1x1x32xf32, #tpu.memory_space<vmem>>, %arg31: memref<1x32xf32, #tpu.memory_space<vmem>>, %arg32: memref<1x32xf32, #tpu.memory_space<vmem>>, %arg33: memref<32x4xf32, #tpu.memory_space<vmem>>, %arg34: memref<1x4xf32, #tpu.memory_space<vmem>>, %arg35: memref<1x16x4xf32, #tpu.memory_space<vmem>>) attributes {dimension_semantics = [#tpu.dimension_semantics<parallel>], iteration_bounds = array<i64: 2>, scalar_prefetch = 0 : i64, scratch_operands = 0 : i64, tpu.core_type = #tpu.core_type<tc>, window_params = [{transform_indices = @transform_0, window_bounds = array<i64: 1, 16, 12>}, {transform_indices = @transform_1, window_bounds = array<i64: 1, 16, 32>}, {transform_indices = @transform_2, window_bounds = array<i64: 1, 8, 32>}, {pipeline_mode = #tpu.pipeline_mode<synchronous>, transform_indices = @transform_3, window_bounds = array<i64: 12, 32>}, {pipeline_mode = #tpu.pipeline_mode<synchronous>, transform_indices = @transform_4, window_bounds = array<i64: 1, 32, 32>}, {pipeline_mode = #tpu.pipeline_mode<synchronous>, transform_indices = @transform_5, window_bounds = array<i64: 1, 1, 32>}, {pipeline_mode = #tpu.pipeline_mode<synchronous>, transform_indices = @transform_6, window_bounds = array<i64: 1, 32, 32>}, {pipeline_mode = #tpu.pipeline_mode<synchronous>, transform_indices = @transform_7, window_bounds = array<i64: 1, 1, 32>}, {pipeline_mode = #tpu.pipeline_mode<synchronous>, transform_indices = @transform_8, window_bounds = array<i64: 1, 4, 32, 8>}, {pipeline_mode = #tpu.pipeline_mode<synchronous>, transform_indices = @transform_9, window_bounds = array<i64: 1, 4, 1, 8>}, {pipeline_mode = #tpu.pipeline_mode<synchronous>, transform_indices = @transform_10, window_bounds = array<i64: 1, 32, 32>}, {pipeline_mode = #tpu.pipeline_mode<synchronous>, transform_indices = @transform_11, window_bounds = array<i64: 1, 1, 32>}, {pipeline_mode = #tpu.pipeline_mode<synchronous>, transform_indices = @transform_12, window_bounds = array<i64: 1, 32, 32>}, {pipeline_mode = #tpu.pipeline_mode<synchronous>, transform_indices = @transform_13, window_bounds = array<i64: 1, 1, 32>}, {pipeline_mode = #tpu.pipeline_mode<synchronous>, transform_indices = @transform_14, window_bounds = array<i64: 1, 32, 32>}, {pipeline_mode = #tpu.pipeline_mode<synchronous>, transform_indices = @transform_15, window_bounds = array<i64: 1, 1, 32>}, {pipeline_mode = #tpu.pipeline_mode<synchronous>, transform_indices = @transform_16, window_bounds = array<i64: 1, 32, 32>}, {pipeline_mode = #tpu.pipeline_mode<synchronous>, transform_indices = @transform_17, window_bounds = array<i64: 1, 1, 32>}, {pipeline_mode = #tpu.pipeline_mode<synchronous>, transform_indices = @transform_18, window_bounds = array<i64: 1, 32, 32>}, {pipeline_mode = #tpu.pipeline_mode<synchronous>, transform_indices = @transform_19, window_bounds = array<i64: 1, 1, 32>}, {pipeline_mode = #tpu.pipeline_mode<synchronous>, transform_indices = @transform_20, window_bounds = array<i64: 1, 1, 32>}, {pipeline_mode = #tpu.pipeline_mode<synchronous>, transform_indices = @transform_21, window_bounds = array<i64: 1, 1, 32>}, {pipeline_mode = #tpu.pipeline_mode<synchronous>, transform_indices = @transform_22, window_bounds = array<i64: 1, 1, 32>}, {pipeline_mode = #tpu.pipeline_mode<synchronous>, transform_indices = @transform_23, window_bounds = array<i64: 1, 1, 32>}, {pipeline_mode = #tpu.pipeline_mode<synchronous>, transform_indices = @transform_24, window_bounds = array<i64: 1, 1, 32>}, {pipeline_mode = #tpu.pipeline_mode<synchronous>, transform_indices = @transform_25, window_bounds = array<i64: 1, 1, 32>}, {pipeline_mode = #tpu.pipeline_mode<synchronous>, transform_indices = @transform_26, window_bounds = array<i64: 1, 32, 32>}, {pipeline_mode = #tpu.pipeline_mode<synchronous>, transform_indices = @transform_27, window_bounds = array<i64: 1, 1, 32>}, {pipeline_mode = #tpu.pipeline_mode<synchronous>, transform_indices = @transform_28, window_bounds = array<i64: 1, 32, 32>}, {pipeline_mode = #tpu.pipeline_mode<synchronous>, transform_indices = @transform_29, window_bounds = array<i64: 1, 1, 32>}, {pipeline_mode = #tpu.pipeline_mode<synchronous>, transform_indices = @transform_30, window_bounds = array<i64: 1, 32>}, {pipeline_mode = #tpu.pipeline_mode<synchronous>, transform_indices = @transform_31, window_bounds = array<i64: 1, 32>}, {pipeline_mode = #tpu.pipeline_mode<synchronous>, transform_indices = @transform_32, window_bounds = array<i64: 32, 4>}, {pipeline_mode = #tpu.pipeline_mode<synchronous>, transform_indices = @transform_33, window_bounds = array<i64: 1, 4>}, {transform_indices = @transform_34, window_bounds = array<i64: 1, 16, 4>}]} {
    %0 = tpu.iota {dimensions = array<i32: 1>} : vector<1x32xi32>
    %c0_i32 = arith.constant 0 : i32
    %1 = vector.broadcast %c0_i32 : i32 to vector<1x32xi32>
    %2 = arith.cmpi sge, %0, %1 : vector<1x32xi32>
    %c8_i32 = arith.constant 8 : i32
    %3 = vector.broadcast %c8_i32 : i32 to vector<1x32xi32>
    %4 = arith.cmpi slt, %0, %3 : vector<1x32xi32>
    %5 = arith.andi %2, %4 : vector<1x32xi1>
    %cst = arith.constant 1.000000e+00 : f32
    %cst_0 = arith.constant 0.000000e+00 : f32
    %6 = vector.broadcast %cst : f32 to vector<1x32xf32>
    %7 = vector.broadcast %cst_0 : f32 to vector<1x32xf32>
    %8 = arith.select %5, %6, %7 : vector<1x32xi1>, vector<1x32xf32>
    %c8_i32_1 = arith.constant 8 : i32
    %9 = vector.broadcast %c8_i32_1 : i32 to vector<1x32xi32>
    %10 = arith.cmpi sge, %0, %9 : vector<1x32xi32>
    %c16_i32 = arith.constant 16 : i32
    %11 = vector.broadcast %c16_i32 : i32 to vector<1x32xi32>
    %12 = arith.cmpi slt, %0, %11 : vector<1x32xi32>
    %13 = arith.andi %10, %12 : vector<1x32xi1>
    %cst_2 = arith.constant 1.000000e+00 : f32
    %cst_3 = arith.constant 0.000000e+00 : f32
    %14 = vector.broadcast %cst_2 : f32 to vector<1x32xf32>
    %15 = vector.broadcast %cst_3 : f32 to vector<1x32xf32>
    %16 = arith.select %13, %14, %15 : vector<1x32xi1>, vector<1x32xf32>
    %c16_i32_4 = arith.constant 16 : i32
    %17 = vector.broadcast %c16_i32_4 : i32 to vector<1x32xi32>
    %18 = arith.cmpi sge, %0, %17 : vector<1x32xi32>
    %c24_i32 = arith.constant 24 : i32
    %19 = vector.broadcast %c24_i32 : i32 to vector<1x32xi32>
    %20 = arith.cmpi slt, %0, %19 : vector<1x32xi32>
    %21 = arith.andi %18, %20 : vector<1x32xi1>
    %cst_5 = arith.constant 1.000000e+00 : f32
    %cst_6 = arith.constant 0.000000e+00 : f32
    %22 = vector.broadcast %cst_5 : f32 to vector<1x32xf32>
    %23 = vector.broadcast %cst_6 : f32 to vector<1x32xf32>
    %24 = arith.select %21, %22, %23 : vector<1x32xi1>, vector<1x32xf32>
    %c24_i32_7 = arith.constant 24 : i32
    %25 = vector.broadcast %c24_i32_7 : i32 to vector<1x32xi32>
    %26 = arith.cmpi sge, %0, %25 : vector<1x32xi32>
    %c32_i32 = arith.constant 32 : i32
    %27 = vector.broadcast %c32_i32 : i32 to vector<1x32xi32>
    %28 = arith.cmpi slt, %0, %27 : vector<1x32xi32>
    %29 = arith.andi %26, %28 : vector<1x32xi1>
    %cst_8 = arith.constant 1.000000e+00 : f32
    %cst_9 = arith.constant 0.000000e+00 : f32
    %30 = vector.broadcast %cst_8 : f32 to vector<1x32xf32>
    %31 = vector.broadcast %cst_9 : f32 to vector<1x32xf32>
    %32 = arith.select %29, %30, %31 : vector<1x32xi1>, vector<1x32xf32>
    %c0 = arith.constant 0 : index
    %c0_10 = arith.constant 0 : index
    %c0_11 = arith.constant 0 : index
    %33 = vector.load %arg1[%c0, %c0_10, %c0_11] : memref<1x16x12xf32, #tpu.memory_space<vmem>>, vector<1x16x12xf32>
    %34 = vector.shape_cast %33 : vector<1x16x12xf32> to vector<16x12xf32>
    %c0_12 = arith.constant 0 : index
    %c0_13 = arith.constant 0 : index
    %35 = vector.load %arg4[%c0_12, %c0_13] : memref<12x32xf32, #tpu.memory_space<vmem>>, vector<12x32xf32>
    %cst_14 = arith.constant dense<0.000000e+00> : vector<16x32xf32>
    %36 = tpu.matmul %34, %35, %cst_14 {dimension_numbers = #tpu.dot_dimension_numbers<[1], [0], [0], [1], [0, 0, 1, 1], [], []>} : vector<16x12xf32>, vector<12x32xf32>, vector<16x32xf32> -> vector<16x32xf32>
    %c0_15 = arith.constant 0 : index
    %c0_16 = arith.constant 0 : index
    %c0_17 = arith.constant 0 : index
    %37 = vector.load %arg2[%c0_15, %c0_16, %c0_17] : memref<1x16x32xf32, #tpu.memory_space<vmem>>, vector<1x16x32xf32>
    %38 = vector.shape_cast %37 : vector<1x16x32xf32> to vector<16x32xf32>
    %39 = arith.addf %36, %38 : vector<16x32xf32>
    %c0_18 = arith.constant 0 : index
    %c0_19 = arith.constant 0 : index
    %c0_20 = arith.constant 0 : index
    %40 = vector.load %arg3[%c0_18, %c0_19, %c0_20] : memref<1x8x32xf32, #tpu.memory_space<vmem>>, vector<1x8x32xf32>
    %41 = vector.shape_cast %40 : vector<1x8x32xf32> to vector<8x32xf32>
    %c0_21 = arith.constant 0 : index
    %c0_22 = arith.constant 0 : index
    %c0_23 = arith.constant 0 : index
    %42 = vector.load %arg5[%c0_21, %c0_22, %c0_23] : memref<1x32x32xf32, #tpu.memory_space<vmem>>, vector<1x32x32xf32>
    %43 = vector.shape_cast %42 : vector<1x32x32xf32> to vector<32x32xf32>
    %c0_24 = arith.constant 0 : index
    %c0_25 = arith.constant 0 : index
    %c0_26 = arith.constant 0 : index
    %44 = vector.load %arg6[%c0_24, %c0_25, %c0_26] : memref<1x1x32xf32, #tpu.memory_space<vmem>>, vector<1x1x32xf32>
    %45 = vector.shape_cast %44 : vector<1x1x32xf32> to vector<1x32xf32>
    %c0_27 = arith.constant 0 : index
    %c0_28 = arith.constant 0 : index
    %c0_29 = arith.constant 0 : index
    %46 = vector.load %arg7[%c0_27, %c0_28, %c0_29] : memref<1x32x32xf32, #tpu.memory_space<vmem>>, vector<1x32x32xf32>
    %47 = vector.shape_cast %46 : vector<1x32x32xf32> to vector<32x32xf32>
    %c0_30 = arith.constant 0 : index
    %c0_31 = arith.constant 0 : index
    %c0_32 = arith.constant 0 : index
    %48 = vector.load %arg8[%c0_30, %c0_31, %c0_32] : memref<1x1x32xf32, #tpu.memory_space<vmem>>, vector<1x1x32xf32>
    %49 = vector.shape_cast %48 : vector<1x1x32xf32> to vector<1x32xf32>
    %c0_33 = arith.constant 0 : index
    %c0_34 = arith.constant 0 : index
    %c0_35 = arith.constant 0 : index
    %50 = vector.load %arg11[%c0_33, %c0_34, %c0_35] : memref<1x32x32xf32, #tpu.memory_space<vmem>>, vector<1x32x32xf32>
    %51 = vector.shape_cast %50 : vector<1x32x32xf32> to vector<32x32xf32>
    %c0_36 = arith.constant 0 : index
    %c0_37 = arith.constant 0 : index
    %c0_38 = arith.constant 0 : index
    %52 = vector.load %arg12[%c0_36, %c0_37, %c0_38] : memref<1x1x32xf32, #tpu.memory_space<vmem>>, vector<1x1x32xf32>
    %53 = vector.shape_cast %52 : vector<1x1x32xf32> to vector<1x32xf32>
    %cst_39 = arith.constant dense<0.000000e+00> : vector<16x32xf32>
    %54 = tpu.matmul %39, %43, %cst_39 {dimension_numbers = #tpu.dot_dimension_numbers<[1], [0], [0], [1], [0, 0, 1, 1], [], []>} : vector<16x32xf32>, vector<32x32xf32>, vector<16x32xf32> -> vector<16x32xf32>
    %55 = vector.broadcast %45 : vector<1x32xf32> to vector<16x32xf32>
    %56 = arith.addf %54, %55 : vector<16x32xf32>
    %cst_40 = arith.constant dense<0.000000e+00> : vector<16x32xf32>
    %57 = tpu.matmul %39, %47, %cst_40 {dimension_numbers = #tpu.dot_dimension_numbers<[1], [0], [0], [1], [0, 0, 1, 1], [], []>} : vector<16x32xf32>, vector<32x32xf32>, vector<16x32xf32> -> vector<16x32xf32>
    %58 = vector.broadcast %49 : vector<1x32xf32> to vector<16x32xf32>
    %59 = arith.addf %57, %58 : vector<16x32xf32>
    %60 = tpu.iota {dimensions = array<i32: 0>} : vector<16x16xi32>
    %61 = tpu.iota {dimensions = array<i32: 1>} : vector<16x16xi32>
    %62 = arith.cmpi sgt, %61, %60 : vector<16x16xi32>
    %cst_41 = arith.constant -1.000000e+30 : f32
    %cst_42 = arith.constant 0.000000e+00 : f32
    %63 = vector.broadcast %cst_41 : f32 to vector<16x16xf32>
    %64 = vector.broadcast %cst_42 : f32 to vector<16x16xf32>
    %65 = arith.select %62, %63, %64 : vector<16x16xi1>, vector<16x16xf32>
    %66 = tpu.iota {dimensions = array<i32: 0>} : vector<64x16xi32>
    %67 = tpu.iota {dimensions = array<i32: 1>} : vector<64x16xi32>
    %cst_43 = arith.constant 0.000000e+00 : f32
    %68 = vector.broadcast %cst_43 : f32 to vector<64x8xf32>
    %69 = vector.broadcast %8 : vector<1x32xf32> to vector<16x32xf32>
    %70 = arith.mulf %56, %69 : vector<16x32xf32>
    %cst_44 = arith.constant dense<0.000000e+00> : vector<16x16xf32>
    %71 = tpu.matmul %70, %59, %cst_44 {dimension_numbers = #tpu.dot_dimension_numbers<[1], [1], [0], [0], [0, 0, 1, 0], [], []>} : vector<16x32xf32>, vector<16x32xf32>, vector<16x16xf32> -> vector<16x16xf32>
    %cst_45 = arith.constant 0.353553385 : f32
    %72 = vector.broadcast %cst_45 : f32 to vector<16x16xf32>
    %73 = arith.mulf %71, %72 : vector<16x16xf32>
    %74 = arith.addf %73, %65 : vector<16x16xf32>
    %cst_46 = arith.constant dense<0xFF800000> : vector<16xf32>
    %75 = vector.multi_reduction <maximumf>, %74, %cst_46 [1] : vector<16x16xf32> to vector<16xf32>
    %76 = vector.shape_cast %75 : vector<16xf32> to vector<16x1xf32>
    %77 = vector.broadcast %76 : vector<16x1xf32> to vector<16x16xf32>
    %78 = arith.subf %74, %77 : vector<16x16xf32>
    %79 = math.exp %78 : vector<16x16xf32>
    %cst_47 = arith.constant dense<0.000000e+00> : vector<16xf32>
    %80 = vector.multi_reduction <add>, %79, %cst_47 [1] : vector<16x16xf32> to vector<16xf32>
    %81 = vector.shape_cast %80 : vector<16xf32> to vector<16x1xf32>
    %82 = tpu.reciprocal %81 {approx = true} : vector<16x1xf32> -> vector<16x1xf32>
    %83 = vector.broadcast %82 : vector<16x1xf32> to vector<16x16xf32>
    %84 = arith.mulf %79, %83 : vector<16x16xf32>
    %c0_48 = arith.constant 0 : index
    %c0_49 = arith.constant 0 : index
    %c0_50 = arith.constant 0 : index
    %c0_51 = arith.constant 0 : index
    %85 = vector.load %arg9[%c0_48, %c0_49, %c0_50, %c0_51] : memref<1x4x32x8xf32, #tpu.memory_space<vmem>>, vector<1x1x32x8xf32>
    %86 = vector.shape_cast %85 : vector<1x1x32x8xf32> to vector<32x8xf32>
    %cst_52 = arith.constant dense<0.000000e+00> : vector<16x8xf32>
    %87 = tpu.matmul %39, %86, %cst_52 {dimension_numbers = #tpu.dot_dimension_numbers<[1], [0], [0], [1], [0, 0, 1, 1], [], []>} : vector<16x32xf32>, vector<32x8xf32>, vector<16x8xf32> -> vector<16x8xf32>
    %c0_53 = arith.constant 0 : index
    %c0_54 = arith.constant 0 : index
    %c0_55 = arith.constant 0 : index
    %c0_56 = arith.constant 0 : index
    %88 = vector.load %arg10[%c0_53, %c0_54, %c0_55, %c0_56] : memref<1x4x1x8xf32, #tpu.memory_space<vmem>>, vector<1x1x1x8xf32>
    %89 = vector.shape_cast %88 : vector<1x1x1x8xf32> to vector<1x8xf32>
    %90 = vector.broadcast %89 : vector<1x8xf32> to vector<16x8xf32>
    %91 = arith.addf %87, %90 : vector<16x8xf32>
    %cst_57 = arith.constant dense<0.000000e+00> : vector<16x8xf32>
    %92 = tpu.matmul %84, %91, %cst_57 {dimension_numbers = #tpu.dot_dimension_numbers<[1], [0], [0], [1], [0, 0, 1, 1], [], []>} : vector<16x16xf32>, vector<16x8xf32>, vector<16x8xf32> -> vector<16x8xf32>
    %c0_i32_58 = arith.constant 0 : i32
    %93 = vector.broadcast %c0_i32_58 : i32 to vector<64x16xi32>
    %94 = arith.addi %67, %93 : vector<64x16xi32>
    %95 = arith.cmpi eq, %66, %94 : vector<64x16xi32>
    %cst_59 = arith.constant 1.000000e+00 : f32
    %cst_60 = arith.constant 0.000000e+00 : f32
    %96 = vector.broadcast %cst_59 : f32 to vector<64x16xf32>
    %97 = vector.broadcast %cst_60 : f32 to vector<64x16xf32>
    %98 = arith.select %95, %96, %97 : vector<64x16xi1>, vector<64x16xf32>
    %cst_61 = arith.constant dense<0.000000e+00> : vector<64x8xf32>
    %99 = tpu.matmul %98, %92, %cst_61 {dimension_numbers = #tpu.dot_dimension_numbers<[1], [0], [0], [1], [0, 0, 1, 1], [], []>} : vector<64x16xf32>, vector<16x8xf32>, vector<64x8xf32> -> vector<64x8xf32>
    %100 = arith.addf %68, %99 : vector<64x8xf32>
    %101 = vector.broadcast %16 : vector<1x32xf32> to vector<16x32xf32>
    %102 = arith.mulf %56, %101 : vector<16x32xf32>
    %cst_62 = arith.constant dense<0.000000e+00> : vector<16x16xf32>
    %103 = tpu.matmul %102, %59, %cst_62 {dimension_numbers = #tpu.dot_dimension_numbers<[1], [1], [0], [0], [0, 0, 1, 0], [], []>} : vector<16x32xf32>, vector<16x32xf32>, vector<16x16xf32> -> vector<16x16xf32>
    %cst_63 = arith.constant 0.353553385 : f32
    %104 = vector.broadcast %cst_63 : f32 to vector<16x16xf32>
    %105 = arith.mulf %103, %104 : vector<16x16xf32>
    %106 = arith.addf %105, %65 : vector<16x16xf32>
    %cst_64 = arith.constant dense<0xFF800000> : vector<16xf32>
    %107 = vector.multi_reduction <maximumf>, %106, %cst_64 [1] : vector<16x16xf32> to vector<16xf32>
    %108 = vector.shape_cast %107 : vector<16xf32> to vector<16x1xf32>
    %109 = vector.broadcast %108 : vector<16x1xf32> to vector<16x16xf32>
    %110 = arith.subf %106, %109 : vector<16x16xf32>
    %111 = math.exp %110 : vector<16x16xf32>
    %cst_65 = arith.constant dense<0.000000e+00> : vector<16xf32>
    %112 = vector.multi_reduction <add>, %111, %cst_65 [1] : vector<16x16xf32> to vector<16xf32>
    %113 = vector.shape_cast %112 : vector<16xf32> to vector<16x1xf32>
    %114 = tpu.reciprocal %113 {approx = true} : vector<16x1xf32> -> vector<16x1xf32>
    %115 = vector.broadcast %114 : vector<16x1xf32> to vector<16x16xf32>
    %116 = arith.mulf %111, %115 : vector<16x16xf32>
    %c0_66 = arith.constant 0 : index
    %c1 = arith.constant 1 : index
    %c0_67 = arith.constant 0 : index
    %c0_68 = arith.constant 0 : index
    %117 = vector.load %arg9[%c0_66, %c1, %c0_67, %c0_68] : memref<1x4x32x8xf32, #tpu.memory_space<vmem>>, vector<1x1x32x8xf32>
    %118 = vector.shape_cast %117 : vector<1x1x32x8xf32> to vector<32x8xf32>
    %cst_69 = arith.constant dense<0.000000e+00> : vector<16x8xf32>
    %119 = tpu.matmul %39, %118, %cst_69 {dimension_numbers = #tpu.dot_dimension_numbers<[1], [0], [0], [1], [0, 0, 1, 1], [], []>} : vector<16x32xf32>, vector<32x8xf32>, vector<16x8xf32> -> vector<16x8xf32>
    %c0_70 = arith.constant 0 : index
    %c1_71 = arith.constant 1 : index
    %c0_72 = arith.constant 0 : index
    %c0_73 = arith.constant 0 : index
    %120 = vector.load %arg10[%c0_70, %c1_71, %c0_72, %c0_73] : memref<1x4x1x8xf32, #tpu.memory_space<vmem>>, vector<1x1x1x8xf32>
    %121 = vector.shape_cast %120 : vector<1x1x1x8xf32> to vector<1x8xf32>
    %122 = vector.broadcast %121 : vector<1x8xf32> to vector<16x8xf32>
    %123 = arith.addf %119, %122 : vector<16x8xf32>
    %cst_74 = arith.constant dense<0.000000e+00> : vector<16x8xf32>
    %124 = tpu.matmul %116, %123, %cst_74 {dimension_numbers = #tpu.dot_dimension_numbers<[1], [0], [0], [1], [0, 0, 1, 1], [], []>} : vector<16x16xf32>, vector<16x8xf32>, vector<16x8xf32> -> vector<16x8xf32>
    %c16_i32_75 = arith.constant 16 : i32
    %125 = vector.broadcast %c16_i32_75 : i32 to vector<64x16xi32>
    %126 = arith.addi %67, %125 : vector<64x16xi32>
    %127 = arith.cmpi eq, %66, %126 : vector<64x16xi32>
    %cst_76 = arith.constant 1.000000e+00 : f32
    %cst_77 = arith.constant 0.000000e+00 : f32
    %128 = vector.broadcast %cst_76 : f32 to vector<64x16xf32>
    %129 = vector.broadcast %cst_77 : f32 to vector<64x16xf32>
    %130 = arith.select %127, %128, %129 : vector<64x16xi1>, vector<64x16xf32>
    %cst_78 = arith.constant dense<0.000000e+00> : vector<64x8xf32>
    %131 = tpu.matmul %130, %124, %cst_78 {dimension_numbers = #tpu.dot_dimension_numbers<[1], [0], [0], [1], [0, 0, 1, 1], [], []>} : vector<64x16xf32>, vector<16x8xf32>, vector<64x8xf32> -> vector<64x8xf32>
    %132 = arith.addf %100, %131 : vector<64x8xf32>
    %133 = vector.broadcast %24 : vector<1x32xf32> to vector<16x32xf32>
    %134 = arith.mulf %56, %133 : vector<16x32xf32>
    %cst_79 = arith.constant dense<0.000000e+00> : vector<16x16xf32>
    %135 = tpu.matmul %134, %59, %cst_79 {dimension_numbers = #tpu.dot_dimension_numbers<[1], [1], [0], [0], [0, 0, 1, 0], [], []>} : vector<16x32xf32>, vector<16x32xf32>, vector<16x16xf32> -> vector<16x16xf32>
    %cst_80 = arith.constant 0.353553385 : f32
    %136 = vector.broadcast %cst_80 : f32 to vector<16x16xf32>
    %137 = arith.mulf %135, %136 : vector<16x16xf32>
    %138 = arith.addf %137, %65 : vector<16x16xf32>
    %cst_81 = arith.constant dense<0xFF800000> : vector<16xf32>
    %139 = vector.multi_reduction <maximumf>, %138, %cst_81 [1] : vector<16x16xf32> to vector<16xf32>
    %140 = vector.shape_cast %139 : vector<16xf32> to vector<16x1xf32>
    %141 = vector.broadcast %140 : vector<16x1xf32> to vector<16x16xf32>
    %142 = arith.subf %138, %141 : vector<16x16xf32>
    %143 = math.exp %142 : vector<16x16xf32>
    %cst_82 = arith.constant dense<0.000000e+00> : vector<16xf32>
    %144 = vector.multi_reduction <add>, %143, %cst_82 [1] : vector<16x16xf32> to vector<16xf32>
    %145 = vector.shape_cast %144 : vector<16xf32> to vector<16x1xf32>
    %146 = tpu.reciprocal %145 {approx = true} : vector<16x1xf32> -> vector<16x1xf32>
    %147 = vector.broadcast %146 : vector<16x1xf32> to vector<16x16xf32>
    %148 = arith.mulf %143, %147 : vector<16x16xf32>
    %c0_83 = arith.constant 0 : index
    %c2 = arith.constant 2 : index
    %c0_84 = arith.constant 0 : index
    %c0_85 = arith.constant 0 : index
    %149 = vector.load %arg9[%c0_83, %c2, %c0_84, %c0_85] : memref<1x4x32x8xf32, #tpu.memory_space<vmem>>, vector<1x1x32x8xf32>
    %150 = vector.shape_cast %149 : vector<1x1x32x8xf32> to vector<32x8xf32>
    %cst_86 = arith.constant dense<0.000000e+00> : vector<16x8xf32>
    %151 = tpu.matmul %39, %150, %cst_86 {dimension_numbers = #tpu.dot_dimension_numbers<[1], [0], [0], [1], [0, 0, 1, 1], [], []>} : vector<16x32xf32>, vector<32x8xf32>, vector<16x8xf32> -> vector<16x8xf32>
    %c0_87 = arith.constant 0 : index
    %c2_88 = arith.constant 2 : index
    %c0_89 = arith.constant 0 : index
    %c0_90 = arith.constant 0 : index
    %152 = vector.load %arg10[%c0_87, %c2_88, %c0_89, %c0_90] : memref<1x4x1x8xf32, #tpu.memory_space<vmem>>, vector<1x1x1x8xf32>
    %153 = vector.shape_cast %152 : vector<1x1x1x8xf32> to vector<1x8xf32>
    %154 = vector.broadcast %153 : vector<1x8xf32> to vector<16x8xf32>
    %155 = arith.addf %151, %154 : vector<16x8xf32>
    %cst_91 = arith.constant dense<0.000000e+00> : vector<16x8xf32>
    %156 = tpu.matmul %148, %155, %cst_91 {dimension_numbers = #tpu.dot_dimension_numbers<[1], [0], [0], [1], [0, 0, 1, 1], [], []>} : vector<16x16xf32>, vector<16x8xf32>, vector<16x8xf32> -> vector<16x8xf32>
    %c32_i32_92 = arith.constant 32 : i32
    %157 = vector.broadcast %c32_i32_92 : i32 to vector<64x16xi32>
    %158 = arith.addi %67, %157 : vector<64x16xi32>
    %159 = arith.cmpi eq, %66, %158 : vector<64x16xi32>
    %cst_93 = arith.constant 1.000000e+00 : f32
    %cst_94 = arith.constant 0.000000e+00 : f32
    %160 = vector.broadcast %cst_93 : f32 to vector<64x16xf32>
    %161 = vector.broadcast %cst_94 : f32 to vector<64x16xf32>
    %162 = arith.select %159, %160, %161 : vector<64x16xi1>, vector<64x16xf32>
    %cst_95 = arith.constant dense<0.000000e+00> : vector<64x8xf32>
    %163 = tpu.matmul %162, %156, %cst_95 {dimension_numbers = #tpu.dot_dimension_numbers<[1], [0], [0], [1], [0, 0, 1, 1], [], []>} : vector<64x16xf32>, vector<16x8xf32>, vector<64x8xf32> -> vector<64x8xf32>
    %164 = arith.addf %132, %163 : vector<64x8xf32>
    %165 = vector.broadcast %32 : vector<1x32xf32> to vector<16x32xf32>
    %166 = arith.mulf %56, %165 : vector<16x32xf32>
    %cst_96 = arith.constant dense<0.000000e+00> : vector<16x16xf32>
    %167 = tpu.matmul %166, %59, %cst_96 {dimension_numbers = #tpu.dot_dimension_numbers<[1], [1], [0], [0], [0, 0, 1, 0], [], []>} : vector<16x32xf32>, vector<16x32xf32>, vector<16x16xf32> -> vector<16x16xf32>
    %cst_97 = arith.constant 0.353553385 : f32
    %168 = vector.broadcast %cst_97 : f32 to vector<16x16xf32>
    %169 = arith.mulf %167, %168 : vector<16x16xf32>
    %170 = arith.addf %169, %65 : vector<16x16xf32>
    %cst_98 = arith.constant dense<0xFF800000> : vector<16xf32>
    %171 = vector.multi_reduction <maximumf>, %170, %cst_98 [1] : vector<16x16xf32> to vector<16xf32>
    %172 = vector.shape_cast %171 : vector<16xf32> to vector<16x1xf32>
    %173 = vector.broadcast %172 : vector<16x1xf32> to vector<16x16xf32>
    %174 = arith.subf %170, %173 : vector<16x16xf32>
    %175 = math.exp %174 : vector<16x16xf32>
    %cst_99 = arith.constant dense<0.000000e+00> : vector<16xf32>
    %176 = vector.multi_reduction <add>, %175, %cst_99 [1] : vector<16x16xf32> to vector<16xf32>
    %177 = vector.shape_cast %176 : vector<16xf32> to vector<16x1xf32>
    %178 = tpu.reciprocal %177 {approx = true} : vector<16x1xf32> -> vector<16x1xf32>
    %179 = vector.broadcast %178 : vector<16x1xf32> to vector<16x16xf32>
    %180 = arith.mulf %175, %179 : vector<16x16xf32>
    %c0_100 = arith.constant 0 : index
    %c3 = arith.constant 3 : index
    %c0_101 = arith.constant 0 : index
    %c0_102 = arith.constant 0 : index
    %181 = vector.load %arg9[%c0_100, %c3, %c0_101, %c0_102] : memref<1x4x32x8xf32, #tpu.memory_space<vmem>>, vector<1x1x32x8xf32>
    %182 = vector.shape_cast %181 : vector<1x1x32x8xf32> to vector<32x8xf32>
    %cst_103 = arith.constant dense<0.000000e+00> : vector<16x8xf32>
    %183 = tpu.matmul %39, %182, %cst_103 {dimension_numbers = #tpu.dot_dimension_numbers<[1], [0], [0], [1], [0, 0, 1, 1], [], []>} : vector<16x32xf32>, vector<32x8xf32>, vector<16x8xf32> -> vector<16x8xf32>
    %c0_104 = arith.constant 0 : index
    %c3_105 = arith.constant 3 : index
    %c0_106 = arith.constant 0 : index
    %c0_107 = arith.constant 0 : index
    %184 = vector.load %arg10[%c0_104, %c3_105, %c0_106, %c0_107] : memref<1x4x1x8xf32, #tpu.memory_space<vmem>>, vector<1x1x1x8xf32>
    %185 = vector.shape_cast %184 : vector<1x1x1x8xf32> to vector<1x8xf32>
    %186 = vector.broadcast %185 : vector<1x8xf32> to vector<16x8xf32>
    %187 = arith.addf %183, %186 : vector<16x8xf32>
    %cst_108 = arith.constant dense<0.000000e+00> : vector<16x8xf32>
    %188 = tpu.matmul %180, %187, %cst_108 {dimension_numbers = #tpu.dot_dimension_numbers<[1], [0], [0], [1], [0, 0, 1, 1], [], []>} : vector<16x16xf32>, vector<16x8xf32>, vector<16x8xf32> -> vector<16x8xf32>
    %c48_i32 = arith.constant 48 : i32
    %189 = vector.broadcast %c48_i32 : i32 to vector<64x16xi32>
    %190 = arith.addi %67, %189 : vector<64x16xi32>
    %191 = arith.cmpi eq, %66, %190 : vector<64x16xi32>
    %cst_109 = arith.constant 1.000000e+00 : f32
    %cst_110 = arith.constant 0.000000e+00 : f32
    %192 = vector.broadcast %cst_109 : f32 to vector<64x16xf32>
    %193 = vector.broadcast %cst_110 : f32 to vector<64x16xf32>
    %194 = arith.select %191, %192, %193 : vector<64x16xi1>, vector<64x16xf32>
    %cst_111 = arith.constant dense<0.000000e+00> : vector<64x8xf32>
    %195 = tpu.matmul %194, %188, %cst_111 {dimension_numbers = #tpu.dot_dimension_numbers<[1], [0], [0], [1], [0, 0, 1, 1], [], []>} : vector<64x16xf32>, vector<16x8xf32>, vector<64x8xf32> -> vector<64x8xf32>
    %196 = arith.addf %164, %195 : vector<64x8xf32>
    %197 = tpu.iota {dimensions = array<i32: 0>} : vector<16x64xi32>
    %198 = tpu.iota {dimensions = array<i32: 1>} : vector<16x64xi32>
    %199 = tpu.iota {dimensions = array<i32: 0>} : vector<8x32xi32>
    %200 = tpu.iota {dimensions = array<i32: 1>} : vector<8x32xi32>
    %cst_112 = arith.constant 0.000000e+00 : f32
    %201 = vector.broadcast %cst_112 : f32 to vector<16x32xf32>
    %c4_i32 = arith.constant 4 : i32
    %202 = vector.broadcast %c4_i32 : i32 to vector<16x64xi32>
    %203 = arith.muli %197, %202 : vector<16x64xi32>
    %c0_i32_113 = arith.constant 0 : i32
    %204 = vector.broadcast %c0_i32_113 : i32 to vector<16x64xi32>
    %205 = arith.addi %203, %204 : vector<16x64xi32>
    %206 = arith.cmpi eq, %198, %205 : vector<16x64xi32>
    %cst_114 = arith.constant 1.000000e+00 : f32
    %cst_115 = arith.constant 0.000000e+00 : f32
    %207 = vector.broadcast %cst_114 : f32 to vector<16x64xf32>
    %208 = vector.broadcast %cst_115 : f32 to vector<16x64xf32>
    %209 = arith.select %206, %207, %208 : vector<16x64xi1>, vector<16x64xf32>
    %c0_i32_116 = arith.constant 0 : i32
    %210 = vector.broadcast %c0_i32_116 : i32 to vector<8x32xi32>
    %211 = arith.addi %210, %199 : vector<8x32xi32>
    %212 = arith.cmpi eq, %200, %211 : vector<8x32xi32>
    %cst_117 = arith.constant 1.000000e+00 : f32
    %cst_118 = arith.constant 0.000000e+00 : f32
    %213 = vector.broadcast %cst_117 : f32 to vector<8x32xf32>
    %214 = vector.broadcast %cst_118 : f32 to vector<8x32xf32>
    %215 = arith.select %212, %213, %214 : vector<8x32xi1>, vector<8x32xf32>
    %cst_119 = arith.constant dense<0.000000e+00> : vector<16x8xf32>
    %216 = tpu.matmul %209, %196, %cst_119 {dimension_numbers = #tpu.dot_dimension_numbers<[1], [0], [0], [1], [0, 0, 1, 1], [], []>} : vector<16x64xf32>, vector<64x8xf32>, vector<16x8xf32> -> vector<16x8xf32>
    %cst_120 = arith.constant dense<0.000000e+00> : vector<16x32xf32>
    %217 = tpu.matmul %216, %215, %cst_120 {dimension_numbers = #tpu.dot_dimension_numbers<[1], [0], [0], [1], [0, 0, 1, 1], [], []>} : vector<16x8xf32>, vector<8x32xf32>, vector<16x32xf32> -> vector<16x32xf32>
    %218 = arith.addf %201, %217 : vector<16x32xf32>
    %c4_i32_121 = arith.constant 4 : i32
    %219 = vector.broadcast %c4_i32_121 : i32 to vector<16x64xi32>
    %220 = arith.muli %197, %219 : vector<16x64xi32>
    %c1_i32 = arith.constant 1 : i32
    %221 = vector.broadcast %c1_i32 : i32 to vector<16x64xi32>
    %222 = arith.addi %220, %221 : vector<16x64xi32>
    %223 = arith.cmpi eq, %198, %222 : vector<16x64xi32>
    %cst_122 = arith.constant 1.000000e+00 : f32
    %cst_123 = arith.constant 0.000000e+00 : f32
    %224 = vector.broadcast %cst_122 : f32 to vector<16x64xf32>
    %225 = vector.broadcast %cst_123 : f32 to vector<16x64xf32>
    %226 = arith.select %223, %224, %225 : vector<16x64xi1>, vector<16x64xf32>
    %c8_i32_124 = arith.constant 8 : i32
    %227 = vector.broadcast %c8_i32_124 : i32 to vector<8x32xi32>
    %228 = arith.addi %227, %199 : vector<8x32xi32>
    %229 = arith.cmpi eq, %200, %228 : vector<8x32xi32>
    %cst_125 = arith.constant 1.000000e+00 : f32
    %cst_126 = arith.constant 0.000000e+00 : f32
    %230 = vector.broadcast %cst_125 : f32 to vector<8x32xf32>
    %231 = vector.broadcast %cst_126 : f32 to vector<8x32xf32>
    %232 = arith.select %229, %230, %231 : vector<8x32xi1>, vector<8x32xf32>
    %cst_127 = arith.constant dense<0.000000e+00> : vector<16x8xf32>
    %233 = tpu.matmul %226, %196, %cst_127 {dimension_numbers = #tpu.dot_dimension_numbers<[1], [0], [0], [1], [0, 0, 1, 1], [], []>} : vector<16x64xf32>, vector<64x8xf32>, vector<16x8xf32> -> vector<16x8xf32>
    %cst_128 = arith.constant dense<0.000000e+00> : vector<16x32xf32>
    %234 = tpu.matmul %233, %232, %cst_128 {dimension_numbers = #tpu.dot_dimension_numbers<[1], [0], [0], [1], [0, 0, 1, 1], [], []>} : vector<16x8xf32>, vector<8x32xf32>, vector<16x32xf32> -> vector<16x32xf32>
    %235 = arith.addf %218, %234 : vector<16x32xf32>
    %c4_i32_129 = arith.constant 4 : i32
    %236 = vector.broadcast %c4_i32_129 : i32 to vector<16x64xi32>
    %237 = arith.muli %197, %236 : vector<16x64xi32>
    %c2_i32 = arith.constant 2 : i32
    %238 = vector.broadcast %c2_i32 : i32 to vector<16x64xi32>
    %239 = arith.addi %237, %238 : vector<16x64xi32>
    %240 = arith.cmpi eq, %198, %239 : vector<16x64xi32>
    %cst_130 = arith.constant 1.000000e+00 : f32
    %cst_131 = arith.constant 0.000000e+00 : f32
    %241 = vector.broadcast %cst_130 : f32 to vector<16x64xf32>
    %242 = vector.broadcast %cst_131 : f32 to vector<16x64xf32>
    %243 = arith.select %240, %241, %242 : vector<16x64xi1>, vector<16x64xf32>
    %c16_i32_132 = arith.constant 16 : i32
    %244 = vector.broadcast %c16_i32_132 : i32 to vector<8x32xi32>
    %245 = arith.addi %244, %199 : vector<8x32xi32>
    %246 = arith.cmpi eq, %200, %245 : vector<8x32xi32>
    %cst_133 = arith.constant 1.000000e+00 : f32
    %cst_134 = arith.constant 0.000000e+00 : f32
    %247 = vector.broadcast %cst_133 : f32 to vector<8x32xf32>
    %248 = vector.broadcast %cst_134 : f32 to vector<8x32xf32>
    %249 = arith.select %246, %247, %248 : vector<8x32xi1>, vector<8x32xf32>
    %cst_135 = arith.constant dense<0.000000e+00> : vector<16x8xf32>
    %250 = tpu.matmul %243, %196, %cst_135 {dimension_numbers = #tpu.dot_dimension_numbers<[1], [0], [0], [1], [0, 0, 1, 1], [], []>} : vector<16x64xf32>, vector<64x8xf32>, vector<16x8xf32> -> vector<16x8xf32>
    %cst_136 = arith.constant dense<0.000000e+00> : vector<16x32xf32>
    %251 = tpu.matmul %250, %249, %cst_136 {dimension_numbers = #tpu.dot_dimension_numbers<[1], [0], [0], [1], [0, 0, 1, 1], [], []>} : vector<16x8xf32>, vector<8x32xf32>, vector<16x32xf32> -> vector<16x32xf32>
    %252 = arith.addf %235, %251 : vector<16x32xf32>
    %c4_i32_137 = arith.constant 4 : i32
    %253 = vector.broadcast %c4_i32_137 : i32 to vector<16x64xi32>
    %254 = arith.muli %197, %253 : vector<16x64xi32>
    %c3_i32 = arith.constant 3 : i32
    %255 = vector.broadcast %c3_i32 : i32 to vector<16x64xi32>
    %256 = arith.addi %254, %255 : vector<16x64xi32>
    %257 = arith.cmpi eq, %198, %256 : vector<16x64xi32>
    %cst_138 = arith.constant 1.000000e+00 : f32
    %cst_139 = arith.constant 0.000000e+00 : f32
    %258 = vector.broadcast %cst_138 : f32 to vector<16x64xf32>
    %259 = vector.broadcast %cst_139 : f32 to vector<16x64xf32>
    %260 = arith.select %257, %258, %259 : vector<16x64xi1>, vector<16x64xf32>
    %c24_i32_140 = arith.constant 24 : i32
    %261 = vector.broadcast %c24_i32_140 : i32 to vector<8x32xi32>
    %262 = arith.addi %261, %199 : vector<8x32xi32>
    %263 = arith.cmpi eq, %200, %262 : vector<8x32xi32>
    %cst_141 = arith.constant 1.000000e+00 : f32
    %cst_142 = arith.constant 0.000000e+00 : f32
    %264 = vector.broadcast %cst_141 : f32 to vector<8x32xf32>
    %265 = vector.broadcast %cst_142 : f32 to vector<8x32xf32>
    %266 = arith.select %263, %264, %265 : vector<8x32xi1>, vector<8x32xf32>
    %cst_143 = arith.constant dense<0.000000e+00> : vector<16x8xf32>
    %267 = tpu.matmul %260, %196, %cst_143 {dimension_numbers = #tpu.dot_dimension_numbers<[1], [0], [0], [1], [0, 0, 1, 1], [], []>} : vector<16x64xf32>, vector<64x8xf32>, vector<16x8xf32> -> vector<16x8xf32>
    %cst_144 = arith.constant dense<0.000000e+00> : vector<16x32xf32>
    %268 = tpu.matmul %267, %266, %cst_144 {dimension_numbers = #tpu.dot_dimension_numbers<[1], [0], [0], [1], [0, 0, 1, 1], [], []>} : vector<16x8xf32>, vector<8x32xf32>, vector<16x32xf32> -> vector<16x32xf32>
    %269 = arith.addf %252, %268 : vector<16x32xf32>
    %cst_145 = arith.constant dense<0.000000e+00> : vector<16x32xf32>
    %270 = tpu.matmul %269, %51, %cst_145 {dimension_numbers = #tpu.dot_dimension_numbers<[1], [0], [0], [1], [0, 0, 1, 1], [], []>} : vector<16x32xf32>, vector<32x32xf32>, vector<16x32xf32> -> vector<16x32xf32>
    %271 = vector.broadcast %53 : vector<1x32xf32> to vector<16x32xf32>
    %272 = arith.addf %270, %271 : vector<16x32xf32>
    %273 = arith.addf %39, %272 : vector<16x32xf32>
    %c0_146 = arith.constant 0 : index
    %c0_147 = arith.constant 0 : index
    %c0_148 = arith.constant 0 : index
    %274 = vector.load %arg21[%c0_146, %c0_147, %c0_148] : memref<1x1x32xf32, #tpu.memory_space<vmem>>, vector<1x1x32xf32>
    %275 = vector.shape_cast %274 : vector<1x1x32xf32> to vector<1x32xf32>
    %c0_149 = arith.constant 0 : index
    %c0_150 = arith.constant 0 : index
    %c0_151 = arith.constant 0 : index
    %276 = vector.load %arg22[%c0_149, %c0_150, %c0_151] : memref<1x1x32xf32, #tpu.memory_space<vmem>>, vector<1x1x32xf32>
    %277 = vector.shape_cast %276 : vector<1x1x32xf32> to vector<1x32xf32>
    %cst_152 = arith.constant dense<0.000000e+00> : vector<16xf32>
    %278 = vector.multi_reduction <add>, %273, %cst_152 [1] : vector<16x32xf32> to vector<16xf32>
    %279 = vector.shape_cast %278 : vector<16xf32> to vector<16x1xf32>
    %cst_153 = arith.constant 3.200000e+01 : f32
    %280 = vector.broadcast %cst_153 : f32 to vector<16x1xf32>
    %281 = arith.divf %279, %280 : vector<16x1xf32>
    %282 = vector.broadcast %281 : vector<16x1xf32> to vector<16x32xf32>
    %283 = arith.subf %273, %282 : vector<16x32xf32>
    %284 = arith.mulf %283, %283 : vector<16x32xf32>
    %cst_154 = arith.constant dense<0.000000e+00> : vector<16xf32>
    %285 = vector.multi_reduction <add>, %284, %cst_154 [1] : vector<16x32xf32> to vector<16xf32>
    %286 = vector.shape_cast %285 : vector<16xf32> to vector<16x1xf32>
    %cst_155 = arith.constant 3.200000e+01 : f32
    %287 = vector.broadcast %cst_155 : f32 to vector<16x1xf32>
    %288 = arith.divf %286, %287 : vector<16x1xf32>
    %cst_156 = arith.constant 9.99999974E-6 : f32
    %289 = vector.broadcast %cst_156 : f32 to vector<16x1xf32>
    %290 = arith.addf %288, %289 : vector<16x1xf32>
    %291 = math.rsqrt %290 : vector<16x1xf32>
    %292 = vector.broadcast %291 : vector<16x1xf32> to vector<16x32xf32>
    %293 = arith.mulf %283, %292 : vector<16x32xf32>
    %294 = vector.broadcast %275 : vector<1x32xf32> to vector<16x32xf32>
    %295 = arith.mulf %293, %294 : vector<16x32xf32>
    %296 = vector.broadcast %277 : vector<1x32xf32> to vector<16x32xf32>
    %297 = arith.addf %295, %296 : vector<16x32xf32>
    %c0_157 = arith.constant 0 : index
    %c0_158 = arith.constant 0 : index
    %c0_159 = arith.constant 0 : index
    %298 = vector.load %arg13[%c0_157, %c0_158, %c0_159] : memref<1x32x32xf32, #tpu.memory_space<vmem>>, vector<1x32x32xf32>
    %299 = vector.shape_cast %298 : vector<1x32x32xf32> to vector<32x32xf32>
    %c0_160 = arith.constant 0 : index
    %c0_161 = arith.constant 0 : index
    %c0_162 = arith.constant 0 : index
    %300 = vector.load %arg14[%c0_160, %c0_161, %c0_162] : memref<1x1x32xf32, #tpu.memory_space<vmem>>, vector<1x1x32xf32>
    %301 = vector.shape_cast %300 : vector<1x1x32xf32> to vector<1x32xf32>
    %c0_163 = arith.constant 0 : index
    %c0_164 = arith.constant 0 : index
    %c0_165 = arith.constant 0 : index
    %302 = vector.load %arg15[%c0_163, %c0_164, %c0_165] : memref<1x32x32xf32, #tpu.memory_space<vmem>>, vector<1x32x32xf32>
    %303 = vector.shape_cast %302 : vector<1x32x32xf32> to vector<32x32xf32>
    %c0_166 = arith.constant 0 : index
    %c0_167 = arith.constant 0 : index
    %c0_168 = arith.constant 0 : index
    %304 = vector.load %arg16[%c0_166, %c0_167, %c0_168] : memref<1x1x32xf32, #tpu.memory_space<vmem>>, vector<1x1x32xf32>
    %305 = vector.shape_cast %304 : vector<1x1x32xf32> to vector<1x32xf32>
    %c0_169 = arith.constant 0 : index
    %c0_170 = arith.constant 0 : index
    %c0_171 = arith.constant 0 : index
    %306 = vector.load %arg17[%c0_169, %c0_170, %c0_171] : memref<1x32x32xf32, #tpu.memory_space<vmem>>, vector<1x32x32xf32>
    %307 = vector.shape_cast %306 : vector<1x32x32xf32> to vector<32x32xf32>
    %c0_172 = arith.constant 0 : index
    %c0_173 = arith.constant 0 : index
    %c0_174 = arith.constant 0 : index
    %308 = vector.load %arg18[%c0_172, %c0_173, %c0_174] : memref<1x1x32xf32, #tpu.memory_space<vmem>>, vector<1x1x32xf32>
    %309 = vector.shape_cast %308 : vector<1x1x32xf32> to vector<1x32xf32>
    %c0_175 = arith.constant 0 : index
    %c0_176 = arith.constant 0 : index
    %c0_177 = arith.constant 0 : index
    %310 = vector.load %arg19[%c0_175, %c0_176, %c0_177] : memref<1x32x32xf32, #tpu.memory_space<vmem>>, vector<1x32x32xf32>
    %311 = vector.shape_cast %310 : vector<1x32x32xf32> to vector<32x32xf32>
    %c0_178 = arith.constant 0 : index
    %c0_179 = arith.constant 0 : index
    %c0_180 = arith.constant 0 : index
    %312 = vector.load %arg20[%c0_178, %c0_179, %c0_180] : memref<1x1x32xf32, #tpu.memory_space<vmem>>, vector<1x1x32xf32>
    %313 = vector.shape_cast %312 : vector<1x1x32xf32> to vector<1x32xf32>
    %cst_181 = arith.constant dense<0.000000e+00> : vector<16x32xf32>
    %314 = tpu.matmul %297, %299, %cst_181 {dimension_numbers = #tpu.dot_dimension_numbers<[1], [0], [0], [1], [0, 0, 1, 1], [], []>} : vector<16x32xf32>, vector<32x32xf32>, vector<16x32xf32> -> vector<16x32xf32>
    %315 = vector.broadcast %301 : vector<1x32xf32> to vector<16x32xf32>
    %316 = arith.addf %314, %315 : vector<16x32xf32>
    %cst_182 = arith.constant dense<0.000000e+00> : vector<8x32xf32>
    %317 = tpu.matmul %41, %303, %cst_182 {dimension_numbers = #tpu.dot_dimension_numbers<[1], [0], [0], [1], [0, 0, 1, 1], [], []>} : vector<8x32xf32>, vector<32x32xf32>, vector<8x32xf32> -> vector<8x32xf32>
    %318 = vector.broadcast %305 : vector<1x32xf32> to vector<8x32xf32>
    %319 = arith.addf %317, %318 : vector<8x32xf32>
    %cst_183 = arith.constant dense<0.000000e+00> : vector<8x32xf32>
    %320 = tpu.matmul %41, %307, %cst_183 {dimension_numbers = #tpu.dot_dimension_numbers<[1], [0], [0], [1], [0, 0, 1, 1], [], []>} : vector<8x32xf32>, vector<32x32xf32>, vector<8x32xf32> -> vector<8x32xf32>
    %321 = vector.broadcast %309 : vector<1x32xf32> to vector<8x32xf32>
    %322 = arith.addf %320, %321 : vector<8x32xf32>
    %cst_184 = arith.constant 0.000000e+00 : f32
    %323 = vector.broadcast %cst_184 : f32 to vector<16x32xf32>
    %324 = vector.broadcast %8 : vector<1x32xf32> to vector<16x32xf32>
    %325 = arith.mulf %316, %324 : vector<16x32xf32>
    %cst_185 = arith.constant dense<0.000000e+00> : vector<16x8xf32>
    %326 = tpu.matmul %325, %319, %cst_185 {dimension_numbers = #tpu.dot_dimension_numbers<[1], [1], [0], [0], [0, 0, 1, 0], [], []>} : vector<16x32xf32>, vector<8x32xf32>, vector<16x8xf32> -> vector<16x8xf32>
    %cst_186 = arith.constant 0.353553385 : f32
    %327 = vector.broadcast %cst_186 : f32 to vector<16x8xf32>
    %328 = arith.mulf %326, %327 : vector<16x8xf32>
    %cst_187 = arith.constant dense<0xFF800000> : vector<16xf32>
    %329 = vector.multi_reduction <maximumf>, %328, %cst_187 [1] : vector<16x8xf32> to vector<16xf32>
    %330 = vector.shape_cast %329 : vector<16xf32> to vector<16x1xf32>
    %331 = vector.broadcast %330 : vector<16x1xf32> to vector<16x8xf32>
    %332 = arith.subf %328, %331 : vector<16x8xf32>
    %333 = math.exp %332 : vector<16x8xf32>
    %cst_188 = arith.constant dense<0.000000e+00> : vector<16xf32>
    %334 = vector.multi_reduction <add>, %333, %cst_188 [1] : vector<16x8xf32> to vector<16xf32>
    %335 = vector.shape_cast %334 : vector<16xf32> to vector<16x1xf32>
    %336 = tpu.reciprocal %335 {approx = true} : vector<16x1xf32> -> vector<16x1xf32>
    %337 = vector.broadcast %336 : vector<16x1xf32> to vector<16x8xf32>
    %338 = arith.mulf %333, %337 : vector<16x8xf32>
    %339 = vector.broadcast %8 : vector<1x32xf32> to vector<8x32xf32>
    %340 = arith.mulf %322, %339 : vector<8x32xf32>
    %cst_189 = arith.constant dense<0.000000e+00> : vector<16x32xf32>
    %341 = tpu.matmul %338, %340, %cst_189 {dimension_numbers = #tpu.dot_dimension_numbers<[1], [0], [0], [1], [0, 0, 1, 1], [], []>} : vector<16x8xf32>, vector<8x32xf32>, vector<16x32xf32> -> vector<16x32xf32>
    %342 = arith.addf %323, %341 : vector<16x32xf32>
    %343 = vector.broadcast %16 : vector<1x32xf32> to vector<16x32xf32>
    %344 = arith.mulf %316, %343 : vector<16x32xf32>
    %cst_190 = arith.constant dense<0.000000e+00> : vector<16x8xf32>
    %345 = tpu.matmul %344, %319, %cst_190 {dimension_numbers = #tpu.dot_dimension_numbers<[1], [1], [0], [0], [0, 0, 1, 0], [], []>} : vector<16x32xf32>, vector<8x32xf32>, vector<16x8xf32> -> vector<16x8xf32>
    %cst_191 = arith.constant 0.353553385 : f32
    %346 = vector.broadcast %cst_191 : f32 to vector<16x8xf32>
    %347 = arith.mulf %345, %346 : vector<16x8xf32>
    %cst_192 = arith.constant dense<0xFF800000> : vector<16xf32>
    %348 = vector.multi_reduction <maximumf>, %347, %cst_192 [1] : vector<16x8xf32> to vector<16xf32>
    %349 = vector.shape_cast %348 : vector<16xf32> to vector<16x1xf32>
    %350 = vector.broadcast %349 : vector<16x1xf32> to vector<16x8xf32>
    %351 = arith.subf %347, %350 : vector<16x8xf32>
    %352 = math.exp %351 : vector<16x8xf32>
    %cst_193 = arith.constant dense<0.000000e+00> : vector<16xf32>
    %353 = vector.multi_reduction <add>, %352, %cst_193 [1] : vector<16x8xf32> to vector<16xf32>
    %354 = vector.shape_cast %353 : vector<16xf32> to vector<16x1xf32>
    %355 = tpu.reciprocal %354 {approx = true} : vector<16x1xf32> -> vector<16x1xf32>
    %356 = vector.broadcast %355 : vector<16x1xf32> to vector<16x8xf32>
    %357 = arith.mulf %352, %356 : vector<16x8xf32>
    %358 = vector.broadcast %16 : vector<1x32xf32> to vector<8x32xf32>
    %359 = arith.mulf %322, %358 : vector<8x32xf32>
    %cst_194 = arith.constant dense<0.000000e+00> : vector<16x32xf32>
    %360 = tpu.matmul %357, %359, %cst_194 {dimension_numbers = #tpu.dot_dimension_numbers<[1], [0], [0], [1], [0, 0, 1, 1], [], []>} : vector<16x8xf32>, vector<8x32xf32>, vector<16x32xf32> -> vector<16x32xf32>
    %361 = arith.addf %342, %360 : vector<16x32xf32>
    %362 = vector.broadcast %24 : vector<1x32xf32> to vector<16x32xf32>
    %363 = arith.mulf %316, %362 : vector<16x32xf32>
    %cst_195 = arith.constant dense<0.000000e+00> : vector<16x8xf32>
    %364 = tpu.matmul %363, %319, %cst_195 {dimension_numbers = #tpu.dot_dimension_numbers<[1], [1], [0], [0], [0, 0, 1, 0], [], []>} : vector<16x32xf32>, vector<8x32xf32>, vector<16x8xf32> -> vector<16x8xf32>
    %cst_196 = arith.constant 0.353553385 : f32
    %365 = vector.broadcast %cst_196 : f32 to vector<16x8xf32>
    %366 = arith.mulf %364, %365 : vector<16x8xf32>
    %cst_197 = arith.constant dense<0xFF800000> : vector<16xf32>
    %367 = vector.multi_reduction <maximumf>, %366, %cst_197 [1] : vector<16x8xf32> to vector<16xf32>
    %368 = vector.shape_cast %367 : vector<16xf32> to vector<16x1xf32>
    %369 = vector.broadcast %368 : vector<16x1xf32> to vector<16x8xf32>
    %370 = arith.subf %366, %369 : vector<16x8xf32>
    %371 = math.exp %370 : vector<16x8xf32>
    %cst_198 = arith.constant dense<0.000000e+00> : vector<16xf32>
    %372 = vector.multi_reduction <add>, %371, %cst_198 [1] : vector<16x8xf32> to vector<16xf32>
    %373 = vector.shape_cast %372 : vector<16xf32> to vector<16x1xf32>
    %374 = tpu.reciprocal %373 {approx = true} : vector<16x1xf32> -> vector<16x1xf32>
    %375 = vector.broadcast %374 : vector<16x1xf32> to vector<16x8xf32>
    %376 = arith.mulf %371, %375 : vector<16x8xf32>
    %377 = vector.broadcast %24 : vector<1x32xf32> to vector<8x32xf32>
    %378 = arith.mulf %322, %377 : vector<8x32xf32>
    %cst_199 = arith.constant dense<0.000000e+00> : vector<16x32xf32>
    %379 = tpu.matmul %376, %378, %cst_199 {dimension_numbers = #tpu.dot_dimension_numbers<[1], [0], [0], [1], [0, 0, 1, 1], [], []>} : vector<16x8xf32>, vector<8x32xf32>, vector<16x32xf32> -> vector<16x32xf32>
    %380 = arith.addf %361, %379 : vector<16x32xf32>
    %381 = vector.broadcast %32 : vector<1x32xf32> to vector<16x32xf32>
    %382 = arith.mulf %316, %381 : vector<16x32xf32>
    %cst_200 = arith.constant dense<0.000000e+00> : vector<16x8xf32>
    %383 = tpu.matmul %382, %319, %cst_200 {dimension_numbers = #tpu.dot_dimension_numbers<[1], [1], [0], [0], [0, 0, 1, 0], [], []>} : vector<16x32xf32>, vector<8x32xf32>, vector<16x8xf32> -> vector<16x8xf32>
    %cst_201 = arith.constant 0.353553385 : f32
    %384 = vector.broadcast %cst_201 : f32 to vector<16x8xf32>
    %385 = arith.mulf %383, %384 : vector<16x8xf32>
    %cst_202 = arith.constant dense<0xFF800000> : vector<16xf32>
    %386 = vector.multi_reduction <maximumf>, %385, %cst_202 [1] : vector<16x8xf32> to vector<16xf32>
    %387 = vector.shape_cast %386 : vector<16xf32> to vector<16x1xf32>
    %388 = vector.broadcast %387 : vector<16x1xf32> to vector<16x8xf32>
    %389 = arith.subf %385, %388 : vector<16x8xf32>
    %390 = math.exp %389 : vector<16x8xf32>
    %cst_203 = arith.constant dense<0.000000e+00> : vector<16xf32>
    %391 = vector.multi_reduction <add>, %390, %cst_203 [1] : vector<16x8xf32> to vector<16xf32>
    %392 = vector.shape_cast %391 : vector<16xf32> to vector<16x1xf32>
    %393 = tpu.reciprocal %392 {approx = true} : vector<16x1xf32> -> vector<16x1xf32>
    %394 = vector.broadcast %393 : vector<16x1xf32> to vector<16x8xf32>
    %395 = arith.mulf %390, %394 : vector<16x8xf32>
    %396 = vector.broadcast %32 : vector<1x32xf32> to vector<8x32xf32>
    %397 = arith.mulf %322, %396 : vector<8x32xf32>
    %cst_204 = arith.constant dense<0.000000e+00> : vector<16x32xf32>
    %398 = tpu.matmul %395, %397, %cst_204 {dimension_numbers = #tpu.dot_dimension_numbers<[1], [0], [0], [1], [0, 0, 1, 1], [], []>} : vector<16x8xf32>, vector<8x32xf32>, vector<16x32xf32> -> vector<16x32xf32>
    %399 = arith.addf %380, %398 : vector<16x32xf32>
    %cst_205 = arith.constant dense<0.000000e+00> : vector<16x32xf32>
    %400 = tpu.matmul %399, %311, %cst_205 {dimension_numbers = #tpu.dot_dimension_numbers<[1], [0], [0], [1], [0, 0, 1, 1], [], []>} : vector<16x32xf32>, vector<32x32xf32>, vector<16x32xf32> -> vector<16x32xf32>
    %401 = vector.broadcast %313 : vector<1x32xf32> to vector<16x32xf32>
    %402 = arith.addf %400, %401 : vector<16x32xf32>
    %403 = arith.addf %297, %402 : vector<16x32xf32>
    %c0_206 = arith.constant 0 : index
    %c0_207 = arith.constant 0 : index
    %c0_208 = arith.constant 0 : index
    %404 = vector.load %arg23[%c0_206, %c0_207, %c0_208] : memref<1x1x32xf32, #tpu.memory_space<vmem>>, vector<1x1x32xf32>
    %405 = vector.shape_cast %404 : vector<1x1x32xf32> to vector<1x32xf32>
    %c0_209 = arith.constant 0 : index
    %c0_210 = arith.constant 0 : index
    %c0_211 = arith.constant 0 : index
    %406 = vector.load %arg24[%c0_209, %c0_210, %c0_211] : memref<1x1x32xf32, #tpu.memory_space<vmem>>, vector<1x1x32xf32>
    %407 = vector.shape_cast %406 : vector<1x1x32xf32> to vector<1x32xf32>
    %cst_212 = arith.constant dense<0.000000e+00> : vector<16xf32>
    %408 = vector.multi_reduction <add>, %403, %cst_212 [1] : vector<16x32xf32> to vector<16xf32>
    %409 = vector.shape_cast %408 : vector<16xf32> to vector<16x1xf32>
    %cst_213 = arith.constant 3.200000e+01 : f32
    %410 = vector.broadcast %cst_213 : f32 to vector<16x1xf32>
    %411 = arith.divf %409, %410 : vector<16x1xf32>
    %412 = vector.broadcast %411 : vector<16x1xf32> to vector<16x32xf32>
    %413 = arith.subf %403, %412 : vector<16x32xf32>
    %414 = arith.mulf %413, %413 : vector<16x32xf32>
    %cst_214 = arith.constant dense<0.000000e+00> : vector<16xf32>
    %415 = vector.multi_reduction <add>, %414, %cst_214 [1] : vector<16x32xf32> to vector<16xf32>
    %416 = vector.shape_cast %415 : vector<16xf32> to vector<16x1xf32>
    %cst_215 = arith.constant 3.200000e+01 : f32
    %417 = vector.broadcast %cst_215 : f32 to vector<16x1xf32>
    %418 = arith.divf %416, %417 : vector<16x1xf32>
    %cst_216 = arith.constant 9.99999974E-6 : f32
    %419 = vector.broadcast %cst_216 : f32 to vector<16x1xf32>
    %420 = arith.addf %418, %419 : vector<16x1xf32>
    %421 = math.rsqrt %420 : vector<16x1xf32>
    %422 = vector.broadcast %421 : vector<16x1xf32> to vector<16x32xf32>
    %423 = arith.mulf %413, %422 : vector<16x32xf32>
    %424 = vector.broadcast %405 : vector<1x32xf32> to vector<16x32xf32>
    %425 = arith.mulf %423, %424 : vector<16x32xf32>
    %426 = vector.broadcast %407 : vector<1x32xf32> to vector<16x32xf32>
    %427 = arith.addf %425, %426 : vector<16x32xf32>
    %c0_217 = arith.constant 0 : index
    %c0_218 = arith.constant 0 : index
    %c0_219 = arith.constant 0 : index
    %428 = vector.load %arg27[%c0_217, %c0_218, %c0_219] : memref<1x32x32xf32, #tpu.memory_space<vmem>>, vector<1x32x32xf32>
    %429 = vector.shape_cast %428 : vector<1x32x32xf32> to vector<32x32xf32>
    %cst_220 = arith.constant dense<0.000000e+00> : vector<16x32xf32>
    %430 = tpu.matmul %427, %429, %cst_220 {dimension_numbers = #tpu.dot_dimension_numbers<[1], [0], [0], [1], [0, 0, 1, 1], [], []>} : vector<16x32xf32>, vector<32x32xf32>, vector<16x32xf32> -> vector<16x32xf32>
    %c0_221 = arith.constant 0 : index
    %c0_222 = arith.constant 0 : index
    %c0_223 = arith.constant 0 : index
    %431 = vector.load %arg28[%c0_221, %c0_222, %c0_223] : memref<1x1x32xf32, #tpu.memory_space<vmem>>, vector<1x1x32xf32>
    %432 = vector.shape_cast %431 : vector<1x1x32xf32> to vector<1x32xf32>
    %433 = vector.broadcast %432 : vector<1x32xf32> to vector<16x32xf32>
    %434 = arith.addf %430, %433 : vector<16x32xf32>
    %435 = arith.mulf %434, %434 : vector<16x32xf32>
    %436 = arith.mulf %434, %435 : vector<16x32xf32>
    %cst_224 = arith.constant 4.471500e-02 : f32
    %437 = vector.broadcast %cst_224 : f32 to vector<16x32xf32>
    %438 = arith.mulf %437, %436 : vector<16x32xf32>
    %439 = arith.addf %434, %438 : vector<16x32xf32>
    %cst_225 = arith.constant 0.797884583 : f32
    %440 = vector.broadcast %cst_225 : f32 to vector<16x32xf32>
    %441 = arith.mulf %440, %439 : vector<16x32xf32>
    %442 = math.tanh %441 : vector<16x32xf32>
    %cst_226 = arith.constant 1.000000e+00 : f32
    %443 = vector.broadcast %cst_226 : f32 to vector<16x32xf32>
    %444 = arith.addf %443, %442 : vector<16x32xf32>
    %cst_227 = arith.constant 5.000000e-01 : f32
    %445 = vector.broadcast %cst_227 : f32 to vector<16x32xf32>
    %446 = arith.mulf %445, %444 : vector<16x32xf32>
    %447 = arith.mulf %434, %446 : vector<16x32xf32>
    %c0_228 = arith.constant 0 : index
    %c0_229 = arith.constant 0 : index
    %c0_230 = arith.constant 0 : index
    %448 = vector.load %arg29[%c0_228, %c0_229, %c0_230] : memref<1x32x32xf32, #tpu.memory_space<vmem>>, vector<1x32x32xf32>
    %449 = vector.shape_cast %448 : vector<1x32x32xf32> to vector<32x32xf32>
    %cst_231 = arith.constant dense<0.000000e+00> : vector<16x32xf32>
    %450 = tpu.matmul %447, %449, %cst_231 {dimension_numbers = #tpu.dot_dimension_numbers<[1], [0], [0], [1], [0, 0, 1, 1], [], []>} : vector<16x32xf32>, vector<32x32xf32>, vector<16x32xf32> -> vector<16x32xf32>
    %c0_232 = arith.constant 0 : index
    %c0_233 = arith.constant 0 : index
    %c0_234 = arith.constant 0 : index
    %451 = vector.load %arg30[%c0_232, %c0_233, %c0_234] : memref<1x1x32xf32, #tpu.memory_space<vmem>>, vector<1x1x32xf32>
    %452 = vector.shape_cast %451 : vector<1x1x32xf32> to vector<1x32xf32>
    %453 = vector.broadcast %452 : vector<1x32xf32> to vector<16x32xf32>
    %454 = arith.addf %450, %453 : vector<16x32xf32>
    %455 = arith.addf %427, %454 : vector<16x32xf32>
    %c0_235 = arith.constant 0 : index
    %c0_236 = arith.constant 0 : index
    %c0_237 = arith.constant 0 : index
    %456 = vector.load %arg25[%c0_235, %c0_236, %c0_237] : memref<1x1x32xf32, #tpu.memory_space<vmem>>, vector<1x1x32xf32>
    %457 = vector.shape_cast %456 : vector<1x1x32xf32> to vector<1x32xf32>
    %c0_238 = arith.constant 0 : index
    %c0_239 = arith.constant 0 : index
    %c0_240 = arith.constant 0 : index
    %458 = vector.load %arg26[%c0_238, %c0_239, %c0_240] : memref<1x1x32xf32, #tpu.memory_space<vmem>>, vector<1x1x32xf32>
    %459 = vector.shape_cast %458 : vector<1x1x32xf32> to vector<1x32xf32>
    %cst_241 = arith.constant dense<0.000000e+00> : vector<16xf32>
    %460 = vector.multi_reduction <add>, %455, %cst_241 [1] : vector<16x32xf32> to vector<16xf32>
    %461 = vector.shape_cast %460 : vector<16xf32> to vector<16x1xf32>
    %cst_242 = arith.constant 3.200000e+01 : f32
    %462 = vector.broadcast %cst_242 : f32 to vector<16x1xf32>
    %463 = arith.divf %461, %462 : vector<16x1xf32>
    %464 = vector.broadcast %463 : vector<16x1xf32> to vector<16x32xf32>
    %465 = arith.subf %455, %464 : vector<16x32xf32>
    %466 = arith.mulf %465, %465 : vector<16x32xf32>
    %cst_243 = arith.constant dense<0.000000e+00> : vector<16xf32>
    %467 = vector.multi_reduction <add>, %466, %cst_243 [1] : vector<16x32xf32> to vector<16xf32>
    %468 = vector.shape_cast %467 : vector<16xf32> to vector<16x1xf32>
    %cst_244 = arith.constant 3.200000e+01 : f32
    %469 = vector.broadcast %cst_244 : f32 to vector<16x1xf32>
    %470 = arith.divf %468, %469 : vector<16x1xf32>
    %cst_245 = arith.constant 9.99999974E-6 : f32
    %471 = vector.broadcast %cst_245 : f32 to vector<16x1xf32>
    %472 = arith.addf %470, %471 : vector<16x1xf32>
    %473 = math.rsqrt %472 : vector<16x1xf32>
    %474 = vector.broadcast %473 : vector<16x1xf32> to vector<16x32xf32>
    %475 = arith.mulf %465, %474 : vector<16x32xf32>
    %476 = vector.broadcast %457 : vector<1x32xf32> to vector<16x32xf32>
    %477 = arith.mulf %475, %476 : vector<16x32xf32>
    %478 = vector.broadcast %459 : vector<1x32xf32> to vector<16x32xf32>
    %479 = arith.addf %477, %478 : vector<16x32xf32>
    %c0_246 = arith.constant 0 : index
    %c0_247 = arith.constant 0 : index
    %480 = vector.load %arg31[%c0_246, %c0_247] : memref<1x32xf32, #tpu.memory_space<vmem>>, vector<1x32xf32>
    %c0_248 = arith.constant 0 : index
    %c0_249 = arith.constant 0 : index
    %481 = vector.load %arg32[%c0_248, %c0_249] : memref<1x32xf32, #tpu.memory_space<vmem>>, vector<1x32xf32>
    %cst_250 = arith.constant dense<0.000000e+00> : vector<16xf32>
    %482 = vector.multi_reduction <add>, %479, %cst_250 [1] : vector<16x32xf32> to vector<16xf32>
    %483 = vector.shape_cast %482 : vector<16xf32> to vector<16x1xf32>
    %cst_251 = arith.constant 3.200000e+01 : f32
    %484 = vector.broadcast %cst_251 : f32 to vector<16x1xf32>
    %485 = arith.divf %483, %484 : vector<16x1xf32>
    %486 = vector.broadcast %485 : vector<16x1xf32> to vector<16x32xf32>
    %487 = arith.subf %479, %486 : vector<16x32xf32>
    %488 = arith.mulf %487, %487 : vector<16x32xf32>
    %cst_252 = arith.constant dense<0.000000e+00> : vector<16xf32>
    %489 = vector.multi_reduction <add>, %488, %cst_252 [1] : vector<16x32xf32> to vector<16xf32>
    %490 = vector.shape_cast %489 : vector<16xf32> to vector<16x1xf32>
    %cst_253 = arith.constant 3.200000e+01 : f32
    %491 = vector.broadcast %cst_253 : f32 to vector<16x1xf32>
    %492 = arith.divf %490, %491 : vector<16x1xf32>
    %cst_254 = arith.constant 9.99999974E-6 : f32
    %493 = vector.broadcast %cst_254 : f32 to vector<16x1xf32>
    %494 = arith.addf %492, %493 : vector<16x1xf32>
    %495 = math.rsqrt %494 : vector<16x1xf32>
    %496 = vector.broadcast %495 : vector<16x1xf32> to vector<16x32xf32>
    %497 = arith.mulf %487, %496 : vector<16x32xf32>
    %498 = vector.broadcast %480 : vector<1x32xf32> to vector<16x32xf32>
    %499 = arith.mulf %497, %498 : vector<16x32xf32>
    %500 = vector.broadcast %481 : vector<1x32xf32> to vector<16x32xf32>
    %501 = arith.addf %499, %500 : vector<16x32xf32>
    %c0_255 = arith.constant 0 : index
    %c0_256 = arith.constant 0 : index
    %502 = vector.load %arg33[%c0_255, %c0_256] : memref<32x4xf32, #tpu.memory_space<vmem>>, vector<32x4xf32>
    %cst_257 = arith.constant dense<0.000000e+00> : vector<16x4xf32>
    %503 = tpu.matmul %501, %502, %cst_257 {dimension_numbers = #tpu.dot_dimension_numbers<[1], [0], [0], [1], [0, 0, 1, 1], [], []>} : vector<16x32xf32>, vector<32x4xf32>, vector<16x4xf32> -> vector<16x4xf32>
    %c0_258 = arith.constant 0 : index
    %c0_259 = arith.constant 0 : index
    %504 = vector.load %arg34[%c0_258, %c0_259] : memref<1x4xf32, #tpu.memory_space<vmem>>, vector<1x4xf32>
    %505 = vector.broadcast %504 : vector<1x4xf32> to vector<16x4xf32>
    %506 = arith.addf %503, %505 : vector<16x4xf32>
    %c0_260 = arith.constant 0 : index
    %c0_261 = arith.constant 0 : index
    %c0_262 = arith.constant 0 : index
    %507 = vector.load %arg35[%c0_260, %c0_261, %c0_262] : memref<1x16x4xf32, #tpu.memory_space<vmem>>, vector<1x16x4xf32>
    %508 = vector.shape_cast %507 : vector<1x16x4xf32> to vector<16x4xf32>
    %509 = vector.shape_cast %506 : vector<16x4xf32> to vector<1x16x4xf32>
    tpu.vector_store %arg35[%c0_260, %c0_261, %c0_262], %509 {strides = array<i32>} : memref<1x16x4xf32, #tpu.memory_space<vmem>>, vector<1x16x4xf32>,
    return
  }
  func.func @transform_0(%arg0: i32) -> (i32, i32, i32) {
    %c0_i32 = arith.constant 0 : i32
    %c0_i32_0 = arith.constant 0 : i32
    %c0_i32_1 = arith.constant 0 : i32
    return %arg0, %c0_i32, %c0_i32_0 : i32, i32, i32
  }
  func.func @transform_1(%arg0: i32) -> (i32, i32, i32) {
    %c0_i32 = arith.constant 0 : i32
    %c0_i32_0 = arith.constant 0 : i32
    %c0_i32_1 = arith.constant 0 : i32
    return %arg0, %c0_i32, %c0_i32_0 : i32, i32, i32
  }
  func.func @transform_2(%arg0: i32) -> (i32, i32, i32) {
    %c0_i32 = arith.constant 0 : i32
    %c0_i32_0 = arith.constant 0 : i32
    %c0_i32_1 = arith.constant 0 : i32
    return %arg0, %c0_i32, %c0_i32_0 : i32, i32, i32
  }
  func.func @transform_3(%arg0: i32) -> (i32, i32) {
    %c0_i32 = arith.constant 0 : i32
    %c0_i32_0 = arith.constant 0 : i32
    %c0_i32_1 = arith.constant 0 : i32
    return %c0_i32, %c0_i32_0 : i32, i32
  }
  func.func @transform_4(%arg0: i32) -> (i32, i32, i32) {
    %c0_i32 = arith.constant 0 : i32
    %c0_i32_0 = arith.constant 0 : i32
    %c0_i32_1 = arith.constant 0 : i32
    %c0_i32_2 = arith.constant 0 : i32
    return %c0_i32, %c0_i32_0, %c0_i32_1 : i32, i32, i32
  }
  func.func @transform_5(%arg0: i32) -> (i32, i32, i32) {
    %c0_i32 = arith.constant 0 : i32
    %c0_i32_0 = arith.constant 0 : i32
    %c0_i32_1 = arith.constant 0 : i32
    %c0_i32_2 = arith.constant 0 : i32
    return %c0_i32, %c0_i32_0, %c0_i32_1 : i32, i32, i32
  }
  func.func @transform_6(%arg0: i32) -> (i32, i32, i32) {
    %c0_i32 = arith.constant 0 : i32
    %c0_i32_0 = arith.constant 0 : i32
    %c0_i32_1 = arith.constant 0 : i32
    %c0_i32_2 = arith.constant 0 : i32
    return %c0_i32, %c0_i32_0, %c0_i32_1 : i32, i32, i32
  }
  func.func @transform_7(%arg0: i32) -> (i32, i32, i32) {
    %c0_i32 = arith.constant 0 : i32
    %c0_i32_0 = arith.constant 0 : i32
    %c0_i32_1 = arith.constant 0 : i32
    %c0_i32_2 = arith.constant 0 : i32
    return %c0_i32, %c0_i32_0, %c0_i32_1 : i32, i32, i32
  }
  func.func @transform_8(%arg0: i32) -> (i32, i32, i32, i32) {
    %c0_i32 = arith.constant 0 : i32
    %c0_i32_0 = arith.constant 0 : i32
    %c0_i32_1 = arith.constant 0 : i32
    %c0_i32_2 = arith.constant 0 : i32
    %c0_i32_3 = arith.constant 0 : i32
    return %c0_i32, %c0_i32_0, %c0_i32_1, %c0_i32_2 : i32, i32, i32, i32
  }
  func.func @transform_9(%arg0: i32) -> (i32, i32, i32, i32) {
    %c0_i32 = arith.constant 0 : i32
    %c0_i32_0 = arith.constant 0 : i32
    %c0_i32_1 = arith.constant 0 : i32
    %c0_i32_2 = arith.constant 0 : i32
    %c0_i32_3 = arith.constant 0 : i32
    return %c0_i32, %c0_i32_0, %c0_i32_1, %c0_i32_2 : i32, i32, i32, i32
  }
  func.func @transform_10(%arg0: i32) -> (i32, i32, i32) {
    %c0_i32 = arith.constant 0 : i32
    %c0_i32_0 = arith.constant 0 : i32
    %c0_i32_1 = arith.constant 0 : i32
    %c0_i32_2 = arith.constant 0 : i32
    return %c0_i32, %c0_i32_0, %c0_i32_1 : i32, i32, i32
  }
  func.func @transform_11(%arg0: i32) -> (i32, i32, i32) {
    %c0_i32 = arith.constant 0 : i32
    %c0_i32_0 = arith.constant 0 : i32
    %c0_i32_1 = arith.constant 0 : i32
    %c0_i32_2 = arith.constant 0 : i32
    return %c0_i32, %c0_i32_0, %c0_i32_1 : i32, i32, i32
  }
  func.func @transform_12(%arg0: i32) -> (i32, i32, i32) {
    %c0_i32 = arith.constant 0 : i32
    %c0_i32_0 = arith.constant 0 : i32
    %c0_i32_1 = arith.constant 0 : i32
    %c0_i32_2 = arith.constant 0 : i32
    return %c0_i32, %c0_i32_0, %c0_i32_1 : i32, i32, i32
  }
  func.func @transform_13(%arg0: i32) -> (i32, i32, i32) {
    %c0_i32 = arith.constant 0 : i32
    %c0_i32_0 = arith.constant 0 : i32
    %c0_i32_1 = arith.constant 0 : i32
    %c0_i32_2 = arith.constant 0 : i32
    return %c0_i32, %c0_i32_0, %c0_i32_1 : i32, i32, i32
  }
  func.func @transform_14(%arg0: i32) -> (i32, i32, i32) {
    %c0_i32 = arith.constant 0 : i32
    %c0_i32_0 = arith.constant 0 : i32
    %c0_i32_1 = arith.constant 0 : i32
    %c0_i32_2 = arith.constant 0 : i32
    return %c0_i32, %c0_i32_0, %c0_i32_1 : i32, i32, i32
  }
  func.func @transform_15(%arg0: i32) -> (i32, i32, i32) {
    %c0_i32 = arith.constant 0 : i32
    %c0_i32_0 = arith.constant 0 : i32
    %c0_i32_1 = arith.constant 0 : i32
    %c0_i32_2 = arith.constant 0 : i32
    return %c0_i32, %c0_i32_0, %c0_i32_1 : i32, i32, i32
  }
  func.func @transform_16(%arg0: i32) -> (i32, i32, i32) {
    %c0_i32 = arith.constant 0 : i32
    %c0_i32_0 = arith.constant 0 : i32
    %c0_i32_1 = arith.constant 0 : i32
    %c0_i32_2 = arith.constant 0 : i32
    return %c0_i32, %c0_i32_0, %c0_i32_1 : i32, i32, i32
  }
  func.func @transform_17(%arg0: i32) -> (i32, i32, i32) {
    %c0_i32 = arith.constant 0 : i32
    %c0_i32_0 = arith.constant 0 : i32
    %c0_i32_1 = arith.constant 0 : i32
    %c0_i32_2 = arith.constant 0 : i32
    return %c0_i32, %c0_i32_0, %c0_i32_1 : i32, i32, i32
  }
  func.func @transform_18(%arg0: i32) -> (i32, i32, i32) {
    %c0_i32 = arith.constant 0 : i32
    %c0_i32_0 = arith.constant 0 : i32
    %c0_i32_1 = arith.constant 0 : i32
    %c0_i32_2 = arith.constant 0 : i32
    return %c0_i32, %c0_i32_0, %c0_i32_1 : i32, i32, i32
  }
  func.func @transform_19(%arg0: i32) -> (i32, i32, i32) {
    %c0_i32 = arith.constant 0 : i32
    %c0_i32_0 = arith.constant 0 : i32
    %c0_i32_1 = arith.constant 0 : i32
    %c0_i32_2 = arith.constant 0 : i32
    return %c0_i32, %c0_i32_0, %c0_i32_1 : i32, i32, i32
  }
  func.func @transform_20(%arg0: i32) -> (i32, i32, i32) {
    %c0_i32 = arith.constant 0 : i32
    %c0_i32_0 = arith.constant 0 : i32
    %c0_i32_1 = arith.constant 0 : i32
    %c0_i32_2 = arith.constant 0 : i32
    return %c0_i32, %c0_i32_0, %c0_i32_1 : i32, i32, i32
  }
  func.func @transform_21(%arg0: i32) -> (i32, i32, i32) {
    %c0_i32 = arith.constant 0 : i32
    %c0_i32_0 = arith.constant 0 : i32
    %c0_i32_1 = arith.constant 0 : i32
    %c0_i32_2 = arith.constant 0 : i32
    return %c0_i32, %c0_i32_0, %c0_i32_1 : i32, i32, i32
  }
  func.func @transform_22(%arg0: i32) -> (i32, i32, i32) {
    %c0_i32 = arith.constant 0 : i32
    %c0_i32_0 = arith.constant 0 : i32
    %c0_i32_1 = arith.constant 0 : i32
    %c0_i32_2 = arith.constant 0 : i32
    return %c0_i32, %c0_i32_0, %c0_i32_1 : i32, i32, i32
  }
  func.func @transform_23(%arg0: i32) -> (i32, i32, i32) {
    %c0_i32 = arith.constant 0 : i32
    %c0_i32_0 = arith.constant 0 : i32
    %c0_i32_1 = arith.constant 0 : i32
    %c0_i32_2 = arith.constant 0 : i32
    return %c0_i32, %c0_i32_0, %c0_i32_1 : i32, i32, i32
  }
  func.func @transform_24(%arg0: i32) -> (i32, i32, i32) {
    %c0_i32 = arith.constant 0 : i32
    %c0_i32_0 = arith.constant 0 : i32
    %c0_i32_1 = arith.constant 0 : i32
    %c0_i32_2 = arith.constant 0 : i32
    return %c0_i32, %c0_i32_0, %c0_i32_1 : i32, i32, i32
  }
  func.func @transform_25(%arg0: i32) -> (i32, i32, i32) {
    %c0_i32 = arith.constant 0 : i32
    %c0_i32_0 = arith.constant 0 : i32
    %c0_i32_1 = arith.constant 0 : i32
    %c0_i32_2 = arith.constant 0 : i32
    return %c0_i32, %c0_i32_0, %c0_i32_1 : i32, i32, i32
  }
  func.func @transform_26(%arg0: i32) -> (i32, i32, i32) {
    %c0_i32 = arith.constant 0 : i32
    %c0_i32_0 = arith.constant 0 : i32
    %c0_i32_1 = arith.constant 0 : i32
    %c0_i32_2 = arith.constant 0 : i32
    return %c0_i32, %c0_i32_0, %c0_i32_1 : i32, i32, i32
  }
  func.func @transform_27(%arg0: i32) -> (i32, i32, i32) {
    %c0_i32 = arith.constant 0 : i32
    %c0_i32_0 = arith.constant 0 : i32
    %c0_i32_1 = arith.constant 0 : i32
    %c0_i32_2 = arith.constant 0 : i32
    return %c0_i32, %c0_i32_0, %c0_i32_1 : i32, i32, i32
  }
  func.func @transform_28(%arg0: i32) -> (i32, i32, i32) {
    %c0_i32 = arith.constant 0 : i32
    %c0_i32_0 = arith.constant 0 : i32
    %c0_i32_1 = arith.constant 0 : i32
    %c0_i32_2 = arith.constant 0 : i32
    return %c0_i32, %c0_i32_0, %c0_i32_1 : i32, i32, i32
  }
  func.func @transform_29(%arg0: i32) -> (i32, i32, i32) {
    %c0_i32 = arith.constant 0 : i32
    %c0_i32_0 = arith.constant 0 : i32
    %c0_i32_1 = arith.constant 0 : i32
    %c0_i32_2 = arith.constant 0 : i32
    return %c0_i32, %c0_i32_0, %c0_i32_1 : i32, i32, i32
  }
  func.func @transform_30(%arg0: i32) -> (i32, i32) {
    %c0_i32 = arith.constant 0 : i32
    %c0_i32_0 = arith.constant 0 : i32
    %c0_i32_1 = arith.constant 0 : i32
    return %c0_i32, %c0_i32_0 : i32, i32
  }
  func.func @transform_31(%arg0: i32) -> (i32, i32) {
    %c0_i32 = arith.constant 0 : i32
    %c0_i32_0 = arith.constant 0 : i32
    %c0_i32_1 = arith.constant 0 : i32
    return %c0_i32, %c0_i32_0 : i32, i32
  }
  func.func @transform_32(%arg0: i32) -> (i32, i32) {
    %c0_i32 = arith.constant 0 : i32
    %c0_i32_0 = arith.constant 0 : i32
    %c0_i32_1 = arith.constant 0 : i32
    return %c0_i32, %c0_i32_0 : i32, i32
  }
  func.func @transform_33(%arg0: i32) -> (i32, i32) {
    %c0_i32 = arith.constant 0 : i32
    %c0_i32_0 = arith.constant 0 : i32
    %c0_i32_1 = arith.constant 0 : i32
    return %c0_i32, %c0_i32_0 : i32, i32
  }
  func.func @transform_34(%arg0: i32) -> (i32, i32, i32) {
    %c0_i32 = arith.constant 0 : i32
    %c0_i32_0 = arith.constant 0 : i32
    %c0_i32_1 = arith.constant 0 : i32
    return %arg0, %c0_i32, %c0_i32_0 : i32, i32, i32
  }
}

</mosaic_0001>

<bundles_post_ra>
// kernel: informer_forward.2
= control target key start
LH: loop header
LB: loop body
LE: loop exit
PB: predicated region body
PF: predicated region fallthrough
CT: control target
= control target key end

     0   :  { %s3310_s0 = inlined_call_operand.vmem [shape: f32[2,16,12], index: 0, kind: input, shape index: {}]   ;;  %s3311_s1 = inlined_call_operand.vmem [shape: f32[2,16,32], index: 1, kind: input, shape index: {}]   ;;  %s3312_s2 = inlined_call_operand.vmem [shape: f32[12,32], index: 2, kind: input, shape index: {}]   ;;  %s3313_s3 = inlined_call_operand.vmem [shape: f32[2,32,32], index: 3, kind: input, shape index: {}]   ;;  %s3314_s4 = inlined_call_operand.vmem [shape: f32[2,1,32], index: 4, kind: input, shape index: {}]   ;;  %s3315_s5 = inlined_call_operand.vmem [shape: f32[2,32,32], index: 5, kind: input, shape index: {}]   ;;  %s3316_s6 = inlined_call_operand.vmem [shape: f32[2,1,32], index: 6, kind: input, shape index: {}]   ;;  %s3317_s7 = inlined_call_operand.vmem [shape: f32[2,32,32], index: 7, kind: input, shape index: {}]   ;;  %s3318_s8 = inlined_call_operand.vmem [shape: f32[2,1,32], index: 8, kind: input, shape index: {}]   ;;  %s3319_s9 = inlined_call_operand.vmem [shape: f32[2,32,32], index: 9, kind: input, shape index: {}]   ;;  %s3320_s10 = inlined_call_operand.vmem [shape: f32[2,1,32], index: 10, kind: input, shape index: {}]   ;;  %s3321_s11 = inlined_call_operand.vmem [shape: f32[2,1,32], index: 11, kind: input, shape index: {}]   ;;  %s3322_s12 = inlined_call_operand.vmem [shape: f32[2,1,32], index: 12, kind: input, shape index: {}]   ;;  %s3323_s13 = inlined_call_operand.vmem [shape: f32[2,32,32], index: 13, kind: input, shape index: {}]   ;;  %s3324_s14 = inlined_call_operand.vmem [shape: f32[2,1,32], index: 14, kind: input, shape index: {}]   ;;  %s3325_s15 = inlined_call_operand.vmem [shape: f32[2,32,32], index: 15, kind: input, shape index: {}]   ;;  %s3326_s16 = inlined_call_operand.vmem [shape: f32[2,1,32], index: 16, kind: input, shape index: {}]   ;;  %s3327_s17 = inlined_call_operand.vmem [shape: f32[2,1,32], index: 17, kind: input, shape index: {}]   ;;  %s3328_s18 = inlined_call_operand.vmem [shape: f32[2,1,32], index: 18, kind: input, shape index: {}]   ;;  %s3329_s19 = inlined_call_operand.vmem [shape: f32[1,3,32,32], index: 19, kind: input, shape index: {}]   ;;  %s3330_s20 = inlined_call_operand.vmem [shape: f32[1,1,32], index: 20, kind: input, shape index: {}]   ;;  %s3331_s21 = inlined_call_operand.vmem [shape: f32[1,32], index: 21, kind: input, shape index: {}]   ;;  %s3332_s22 = inlined_call_operand.vmem [shape: f32[1,32], index: 22, kind: input, shape index: {}]   ;;  %s3333_s23 = inlined_call_operand.vmem [shape: f32[2,8,32], index: 23, kind: output, shape index: {}]  }
   0x1   :  { %3342 = sst [smem:[#allocation3_spill]] %s3310_s0 }
   0x2   :  { %3343 = sst [smem:[#allocation4_spill]] %s3311_s1 }
   0x3   :  { %3344 = sst [smem:[#allocation5_spill]] %s3312_s2 }
   0x4   :  { %3345 = sst [smem:[#allocation6_spill]] %s3313_s3 }
   0x5   :  { %3346 = sst [smem:[#allocation7_spill]] %s3314_s4  ;;  %s2774_s4 = smov 0  }
   0x6   :  { %3347 = sst [smem:[#allocation8_spill]] %s3315_s5 }
   0x7   :  { %3348 = sst [smem:[#allocation9_spill]] %s3316_s6 }
   0x8   :  { %3349 = sst [smem:[#allocation10_spill]] %s3317_s7 }
   0x9   :  { %3350 = sst [smem:[#allocation11_spill]] %s3333_s23 }
   0xa LB: > { %3351 = sst [smem:[#allocation2_spill]] %s2650_s4  ;;  %s2405_s30 = sadd.s32 4294967295, %s2650_s4   ;;  %s2650_s4 = sphi %s2774_s4, %s33_s4  }
   0xb   : > { %p2409_p0 = scmp.ge.s32.totalorder %s2650_s4, 1  ;;  %p647_p1 = scmp.lt.s32.totalorder %s2650_s4, 3 }
   0xd   : > { %p648_p2 = pnand %p2409_p0, %p647_p1 }
   0xe   : > { %s3352_s5 = sld [smem:[#allocation5_spill]] (!%p648_p2)  ;;  %p715_p3 = scmp.lt.s32.totalorder (!%p648_p2), %s2405_s30, 1 }
   0xf   : > { %651 = sbr.rel (%p648_p2) target bundleno = 5030 (0x13a6), region = 112  ;;  %s3353_s27 = sld [smem:[#allocation6_spill]] (!%p648_p2) }
  0x10   : > { %s3354_s29 = sld [smem:[#allocation8_spill]] (!%p648_p2) }
  0x11   : > { %s3355_s4 = sld [smem:[#allocation10_spill]] (!%p648_p2) }
  0x12   : > { %s3357_s3 = sld [smem:[#allocation3_spill]] (!%p648_p2) }
  0x13   : > { %s3358_s2 = sld [smem:[#allocation4_spill]] (!%p648_p2) }
  0x14   : > { %v750_v0 = vld [vmem:[%s3352_s5 + $0x8] sm:$0xf]  ;;  %vm760_vm0 = vcmask 1043456   ;;  %v749_v1 = vld [vmem:[%s3352_s5] sm:$0xff]  ;;  %s3364_s30 = smov (!%p715_p3, %s2405_s30), 1  ;;  %vm753_vm1 = vcmask 97280   ;;  %v729_v22 = vlaneseq }
  0x15   : > { %2415 = vmatpush.msk.msra.mxu0 %vm760_vm0, %v750_v0  ;;  %v790_v2 = vld [vmem:[%s3353_s27 + $0x18] sm:$0xff]  ;;  %v789_v5 = vld [vmem:[%s3353_s27 + $0x10] sm:$0xff]  ;;  %v788_v10 = vld [vmem:[%s3353_s27 + $0x8] sm:$0xff]  ;;  %vm810_vm2 = vcmask 261120   ;;  %s3360_s1 = sld [smem:[#allocation7_spill]]  ;;  %v2652_v35 = vmov 0.0  }
  0x16   : > { %v795_v3 = vld [vmem:[%s3354_s29 + $0x18] sm:$0xff]  ;;  %829 = vmatpush.msra.mxu1 %v790_v2  ;;  %v794_v6 = vld [vmem:[%s3354_s29 + $0x10] sm:$0xff]  ;;  %v793_v11 = vld [vmem:[%s3354_s29 + $0x8] sm:$0xff]  ;;  %v2850_v24 = vand.u32 127, %v729_v22  ;;  %vm931_vm13 = vcmask 130048   ;;  %s2414_s28 = sshll.u32 %s3364_s30, 3 }
  0x17   : > { %s3356_s23 = smov %s3355_s4  ;;  %v800_v4 = vld [vmem:[%s3355_s4 + $0x18] sm:$0xff]  ;;  %855 = vmatpush.msra.mxu2 %v795_v3  ;;  %779 = vmatpush.msra.mxu0 %v749_v1  ;;  %s2535_s4 = sshll.u32 %s3364_s30, 4  ;;  %v787_v13 = vld [vmem:[%s3353_s27] sm:$0xff] }
  0x18   : > { %v799_v7 = vld [vmem:[%s3356_s23 + $0x10] sm:$0xff]  ;;  %881 = vmatpush.msra.mxu3 %v800_v4  ;;  %830 = vmatpush.msra.mxu1 %v789_v5  ;;  %s719_s0 = scalar_lea.vmem %s3357_s3, %s2535_s4  ;;  %v798_v12 = vld [vmem:[%s3356_s23 + $0x8] sm:$0xff]  ;;  %v792_v14 = vld [vmem:[%s3354_s29] sm:$0xff]  ;;  %vm735_vm3 = vcmp.ge.s32.totalorder %v2850_v24, 8  ;;  %vm736_vm4 = vcmp.lt.s32.totalorder %v2850_v24, 16  ;;  %vm739_vm5 = vcmp.ge.s32.totalorder %v2850_v24, 16 }
  0x19   : > { %856 = vmatpush.msra.mxu2 %v794_v6  ;;  %v747_v8 = vld [vmem:[%s719_s0] sm:$0xff]  ;;  %v748_v9 = vld [vmem:[%s719_s0 + $0x8] sm:$0xff]  ;;  %s724_s6 = scalar_lea.vmem %s3358_s2, %s2535_s4  ;;  %s3359_s0 = sld [smem:[#allocation9_spill]]  ;;  %vm740_vm6 = vcmp.lt.s32.totalorder %v2850_v24, 24  ;;  %vm737_vm7 = vmand %vm735_vm3, %vm736_vm4  ;;  %vm732_vm8 = vcmp.lt.s32.totalorder %v2850_v24, 8  ;;  %vm743_vm9 = vcmp.ge.s32.totalorder %v2850_v24, 24 }
  0x1a   : > { %882 = vmatpush.msra.mxu3 %v799_v7  ;;  %2416 = vmatmul.msk.f32.vlgmr.msra.gmra.mxu0 %vm753_vm1, %v747_v8  ;;  %v797_v15 = vld [vmem:[%s3356_s23] sm:$0xff]  ;;  %v752_v19 = vld [vmem:[%s724_s6 + $0x8] sm:$0xff]  ;;  %vm744_vm10 = vcmp.lt.s32.totalorder %v2850_v24, 32  ;;  %vm741_vm11 = vmand %vm739_vm5, %vm740_vm6  ;;  %v2871_v36 = vsel %vm737_vm7, 1.0, %v2652_v35  ;;  %v2874_v37 = vsel %vm732_vm8, 1.0, %v2652_v35  ;;  %s3361_s2 = sld [smem:[#allocation11_spill]] }
  0x1b   : > { %831 = vmatpush.msra.mxu1 %v788_v10  ;;  %857 = vmatpush.msra.mxu2 %v793_v11  ;;  %v751_v16 = vld [vmem:[%s724_s6] sm:$0xff]  ;;  %vm745_vm12 = vmand %vm743_vm9, %vm744_vm10  ;;  %v2881_v42 = vsel %vm741_vm11, 1.0, %v2652_v35 }
  0x1c   : > { %883 = vmatpush.msra.mxu3 %v798_v12  ;;  %v2549_v26 = vld [vmem:[%s3318_s8] ss:$0 sm:$0xff]  ;;  %v2886_v45 = vsel %vm745_vm12, 1.0, %v2652_v35  ;;  %vm1503_vm12 = vcmp.eq.s32.totalorder %v2850_v24, 15 }
  0x1d   : > { %832 = vmatpush.msra.mxu1 %v787_v13  ;;  %858 = vmatpush.msra.mxu2 %v792_v14  ;;  %v2547_v30 = vld [vmem:[%s3360_s1] ss:$0 sm:$0xff] }
  0x1e   : > { %884 = vmatpush.msra.mxu3 %v797_v15 }
  0x1f   : > { %v2548_v27 = vld [vmem:[%s3359_s0] ss:$0 sm:$0xff] }
  0x20   : > { %s728_s6 = scalar_lea.vmem %s3361_s2, %s2414_s28 }
  0x22   : > { %2417 = vmatmul.msk.f32.gmra.mxu0 %vm753_vm1, %v748_v9 }
  0x97   : > { %v781_v17 = vpop.f32.mrf.mxu0 }
  0x98   : > { %v2833_v18 = vadd.f32 %v781_v17, %v751_v16 }
  0x9a   : > { %2418 = vmatmul.msk.f32.vlgmr.msra.gmra.mxu1 %vm810_vm2, %v2833_v18  ;;  %2420 = vmatmul.msk.f32.vlgmr.msra.gmra.mxu2 %vm810_vm2, %v2833_v18 }
  0x9b   : > { %2422 = vmatmul.msk.f32.vlgmr.msra.gmra.mxu3 %vm810_vm2, %v2833_v18 }
  0x9f   : > { %v784_v20 = vpop.f32.mrf.mxu0 }
  0xa0   : > { %v2841_v21 = vadd.f32 %v784_v20, %v752_v19 }
  0xa2   : > { %2419 = vmatmul.msk.f32.gmra.mxu1 %vm810_vm2, %v2841_v21  ;;  %2421 = vmatmul.msk.f32.gmra.mxu2 %vm810_vm2, %v2841_v21 }
  0xa3   : > { %2423 = vmatmul.msk.f32.gmra.mxu3 %vm810_vm2, %v2841_v21 }
 0x117   : > { %v834_v28 = vpop.f32.mrf.mxu1 }
 0x118   : > { %v2878_v40 = vadd.f32 %v2547_v30, %v834_v28 }
 0x11a   : > { %v892_v48 = vmul.f32 %v2878_v40, %v2874_v37  ;;  %v956_v49 = vmul.f32 %v2878_v40, %v2871_v36  ;;  %v1071_v56 = vmul.f32 %v2878_v40, %v2881_v42 }
 0x11d   : > { %v860_v23 = vpop.f32.mrf.mxu2 }
 0x11e   : > { %v886_v25 = vpop.f32.mrf.mxu3  ;;  %v861_v41 = vadd.f32 %v2548_v27, %v860_v23 }
 0x11f   : > { %v887_v33 = vadd.f32 %v2549_v26, %v886_v25  ;;  %v837_v50 = vpop.f32.mrf.mxu1 }
 0x120   : > { %v2902_v53 = vadd.f32 %v2547_v30, %v837_v50 }
 0x121   : > { %v1011_v43 = vmul.f32 %v887_v33, %v2871_v36  ;;  %v954_v44 = vmul.f32 %v887_v33, %v2874_v37  ;;  %v1126_v51 = vmul.f32 %v887_v33, %v2881_v42  ;;  %v1214_v52 = vmul.f32 %v887_v33, %v2886_v45 }
 0x122   : > { %v893_v54 = vmul.f32 %v2902_v53, %v2874_v37  ;;  %v957_v55 = vmul.f32 %v2902_v53, %v2871_v36  ;;  %v1072_v57 = vmul.f32 %v2902_v53, %v2881_v42 }
 0x125   : > { %v863_v29 = vpop.f32.mrf.mxu2 }
 0x126   : > { %v864_v31 = vadd.f32 %v2548_v27, %v863_v29  ;;  %v889_v32 = vpop.f32.mrf.mxu3 }
 0x127   : > { %v890_v34 = vadd.f32 %v2549_v26, %v889_v32 }
 0x128   : > { %2424 = vmatpush.xpose.msk.msrb.mxu0 %vm810_vm2, %v864_v31  ;;  %2428 = vmatpush.xpose.msk.msrb.mxu1 %vm810_vm2, %v864_v31 }
 0x129   : > { %v1012_v38 = vmul.f32 %v890_v34, %v2871_v36  ;;  %v955_v39 = vmul.f32 %v890_v34, %v2874_v37  ;;  %v1127_v46 = vmul.f32 %v890_v34, %v2881_v42  ;;  %v1215_v47 = vmul.f32 %v890_v34, %v2886_v45 }
 0x12b   : > { %1033 = vmatpush.msrb.mxu2 %v1012_v38  ;;  %1062 = vmatpush.msrb.mxu3 %v955_v39 }
 0x12c   : > { %2425 = vmatpush.xpose.msk.msrb.mxu0 %vm810_vm2, %v861_v41  ;;  %2429 = vmatpush.xpose.msk.msrb.mxu1 %vm810_vm2, %v861_v41 }
 0x12d   : > { %1034 = vmatpush.msrb.mxu2 %v1011_v43  ;;  %1063 = vmatpush.msrb.mxu3 %v954_v44 }
 0x12f   : > { %2442 = vmatpush.xpose.msk.msra.mxu2 %vm810_vm2, %v864_v31  ;;  %1236 = vmatpush.msra.mxu3 %v1215_v47 }
 0x130   : > { %2436 = vmatpush.xpose.msk.msra.mxu0 %vm810_vm2, %v864_v31  ;;  %1148 = vmatpush.msra.mxu1 %v1127_v46 }
 0x131   : > { %2426 = vmatmul.msk.f32.vlgmr.msrb.gmra.mxu0 %vm810_vm2, %v892_v48  ;;  %2430 = vmatmul.msk.f32.vlgmr.msrb.gmra.mxu1 %vm810_vm2, %v956_v49  ;;  %v1160_v49 = vmul.f32 %v2902_v53, %v2886_v45 }
 0x132   : > { %1149 = vmatpush.msra.mxu1 %v1126_v51  ;;  %1237 = vmatpush.msra.mxu3 %v1214_v52 }
 0x133   : > { %2443 = vmatpush.xpose.msk.msra.mxu2 %vm810_vm2, %v861_v41 }
 0x134   : > { %2437 = vmatpush.xpose.msk.msra.mxu0 %vm810_vm2, %v861_v41  ;;  %v1159_v41 = vmul.f32 %v2878_v40, %v2886_v45 }
 0x139   : > { %2427 = vmatmul.msk.f32.gmra.mxu0 %vm810_vm2, %v893_v54  ;;  %2431 = vmatmul.msk.f32.gmra.mxu1 %vm810_vm2, %v957_v55 }
 0x141   : > { %2438 = vmatmul.msk.f32.vlgmr.msra.gmra.mxu0 %vm810_vm2, %v1071_v56 }
 0x149   : > { %2439 = vmatmul.msk.f32.gmra.mxu0 %vm810_vm2, %v1072_v57 }
 0x1ae   : > { %v923_v58 = vpop.f32.mrf.mxu0  ;;  %v981_v59 = vpop.f32.mrf.mxu1 }
 0x1af   : > { %v929_v60 = vmul.f32 0.35355338, %v923_v58  ;;  %v987_v61 = vmul.f32 0.35355338, %v981_v59 }
 0x1b1   : > { %v989_v62 = vsel %vm931_vm13, %v987_v61, -inf  ;;  %v932_v63 = vsel %vm931_vm13, %v929_v60, -inf }
 0x1b2   : > { %990 = vmax.xlane.f32.xlu0 %v989_v62  ;;  %933 = vmax.xlane.f32.xlu2 %v932_v63 }
 0x1b6   : > { %v926_v0 = vpop.f32.mrf.mxu0  ;;  %v984_v1 = vpop.f32.mrf.mxu1 }
 0x1b7   : > { %v2920_v2 = vmul.f32 0.35355338, %v926_v0  ;;  %v988_v3 = vmul.f32 0.35355338, %v984_v1 }
 0x1b9   : > { %v992_v4 = vsel %vm931_vm13, %v988_v3, -inf  ;;  %v935_v5 = vsel %vm931_vm13, %v2920_v2, -inf }
 0x1ba   : > { %993 = vmax.xlane.f32.xlu0 %v992_v4  ;;  %936 = vmax.xlane.f32.xlu2 %v935_v5 }
 0x1be   : > { %v1096_v19 = vpop.f32.mrf.mxu0 }
 0x1bf   : > { %v1102_v23 = vmul.f32 0.35355338, %v1096_v19 }
 0x1c1   : > { %v1104_v25 = vsel %vm931_vm13, %v1102_v23, -inf }
 0x1c6   : > { %v1099_v59 = vpop.f32.mrf.mxu0 }
 0x225   : > { %v991_v6 = vpop.xlane.xlu0 %990  ;;  %v934_v14 = vpop.xlane.xlu2 %933 }
 0x226   : > { %v995_v7 = vsub.f32 %v987_v61, %v991_v6  ;;  %v938_v16 = vsub.f32 %v929_v60, %v934_v14  ;;  %v1103_v61 = vmul.f32 0.35355338, %v1099_v59 }
 0x228   : > { %v997_v8 = vmul.f32 1.442695, %v995_v7  ;;  %v940_v20 = vmul.f32 1.442695, %v938_v16  ;;  %v1107_v0 = vsel %vm931_vm13, %v1103_v61, -inf }
 0x22a   : > { %2570 = vpow2.f32 %v997_v8 }
 0x22d   : > { %v994_v9 = vpop.xlane.xlu0 %993  ;;  %v937_v55 = vpop.xlane.xlu2 %936 }
 0x22e   : > { %v996_v10 = vsub.f32 %v988_v3, %v994_v9  ;;  %v939_v58 = vsub.f32 %v2920_v2, %v937_v55 }
 0x230   : > { %v2571_v11 = vpop.eup %2570  ;;  %v999_v12 = vmul.f32 1.442695, %v996_v10  ;;  %v942_v60 = vmul.f32 1.442695, %v939_v58 }
 0x231   : > { %v1001_v13 = vsel %vm931_vm13, %v2571_v11, 0.0 }
 0x232   : > { %2572 = vpow2.f32 %v999_v12  ;;  %1002 = vadd.xlane.f32.xlu1 %v1001_v13 }
 0x233   : > { %2574 = vpow2.f32 %v940_v20 }
 0x238   : > { %v2573_v15 = vpop.eup %2572 }
 0x239   : > { %v1004_v17 = vsel %vm931_vm13, %v2573_v15, 0.0  ;;  %v2575_v26 = vpop.eup %2574 }
 0x23a   : > { %1005 = vadd.xlane.f32.xlu1 %v1004_v17  ;;  %v944_v27 = vsel %vm931_vm13, %v2575_v26, 0.0 }
 0x242   : > { %1105 = vmax.xlane.f32.xlu1 %v1104_v25 }
 0x24a   : > { %945 = vadd.xlane.f32.xlu1 %v944_v27  ;;  %v804_v27 = vld [vmem:[%s3319_s9 + $0x10] sm:$0xff] }
 0x2a5   : > { %v1003_v28 = vpop.xlane.xlu1 %1002 }
 0x2a6   : > { %2576 = vrcp.f32 %v1003_v28 }
 0x2ac   : > { %v2577_v29 = vpop.eup %2576 }
 0x2ad   : > { %v1006_v30 = vpop.xlane.xlu1 %1005  ;;  %v1009_v31 = vmul.f32 %v2577_v29, %v2571_v11 }
 0x2ae   : > { %2578 = vrcp.f32 %v1006_v30 }
 0x2af   : > { %2432 = vmatmul.msk.f32.vlgmr.msrb.gmra.mxu2 %vm931_vm13, %v1009_v31 }
 0x2b4   : > { %v2579_v32 = vpop.eup %2578 }
 0x2b5   : > { %v1106_v33 = vpop.xlane.xlu1 %1105  ;;  %v1010_v34 = vmul.f32 %v2579_v32, %v2573_v15 }
 0x2b6   : > { %v1110_v38 = vsub.f32 %v1102_v23, %v1106_v33 }
 0x2b7   : > { %2433 = vmatmul.msk.f32.gmra.mxu2 %vm931_vm13, %v1010_v34 }
 0x2b8   : > { %v1112_v39 = vmul.f32 1.442695, %v1110_v38 }
 0x2ba   : > { %2580 = vpow2.f32 %v1112_v39 }
 0x2bd   : > { %v946_v43 = vpop.xlane.xlu1 %945 }
 0x2be   : > { %2582 = vrcp.f32 %v946_v43  ;;  %v802_v43 = vld [vmem:[%s3319_s9] sm:$0xff] }
 0x2bf   : > { %2444 = vmatmul.msk.f32.vlgmr.msra.gmra.mxu2 %vm810_vm2, %v1159_v41  ;;  %v803_v41 = vld [vmem:[%s3319_s9 + $0x8] sm:$0xff] }
 0x2c0   : > { %v2581_v44 = vpop.eup %2580 }
 0x2c1   : > { %v1116_v46 = vsel %vm931_vm13, %v2581_v44, 0.0 }
 0x2c2   : > { %1117 = vadd.xlane.f32.xlu1 %v1116_v46 }
 0x2c4   : > { %v2583_v47 = vpop.eup %2582 }
 0x2c5   : > { %v952_v48 = vmul.f32 %v2583_v47, %v2575_v26  ;;  %v805_v26 = vld [vmem:[%s3319_s9 + $0x18] sm:$0xff] }
 0x2c6   : > { %1268 = vmatpush.msrb.mxu0 %v805_v26 }
 0x2c7   : > { %2434 = vmatmul.msk.f32.vlgmr.msrb.gmra.mxu3 %vm931_vm13, %v952_v48  ;;  %2445 = vmatmul.msk.f32.gmra.mxu2 %vm810_vm2, %v1160_v49 }
 0x2c8   : > { %1269 = vmatpush.msrb.mxu0 %v804_v27 }
 0x2ca   : > { %1270 = vmatpush.msrb.mxu0 %v803_v41  ;;  %v2551_v41 = vld [vmem:[%s3321_s11] ss:$0 sm:$0xff] }
 0x2cc   : > { %1271 = vmatpush.msrb.mxu0 %v802_v43 }
 0x332   : > { %v2939_v50 = vpop.f32.mrf.mxu2 }
 0x335   : > { %v1118_v40 = vpop.xlane.xlu1 %1117 }
 0x336   : > { %2584 = vrcp.f32 %v1118_v40 }
 0x337   : > { %2586 = vpow2.f32 %v942_v60 }
 0x33a   : > { %v2941_v51 = vpop.f32.mrf.mxu2 }
 0x33c   : > { %v2585_v52 = vpop.eup %2584 }
 0x33d   : > { %v1124_v54 = vmul.f32 %v2585_v52, %v2581_v44  ;;  %v2587_v3 = vpop.eup %2586 }
 0x33e   : > { %v947_v4 = vsel %vm931_vm13, %v2587_v3, 0.0 }
 0x33f   : > { %2440 = vmatmul.msk.f32.vlgmr.msra.gmra.mxu1 %vm931_vm13, %v1124_v54 }
 0x342   : > { %v1184_v56 = vpop.f32.mrf.mxu2 }
 0x343   : > { %v1190_v57 = vmul.f32 0.35355338, %v1184_v56 }
 0x345   : > { %v1192_v53 = vsel %vm931_vm13, %v1190_v57, -inf }
 0x346   : > { %1193 = vmax.xlane.f32.xlu0 %v1192_v53  ;;  %v2550_v53 = vld [vmem:[%s3320_s10] ss:$0 sm:$0xff] }
 0x34a   : > { %v1187_v62 = vpop.f32.mrf.mxu2  ;;  %v1065_v44 = vpop.f32.mrf.mxu3 }
 0x34b   : > { %v1191_v63 = vmul.f32 0.35355338, %v1187_v62  ;;  %v1066_v48 = vadd.f32 %v1065_v44, %v2939_v50 }
 0x34d   : > { %v1195_v1 = vsel %vm931_vm13, %v1191_v63, -inf }
 0x34e   : > { %1108 = vmax.xlane.f32.xlu0 %v1107_v0  ;;  %1196 = vmax.xlane.f32.xlu2 %v1195_v1  ;;  %v2653_v1 = vmov 32.0  }
 0x356   : > { %948 = vadd.xlane.f32.xlu2 %v947_v4 }
 0x3b9   : > { %v1194_v2 = vpop.xlane.xlu0 %1193 }
 0x3ba   : > { %v1198_v5 = vsub.f32 %v1190_v57, %v1194_v2 }
 0x3bc   : > { %v1200_v6 = vmul.f32 1.442695, %v1198_v5  ;;  %v1151_v47 = vpop.f32.mrf.mxu1 }
 0x3bd   : > { %v1157_v49 = vadd.f32 %v1151_v47, %v1066_v48  ;;  %v2552_v48 = vld [vmem:[%s3322_s12] ss:$0 sm:$0xff] }
 0x3be   : > { %2588 = vpow2.f32 %v1200_v6 }
 0x3c1   : > { %v1109_v7 = vpop.xlane.xlu0 %1108  ;;  %v1197_v8 = vpop.xlane.xlu2 %1196 }
 0x3c2   : > { %v1111_v9 = vsub.f32 %v1103_v61, %v1109_v7  ;;  %v1199_v10 = vsub.f32 %v1191_v63, %v1197_v8 }
 0x3c4   : > { %v2589_v11 = vpop.eup %2588  ;;  %v1114_v12 = vmul.f32 1.442695, %v1111_v9  ;;  %v1202_v13 = vmul.f32 1.442695, %v1199_v10 }
 0x3c5   : > { %v1204_v14 = vsel %vm931_vm13, %v2589_v11, 0.0 }
 0x3c6   : > { %2590 = vpow2.f32 %v1114_v12  ;;  %1205 = vadd.xlane.f32.xlu0 %v1204_v14 }
 0x3c7   : > { %2592 = vpow2.f32 %v1202_v13 }
 0x3c9   : > { %v949_v15 = vpop.xlane.xlu2 %948 }
 0x3ca   : > { %2594 = vrcp.f32 %v949_v15 }
 0x3cc   : > { %v2591_v16 = vpop.eup %2590 }
 0x3cd   : > { %v2593_v17 = vpop.eup %2592  ;;  %v1119_v19 = vsel %vm931_vm13, %v2591_v16, 0.0 }
 0x3ce   : > { %1120 = vadd.xlane.f32.xlu0 %v1119_v19  ;;  %v1207_v20 = vsel %vm931_vm13, %v2593_v17, 0.0  ;;  %v1345_v19 = vld [vmem:[%s3323_s13 + $0x8] sm:$0xff] }
 0x3cf   : > { %1208 = vadd.xlane.f32.xlu2 %v1207_v20  ;;  %v1344_v20 = vld [vmem:[%s3323_s13] sm:$0xff] }
 0x3d0   : > { %v2595_v23 = vpop.eup %2594 }
 0x3d1   : > { %v953_v25 = vmul.f32 %v2595_v23, %v2587_v3 }
 0x3d3   : > { %2435 = vmatmul.msk.f32.gmra.mxu3 %vm931_vm13, %v953_v25 }
 0x439   : > { %v1206_v28 = vpop.xlane.xlu0 %1205 }
 0x43a   : > { %2596 = vrcp.f32 %v1206_v28 }
 0x440   : > { %v2597_v29 = vpop.eup %2596 }
 0x441   : > { %v1212_v30 = vmul.f32 %v2597_v29, %v2589_v11  ;;  %v1121_v31 = vpop.xlane.xlu0 %1120 }
 0x442   : > { %2598 = vrcp.f32 %v1121_v31  ;;  %v1209_v32 = vpop.xlane.xlu2 %1208 }
 0x443   : > { %2600 = vrcp.f32 %v1209_v32  ;;  %2446 = vmatmul.msk.f32.vlgmr.msra.gmra.mxu3 %vm931_vm13, %v1212_v30 }
 0x444   : > { %2602 = vrcp.f32 %v2653_v1 }
 0x448   : > { %v2599_v33 = vpop.eup %2598 }
 0x449   : > { %v2601_v34 = vpop.eup %2600  ;;  %v1125_v38 = vmul.f32 %v2599_v33, %v2591_v16  ;;  %v1347_v16 = vld [vmem:[%s3323_s13 + $0x18] sm:$0xff] }
 0x44a   : > { %v1213_v39 = vmul.f32 %v2601_v34, %v2593_v17  ;;  %v2603_v3 = vpop.eup %2602  ;;  %1370 = vmatpush.msrb.mxu1 %v1347_v16  ;;  %v1346_v17 = vld [vmem:[%s3323_s13 + $0x10] sm:$0xff] }
 0x44b   : > { %2441 = vmatmul.msk.f32.gmra.mxu1 %vm931_vm13, %v1125_v38  ;;  %v1290_v4 = vmul.f32 32.0, %v2603_v3  ;;  %vm1294_vm14 = vweird.f32 %v2603_v3 }
 0x44c   : > { %2447 = vmatmul.msk.f32.gmra.mxu3 %vm931_vm13, %v1213_v39  ;;  %1371 = vmatpush.msrb.mxu1 %v1346_v17 }
 0x44d   : > { %v1291_v2 = vsub.f32 1.0, %v1290_v4 }
 0x44e   : > { %1372 = vmatpush.msrb.mxu1 %v1345_v19 }
 0x44f   : > { %v1292_v5 = vmul.f32 %v2603_v3, %v1291_v2 }
 0x450   : > { %1373 = vmatpush.msrb.mxu1 %v1344_v20  ;;  %v2554_v20 = vld [vmem:[%s3326_s16] ss:$0 sm:$0xff] }
 0x451   : > { %v1293_v6 = vadd.f32 %v2603_v3, %v1292_v5 }
 0x453   : > { %v2979_v7 = vsel %vm1294_vm14, %v2603_v3, %v1293_v6 }
 0x456   : > { %v1068_v46 = vpop.f32.mrf.mxu3 }
 0x457   : > { %v1069_v55 = vadd.f32 %v1068_v46, %v2941_v51 }
 0x4c6   : > { %v1239_v40 = vpop.f32.mrf.mxu3 }
 0x4c7   : > { %v1245_v52 = vadd.f32 %v1239_v40, %v1157_v49 }
 0x4c8   : > { %v1154_v54 = vpop.f32.mrf.mxu1 }
 0x4c9   : > { %2448 = vmatmul.msk.f32.vlgmr.msrb.gmra.mxu0 %vm810_vm2, %v1245_v52  ;;  %v1158_v56 = vadd.f32 %v1154_v54, %v1069_v55 }
 0x4cf   : > { %v1242_v57 = vpop.f32.mrf.mxu3 }
 0x4d0   : > { %v1246_v58 = vadd.f32 %v1242_v57, %v1158_v56 }
 0x4d2   : > { %2449 = vmatmul.msk.f32.gmra.mxu0 %vm810_vm2, %v1246_v58 }
 0x546   : > { %v1273_v59 = vpop.f32.mrf.mxu0 }
 0x547   : > { %v1274_v60 = vadd.f32 %v2550_v53, %v1273_v59  ;;  %v1402_v59 = vld [vmem:[%s3325_s15 + $0x18] sm:$0xff] }
 0x548   : > { %1425 = vmatpush.msrb.mxu2 %v1402_v59 }
 0x549   : > { %v1279_v50 = vadd.f32 %v1274_v60, %v2833_v18  ;;  %v1401_v60 = vld [vmem:[%s3325_s15 + $0x10] sm:$0xff] }
 0x54a   : > { %1426 = vmatpush.msrb.mxu2 %v1401_v60 }
 0x54b   : > { %v1283_v61 = vsel %vm810_vm2, %v1279_v50, 0.0 }
 0x54c   : > { %1284 = vadd.xlane.f32.xlu1 %v1283_v61  ;;  %v1399_v61 = vld [vmem:[%s3325_s15] sm:$0xff] }
 0x54f   : > { %v1276_v62 = vpop.f32.mrf.mxu0 }
 0x550   : > { %v1277_v63 = vadd.f32 %v2550_v53, %v1276_v62  ;;  %v2553_v62 = vld [vmem:[%s3324_s14] ss:$0 sm:$0xff] }
 0x552   : > { %v1280_v51 = vadd.f32 %v1277_v63, %v2841_v21 }
 0x554   : > { %v1286_v0 = vsel %vm810_vm2, %v1280_v51, 0.0 }
 0x555   : > { %1287 = vadd.xlane.f32.xlu2 %v1286_v0 }
 0x5bf   : > { %v1285_v18 = vpop.xlane.xlu1 %1284 }
 0x5c0   : > { %v1296_v8 = vmul.f32 %v2979_v7, %v1285_v18 }
 0x5c2   : > { %v1298_v9 = vsub.f32 %v1279_v50, %v1296_v8  ;;  %v1400_v50 = vld [vmem:[%s3325_s15 + $0x8] sm:$0xff] }
 0x5c3   : > { %1427 = vmatpush.msrb.mxu2 %v1400_v50 }
 0x5c4   : > { %v1300_v10 = vmul.f32 %v1298_v9, %v1298_v9 }
 0x5c5   : > { %1428 = vmatpush.msrb.mxu2 %v1399_v61 }
 0x5c6   : > { %v1302_v21 = vsel %vm810_vm2, %v1300_v10, 0.0 }
 0x5c7   : > { %1303 = vadd.xlane.f32.xlu0 %v1302_v21 }
 0x5c8   : > { %v1288_v11 = vpop.xlane.xlu2 %1287 }
 0x5c9   : > { %v1297_v12 = vmul.f32 %v2979_v7, %v1288_v11 }
 0x5cb   : > { %v1299_v13 = vsub.f32 %v1280_v51, %v1297_v12 }
 0x5cd   : > { %v1301_v14 = vmul.f32 %v1299_v13, %v1299_v13 }
 0x5cf   : > { %v1305_v15 = vsel %vm810_vm2, %v1301_v14, 0.0 }
 0x5d0   : > { %1306 = vadd.xlane.f32.xlu1 %v1305_v15 }
 0x63a   : > { %v1304_v23 = vpop.xlane.xlu0 %1303 }
 0x63b   : > { %v1308_v25 = vmul.f32 %v1304_v23, %v2979_v7 }
 0x63d   : > { %v1310_v26 = vadd.f32 1e-05, %v1308_v25 }
 0x63f   : > { %2604 = vrsqrt.f32 %v1310_v26  ;;  %vm1318_vm0 = vweird.f32 %v1310_v26 }
 0x643   : > { %v1307_v27 = vpop.xlane.xlu1 %1306 }
 0x644   : > { %v1309_v28 = vmul.f32 %v1307_v27, %v2979_v7 }
 0x645   : > { %v2605_v29 = vpop.eup %2604 }
 0x646   : > { %v1313_v30 = vmul.f32 %v2605_v29, %v1310_v26  ;;  %v1311_v31 = vadd.f32 1e-05, %v1309_v28  ;;  %vm1319_vm15 = vweird.f32 %v2605_v29 }
 0x647   : > { %vm1320_vm1 = vmor %vm1318_vm0, %vm1319_vm15 }
 0x648   : > { %v1314_v32 = vmul.f32 %v2605_v29, %v1313_v30  ;;  %2606 = vrsqrt.f32 %v1311_v31  ;;  %vm1328_vm4 = vweird.f32 %v1311_v31 }
 0x64a   : > { %v1315_v33 = vmul.f32 0.5, %v1314_v32 }
 0x64c   : > { %v1316_v34 = vsub.f32 1.5, %v1315_v33 }
 0x64e   : > { %v2607_v38 = vpop.eup %2606  ;;  %v1317_v39 = vmul.f32 %v2605_v29, %v1316_v34 }
 0x64f   : > { %v1323_v43 = vmul.f32 %v2607_v38, %v1311_v31  ;;  %vm1329_vm3 = vweird.f32 %v2607_v38 }
 0x650   : > { %v1321_v44 = vsel %vm1320_vm1, %v2605_v29, %v1317_v39  ;;  %vm1330_vm5 = vmor %vm1328_vm4, %vm1329_vm3 }
 0x651   : > { %v1332_v46 = vmul.f32 %v1321_v44, %v1298_v9  ;;  %v1324_v47 = vmul.f32 %v2607_v38, %v1323_v43 }
 0x653   : > { %v1337_v49 = vmul.f32 %v2551_v41, %v1332_v46  ;;  %v1325_v40 = vmul.f32 0.5, %v1324_v47 }
 0x655   : > { %v1326_v52 = vsub.f32 1.5, %v1325_v40  ;;  %v1342_v54 = vadd.f32 %v2552_v48, %v1337_v49  ;;  %v2462_v49 = vld [vmem:[%s3329_s19 + $0x30] sm:$0xff]  ;;  %v2461_v40 = vld [vmem:[%s3329_s19 + $0x28] sm:$0xff] }
 0x657   : > { %v1327_v55 = vmul.f32 %v2607_v38, %v1326_v52  ;;  %2450 = vmatmul.msk.f32.vlgmr.msrb.gmra.mxu1 %vm810_vm2, %v1342_v54  ;;  %v2460_v52 = vld [vmem:[%s3329_s19 + $0x20] sm:$0xff] }
 0x659   : > { %v1331_v56 = vsel %vm1330_vm5, %v2607_v38, %v1327_v55  ;;  %vm1516_vm5 = vcmp.eq.s32.totalorder %v2850_v24, 0 }
 0x65a   : > { %v1333_v57 = vmul.f32 %v1331_v56, %v1299_v13 }
 0x65c   : > { %v1338_v58 = vmul.f32 %v2551_v41, %v1333_v57 }
 0x65e   : > { %v1343_v53 = vadd.f32 %v2552_v48, %v1338_v58  ;;  %v2463_v48 = vld [vmem:[%s3329_s19 + $0x38] sm:$0xff] }
 0x65f   : > { %1608 = vmatpush.msra.mxu1 %v2463_v48 }
 0x660   : > { %2451 = vmatmul.msk.f32.gmra.mxu1 %vm810_vm2, %v1343_v53 }
 0x661   : > { %1609 = vmatpush.msra.mxu1 %v2462_v49  ;;  %v2557_v49 = vld [vmem:[%s3330_s20] ss:$0 sm:$0xff] }
 0x663   : > { %1610 = vmatpush.msra.mxu1 %v2461_v40 }
 0x665   : > { %1611 = vmatpush.msra.mxu1 %v2460_v52 }
 0x6d4   : > { %v1375_v63 = vpop.f32.mrf.mxu1 }
 0x6d5   : > { %v1376_v51 = vadd.f32 %v2553_v62, %v1375_v63 }
 0x6d7   : > { %v1381_v0 = vmul.f32 %v1376_v51, %v1376_v51 }
 0x6d9   : > { %v1383_v1 = vmul.f32 %v1381_v0, %v1376_v51  ;;  %v2555_v0 = vld [vmem:[%s3327_s17] ss:$0 sm:$0xff] }
 0x6db   : > { %v1385_v3 = vmul.f32 0.044715, %v1383_v1 }
 0x6dd   : > { %v1387_v4 = vadd.f32 %v1385_v3, %v1376_v51  ;;  %v1378_v2 = vpop.f32.mrf.mxu1 }
 0x6de   : > { %v1379_v5 = vadd.f32 %v2553_v62, %v1378_v2 }
 0x6df   : > { %v1389_v6 = vmul.f32 0.7978846, %v1387_v4 }
 0x6e0   : > { %v1382_v18 = vmul.f32 %v1379_v5, %v1379_v5 }
 0x6e1   : > { %2608 = vtanh.f32 %v1389_v6  ;;  %v3054_v6 = vshrl.u32 %v729_v22, 7 }
 0x6e2   : > { %v1384_v8 = vmul.f32 %v1382_v18, %v1379_v5 }
 0x6e3   : > { %vm1501_vm11 = vcmp.eq.s32.totalorder %v3054_v6, 0  ;;  %v1510_v22 = vadd.s32 1, %v3054_v6 }
 0x6e4   : > { %v1386_v9 = vmul.f32 0.044715, %v1384_v8  ;;  %vm1504_vm0 = vmand %vm1501_vm11, %vm1503_vm12 }
 0x6e5   : > { %vm1512_vm3 = vcmp.eq.s32.totalorder %v2850_v24, %v1510_v22 }
 0x6e6   : > { %v1388_v10 = vadd.f32 %v1386_v9, %v1379_v5 }
 0x6e7   : > { %v2609_v21 = vpop.eup %2608 }
 0x6e8   : > { %v1393_v11 = vadd.f32 1.0, %v2609_v21  ;;  %v1390_v12 = vmul.f32 0.7978846, %v1388_v10  ;;  %v2454_v21 = vadd.s32 4294967295, %v3054_v6 }
 0x6ea   : > { %v1395_v13 = vmul.f32 0.5, %v1393_v11  ;;  %2610 = vtanh.f32 %v1390_v12  ;;  %vm1499_vm15 = vcmp.eq.s32.totalorder %v2850_v24, %v2454_v21 }
 0x6eb   : > { %vm1506_vm1 = vmor %vm1499_vm15, %vm1504_vm0 }
 0x6ec   : > { %v1397_v14 = vmul.f32 %v1395_v13, %v1376_v51 }
 0x6ee   : > { %2452 = vmatmul.msk.f32.vlgmr.msrb.gmra.mxu2 %vm810_vm2, %v1397_v14 }
 0x6f0   : > { %v2611_v15 = vpop.eup %2610 }
 0x6f1   : > { %v1394_v16 = vadd.f32 1.0, %v2611_v15  ;;  %v3065_v15 = vadd.s32 8, %v3054_v6 }
 0x6f3   : > { %v1396_v17 = vmul.f32 0.5, %v1394_v16  ;;  %vm1515_vm4 = vcmp.eq.s32.totalorder %v3065_v15, 15 }
 0x6f5   : > { %v1398_v19 = vmul.f32 %v1396_v17, %v1379_v5  ;;  %v2556_v5 = vld [vmem:[%s3328_s18] ss:$0 sm:$0xff]  ;;  %v1511_v17 = vadd.s32 1, %v3065_v15 }
 0x6f7   : > { %2453 = vmatmul.msk.f32.gmra.mxu2 %vm810_vm2, %v1398_v19  ;;  %v3072_v19 = vsel %vm1506_vm1, 1.0, %v2652_v35 }
 0x771   : > { %v1430_v23 = vpop.f32.mrf.mxu2 }
 0x772   : > { %v1431_v25 = vadd.f32 %v2554_v20, %v1430_v23  ;;  %v2455_v23 = vadd.s32 4294967295, %v3065_v15  ;;  %v2486_v15 = vld [vmem:[%s3354_s29 + $0x20] sm:$0xff] }
 0x774   : > { %v1436_v26 = vadd.f32 %v1431_v25, %v1342_v54 }
 0x776   : > { %v1440_v27 = vsel %vm810_vm2, %v1436_v26, 0.0 }
 0x777   : > { %1441 = vadd.xlane.f32.xlu0 %v1440_v27  ;;  %v1584_v27 = vld [vmem:[%s3329_s19 + $0x18] sm:$0xff] }
 0x778   : > { %1637 = vmatpush.msra.mxu2 %v1584_v27 }
 0x77a   : > { %v1433_v28 = vpop.f32.mrf.mxu2 }
 0x77b   : > { %v1434_v29 = vadd.f32 %v2554_v20, %v1433_v28  ;;  %v3075_v20 = vsel %vm1512_vm3, 1.0, %v2652_v35  ;;  %v1583_v28 = vld [vmem:[%s3329_s19 + $0x10] sm:$0xff] }
 0x77c   : > { %1638 = vmatpush.msra.mxu2 %v1583_v28  ;;  %v2558_v28 = vld [vmem:[%s3360_s1 + $0x1] ss:$0 sm:$0xff] }
 0x77d   : > { %v1437_v30 = vadd.f32 %v1434_v29, %v1343_v53  ;;  %v2471_v29 = vld [vmem:[%s3329_s19 + $0x58] sm:$0xff] }
 0x77f   : > { %v1443_v31 = vsel %vm810_vm2, %v1437_v30, 0.0 }
 0x780   : > { %1444 = vadd.xlane.f32.xlu2 %v1443_v31  ;;  %v1582_v31 = vld [vmem:[%s3329_s19 + $0x8] sm:$0xff] }
 0x781   : > { %1639 = vmatpush.msra.mxu2 %v1582_v31 }
 0x7ea   : > { %v1442_v32 = vpop.xlane.xlu0 %1441 }
 0x7eb   : > { %v1446_v33 = vmul.f32 %v1442_v32, %v2979_v7  ;;  %v1581_v32 = vld [vmem:[%s3329_s19] sm:$0xff] }
 0x7ec   : > { %1640 = vmatpush.msra.mxu2 %v1581_v32 }
 0x7ed   : > { %v1448_v34 = vsub.f32 %v1436_v26, %v1446_v33  ;;  %v2469_v33 = vld [vmem:[%s3329_s19 + $0x48] sm:$0xff] }
 0x7ef   : > { %v1450_v38 = vmul.f32 %v1448_v34, %v1448_v34 }
 0x7f1   : > { %v1452_v39 = vsel %vm810_vm2, %v1450_v38, 0.0 }
 0x7f2   : > { %1453 = vadd.xlane.f32.xlu2 %v1452_v39 }
 0x7f3   : > { %v1445_v41 = vpop.xlane.xlu2 %1444 }
 0x7f4   : > { %v1447_v43 = vmul.f32 %v1445_v41, %v2979_v7 }
 0x7f6   : > { %v1449_v44 = vsub.f32 %v1437_v30, %v1447_v43  ;;  %v2470_v30 = vld [vmem:[%s3329_s19 + $0x50] sm:$0xff] }
 0x7f8   : > { %v1451_v46 = vmul.f32 %v1449_v44, %v1449_v44 }
 0x7fa   : > { %v1455_v47 = vsel %vm810_vm2, %v1451_v46, 0.0 }
 0x7fb   : > { %1456 = vadd.xlane.f32.xlu1 %v1455_v47 }
 0x865   : > { %v1454_v54 = vpop.xlane.xlu2 %1453 }
 0x866   : > { %v1458_v55 = vmul.f32 %v1454_v54, %v2979_v7 }
 0x868   : > { %v1460_v56 = vadd.f32 1e-05, %v1458_v55 }
 0x86a   : > { %2612 = vrsqrt.f32 %v1460_v56  ;;  %vm1468_vm7 = vweird.f32 %v1460_v56 }
 0x86e   : > { %v1457_v57 = vpop.xlane.xlu1 %1456 }
 0x86f   : > { %v1459_v58 = vmul.f32 %v1457_v57, %v2979_v7 }
 0x870   : > { %v2613_v53 = vpop.eup %2612 }
 0x871   : > { %v1463_v59 = vmul.f32 %v2613_v53, %v1460_v56  ;;  %v1461_v60 = vadd.f32 1e-05, %v1459_v58  ;;  %vm1469_vm6 = vweird.f32 %v2613_v53 }
 0x872   : > { %vm1470_vm8 = vmor %vm1468_vm7, %vm1469_vm6  ;;  %vm1513_vm6 = vcmp.eq.s32.totalorder %v2850_v24, %v1511_v17 }
 0x873   : > { %v1464_v50 = vmul.f32 %v2613_v53, %v1463_v59  ;;  %2614 = vrsqrt.f32 %v1461_v60  ;;  %vm1478_vm10 = vweird.f32 %v1461_v60  ;;  %vm1518_vm7 = vmand %vm1515_vm4, %vm1516_vm5 }
 0x875   : > { %v1465_v61 = vmul.f32 0.5, %v1464_v50 }
 0x877   : > { %v1466_v62 = vsub.f32 1.5, %v1465_v61 }
 0x879   : > { %v2615_v63 = vpop.eup %2614  ;;  %v1467_v51 = vmul.f32 %v2613_v53, %v1466_v62 }
 0x87a   : > { %v1473_v1 = vmul.f32 %v2615_v63, %v1461_v60  ;;  %vm1479_vm9 = vweird.f32 %v2615_v63 }
 0x87b   : > { %v1471_v3 = vsel %vm1470_vm8, %v2613_v53, %v1467_v51  ;;  %vm1480_vm14 = vmor %vm1478_vm10, %vm1479_vm9  ;;  %vm1500_vm8 = vcmp.eq.s32.totalorder %v2850_v24, %v2455_v23  ;;  %v2493_v23 = vld [vmem:[%s3356_s23 + $0x30] sm:$0xff] }
 0x87c   : > { %v1482_v4 = vmul.f32 %v1471_v3, %v1448_v34  ;;  %v1474_v2 = vmul.f32 %v2615_v63, %v1473_v1  ;;  %vm1520_vm9 = vmor %vm1513_vm6, %vm1518_vm7  ;;  %v1509_v25 = vsel %vm1500_vm8, 1.0, %v2652_v35  ;;  %v2468_v34 = vld [vmem:[%s3329_s19 + $0x40] sm:$0xff] }
 0x87d   : > { %v1522_v26 = vsel %vm1520_vm9, 1.0, %v2652_v35 }
 0x87e   : > { %v1487_v18 = vmul.f32 %v2555_v0, %v1482_v4  ;;  %v1475_v8 = vmul.f32 0.5, %v1474_v2  ;;  %v2484_v4 = vld [vmem:[%s3353_s27 + $0x38] sm:$0xff]  ;;  %v2483_v2 = vld [vmem:[%s3353_s27 + $0x30] sm:$0xff] }
 0x880   : > { %v1476_v9 = vsub.f32 1.5, %v1475_v8  ;;  %v1492_v10 = vadd.f32 %v2556_v5, %v1487_v18 }
 0x882   : > { %v1477_v11 = vmul.f32 %v2615_v63, %v1476_v9  ;;  %2464 = vmatmul.msk.f32.vlgmr.msra.gmra.mxu1 %vm810_vm2, %v1492_v10 }
 0x884   : > { %v1481_v12 = vsel %vm1480_vm14, %v2615_v63, %v1477_v11 }
 0x885   : > { %v1483_v13 = vmul.f32 %v1481_v12, %v1449_v44 }
 0x887   : > { %v1488_v14 = vmul.f32 %v2555_v0, %v1483_v13 }
 0x889   : > { %v1493_v16 = vadd.f32 %v2556_v5, %v1488_v14  ;;  %v2482_v5 = vld [vmem:[%s3353_s27 + $0x28] sm:$0xff] }
 0x88b   : > { %1543 = vmatpush.msrb.mxu3 %v1493_v16  ;;  %1572 = vmatpush.msra.mxu0 %v1493_v16 }
 0x88c   : > { %2465 = vmatmul.msk.f32.gmra.mxu1 %vm810_vm2, %v1493_v16 }
 0x88d   : > { %1544 = vmatpush.msrb.mxu3 %v1492_v10  ;;  %1573 = vmatpush.msra.mxu0 %v1492_v10  ;;  %v1764_v10 = vmul.u32 2, %v3054_v6  ;;  %v2488_v6 = vld [vmem:[%s3354_s29 + $0x30] sm:$0xff] }
 0x88e   : > { %2456 = vmatmul.msk.f32.vlgmr.msrb.gmra.mxu3 %vm931_vm13, %v3072_v19  ;;  %2458 = vmatmul.msk.f32.vlgmr.msra.gmra.mxu0 %vm931_vm13, %v3075_v20 }
 0x88f   : > { %1671 = vmatpush.msra.mxu3 %v2471_v29  ;;  %vm1765_vm14 = vcmp.eq.s32.totalorder %v2850_v24, %v1764_v10  ;;  %v2487_v24 = vld [vmem:[%s3354_s29 + $0x28] sm:$0xff]  ;;  %v2559_v29 = vld [vmem:[%s3359_s0 + $0x1] ss:$0 sm:$0xff] }
 0x890   : > { %v1766_v17 = vsel %vm1765_vm14, 1.0, %v2652_v35  ;;  %v2481_v35 = vld [vmem:[%s3353_s27 + $0x20] sm:$0xff] }
 0x891   : > { %1672 = vmatpush.msra.mxu3 %v2470_v30 }
 0x893   : > { %1673 = vmatpush.msra.mxu3 %v2469_v33 }
 0x895   : > { %1674 = vmatpush.msra.mxu3 %v2468_v34 }
 0x896   : > { %2457 = vmatmul.msk.f32.gmra.mxu3 %vm931_vm13, %v1509_v25  ;;  %2459 = vmatmul.msk.f32.gmra.mxu0 %vm931_vm13, %v1522_v26 }
 0x897   : > { %1836 = vmatpush.msrb.mxu3 %v2484_v4 }
 0x899   : > { %1837 = vmatpush.msrb.mxu3 %v2483_v2 }
 0x89b   : > { %1838 = vmatpush.msrb.mxu3 %v2482_v5 }
 0x89d   : > { %1839 = vmatpush.msrb.mxu3 %v2481_v35 }
 0x8ff   : > { %v1613_v44 = vpop.f32.mrf.mxu1 }
 0x909   : > { %v1616_v54 = vpop.f32.mrf.mxu1 }
 0x90b   : > { %v1575_v38 = vpop.f32.mrf.mxu0 }
 0x90c   : > { %2472 = vmatmul.msk.f32.vlgmr.msra.gmra.mxu3 %vm810_vm2, %v1575_v38 }
 0x911   : > { %v1546_v39 = vpop.f32.mrf.mxu3 }
 0x912   : > { %2466 = vmatmul.msk.f32.vlgmr.msra.gmra.mxu2 %vm810_vm2, %v1546_v39  ;;  %v2560_v39 = vld [vmem:[%s3318_s8 + $0x1] ss:$0 sm:$0xff] }
 0x913   : > { %v1578_v41 = vpop.f32.mrf.mxu0 }
 0x914   : > { %2473 = vmatmul.msk.f32.gmra.mxu3 %vm810_vm2, %v1578_v41 }
 0x919   : > { %v1549_v43 = vpop.f32.mrf.mxu3 }
 0x91a   : > { %2467 = vmatmul.msk.f32.gmra.mxu2 %vm810_vm2, %v1549_v43 }
 0x98f   : > { %v1676_v46 = vpop.f32.mrf.mxu3 }
 0x995   : > { %v1642_v47 = vpop.f32.mrf.mxu2 }
 0x996   : > { %v1643_v48 = vadd.f32 %v1642_v47, %v1613_v44 }
 0x997   : > { %v1679_v56 = vpop.f32.mrf.mxu3 }
 0x998   : > { %v1682_v40 = vadd.f32 %v1676_v46, %v1643_v48 }
 0x99a   : > { %v1688_v52 = vadd.f32 %v2557_v49, %v1682_v40 }
 0x99c   : > { %v1692_v57 = vmin.f32 %v1688_v52, 0.0  ;;  %vm1690_vm12 = vcmp.gt.f32.partialorder %v1688_v52, 0.0 }
 0x99d   : > { %v1645_v55 = vpop.f32.mrf.mxu2 }
 0x99e   : > { %v1646_v58 = vadd.f32 %v1645_v55, %v1616_v54  ;;  %v1694_v59 = vmul.f32 1.442695, %v1692_v57 }
 0x9a0   : > { %v1683_v53 = vadd.f32 %v1679_v56, %v1646_v58  ;;  %2616 = vpow2.f32 %v1694_v59 }
 0x9a2   : > { %v1689_v60 = vadd.f32 %v2557_v49, %v1683_v53 }
 0x9a4   : > { %v1693_v50 = vmin.f32 %v1689_v60, 0.0  ;;  %vm1691_vm10 = vcmp.gt.f32.partialorder %v1689_v60, 0.0 }
 0x9a6   : > { %v1696_v61 = vmul.f32 1.442695, %v1693_v50  ;;  %v2617_v62 = vpop.eup %2616 }
 0x9a7   : > { %v2474_v0 = vadd.f32 -1.0, %v2617_v62 }
 0x9a8   : > { %2618 = vpow2.f32 %v1696_v61 }
 0x9a9   : > { %v1700_v3 = vsel %vm1690_vm12, %v1688_v52, %v2474_v0 }
 0x9ae   : > { %v2619_v63 = vpop.eup %2618 }
 0x9af   : > { %v2475_v51 = vadd.f32 -1.0, %v2619_v63 }
 0x9b1   : > { %v1701_v1 = vsel %vm1691_vm10, %v1689_v60, %v2475_v51 }
 0x9b2   : > { %1716 = vmatpush.msrb.mxu0 %v1701_v1  ;;  %1745 = vmatpush.msrb.mxu1 %v1701_v1 }
 0x9b4   : > { %1717 = vmatpush.msrb.mxu0 %v1700_v3  ;;  %1746 = vmatpush.msrb.mxu1 %v1700_v3 }
 0x9b5   : > { %2476 = vmatmul.msk.f32.vlgmr.msrb.gmra.mxu0 %vm931_vm13, %v3072_v19  ;;  %2478 = vmatmul.msk.f32.vlgmr.msrb.gmra.mxu1 %vm931_vm13, %v3075_v20  ;;  %v2489_v19 = vld [vmem:[%s3354_s29 + $0x38] sm:$0xff] }
 0x9b6   : > { %v2494_v20 = vld [vmem:[%s3356_s23 + $0x38] sm:$0xff] }
 0x9b7   : > { %1882 = vmatpush.msra.mxu3 %v2494_v20 }
 0x9b9   : > { %1883 = vmatpush.msra.mxu3 %v2493_v23  ;;  %v2499_v23 = vld [vmem:[%s3319_s9 + $0x38] sm:$0xff] }
 0x9bd   : > { %2477 = vmatmul.msk.f32.gmra.mxu0 %vm931_vm13, %v1509_v25  ;;  %2479 = vmatmul.msk.f32.gmra.mxu1 %vm931_vm13, %v1522_v26  ;;  %v2492_v25 = vld [vmem:[%s3356_s23 + $0x28] sm:$0xff]  ;;  %v2491_v26 = vld [vmem:[%s3356_s23 + $0x20] sm:$0xff] }
 0x9be   : > { %1884 = vmatpush.msra.mxu3 %v2492_v25  ;;  %v2498_v25 = vld [vmem:[%s3319_s9 + $0x30] sm:$0xff] }
 0x9c0   : > { %1885 = vmatpush.msra.mxu3 %v2491_v26 }
 0xa32   : > { %v1719_v18 = vpop.f32.mrf.mxu0  ;;  %v1748_v8 = vpop.f32.mrf.mxu1 }
 0xa33   : > { %v1729_v9 = vsel %vm1501_vm11, -1e+30, %v1719_v18 }
 0xa34   : > { %v1760_v12 = vmax.f32 %v1729_v9, %v1700_v3 }
 0xa36   : > { %v1762_v16 = vmax.f32 %v1760_v12, %v1748_v8 }
 0xa3a   : > { %v1722_v21 = vpop.f32.mrf.mxu0  ;;  %v1751_v11 = vpop.f32.mrf.mxu1 }
 0xa3b   : > { %v1761_v22 = vmax.f32 %v1722_v21, %v1701_v1  ;;  %v1759_v13 = vsel %vm1515_vm4, -1e+30, %v1751_v11 }
 0xa3d   : > { %v1763_v14 = vmax.f32 %v1761_v22, %v1759_v13 }
 0xa3f   : > { %1784 = vmatpush.msrb.mxu2 %v1763_v14 }
 0xa41   : > { %1785 = vmatpush.msrb.mxu2 %v1762_v16 }
 0xa42   : > { %2480 = vmatmul.msk.f32.vlgmr.msrb.gmra.mxu2 %vm931_vm13, %v1766_v17  ;;  %vm1918_vm13 = vcmask 64512  }
 0xa43   : > { %1859 = vmatpush.msra.mxu2 %v2489_v19 }
 0xa45   : > { %1860 = vmatpush.msra.mxu2 %v2488_v6 }
 0xa47   : > { %1861 = vmatpush.msra.mxu2 %v2487_v24 }
 0xa49   : > { %1862 = vmatpush.msra.mxu2 %v2486_v15 }
 0xac5   : > { %v3172_v27 = vpop.f32.mrf.mxu2 }
 0xac6   : > { %2501 = vmatmul.msk.f32.vlgmr.msrb.gmra.mxu3 %vm810_vm2, %v3172_v27  ;;  %2502 = vmatmul.msk.f32.vlgmr.msra.gmra.mxu2 %vm810_vm2, %v3172_v27 }
 0xace   : > { %2503 = vmatmul.msk.f32.vlgmr.msra.gmra.mxu3 %vm810_vm2, %v3172_v27 }
 0xb49   : > { %v1841_v30 = vpop.f32.mrf.mxu3  ;;  %v1864_v31 = vpop.f32.mrf.mxu2 }
 0xb4a   : > { %v3186_v32 = vadd.f32 %v2558_v28, %v1841_v30  ;;  %v1865_v33 = vadd.f32 %v2559_v29, %v1864_v31  ;;  %v2497_v30 = vld [vmem:[%s3319_s9 + $0x28] sm:$0xff]  ;;  %v2496_v31 = vld [vmem:[%s3319_s9 + $0x20] sm:$0xff] }
 0xb4c   : > { %v1890_v34 = vmul.f32 %v3186_v32, %v2874_v37  ;;  %v1931_v38 = vmul.f32 %v3186_v32, %v2871_v36  ;;  %2504 = vmatpush.xpose.msk.msra.mxu0 %vm810_vm2, %v1865_v33  ;;  %2506 = vmatpush.xpose.msk.msra.mxu1 %vm810_vm2, %v1865_v33  ;;  %v2014_v49 = vmul.f32 %v3186_v32, %v2881_v42 }
 0xb4d   : > { %v2075_v21 = vmul.f32 %v3186_v32, %v2886_v45 }
 0xb4f   : > { %2505 = vmatmul.msk.f32.vlgmr.msra.gmra.mxu0 %vm810_vm2, %v1890_v34  ;;  %2507 = vmatmul.msk.f32.vlgmr.msra.gmra.mxu1 %vm810_vm2, %v1931_v38 }
 0xb50   : > { %2510 = vmatpush.xpose.msk.msrb.mxu0 %vm810_vm2, %v1865_v33 }
 0xb51   : > { %v1887_v41 = vpop.f32.mrf.mxu3 }
 0xb52   : > { %v1888_v43 = vadd.f32 %v2560_v39, %v1887_v41 }
 0xb54   : > { %v1967_v44 = vmul.f32 %v1888_v43, %v2871_v36  ;;  %v1930_v46 = vmul.f32 %v1888_v43, %v2874_v37  ;;  %v2050_v47 = vmul.f32 %v1888_v43, %v2881_v42  ;;  %v2111_v48 = vmul.f32 %v1888_v43, %v2886_v45  ;;  %2154 = vmatpush.msra.mxu0 %v2499_v23  ;;  %v2561_v43 = vld [vmem:[%s3320_s10 + $0x1] ss:$0 sm:$0xff] }
 0xb56   : > { %1986 = vmatpush.msrb.mxu2 %v1967_v44  ;;  %2009 = vmatpush.msrb.mxu3 %v1930_v46 }
 0xb57   : > { %2069 = vmatpush.msrb.mxu1 %v2050_v47  ;;  %2511 = vmatmul.msk.f32.vlgmr.msrb.gmra.mxu0 %vm810_vm2, %v2014_v49 }
 0xb58   : > { %2513 = vmatpush.xpose.msk.msra.mxu2 %vm810_vm2, %v1865_v33  ;;  %2130 = vmatpush.msra.mxu3 %v2111_v48 }
 0xb59   : > { %2155 = vmatpush.msra.mxu0 %v2498_v25 }
 0xb5b   : > { %2156 = vmatpush.msra.mxu0 %v2497_v30 }
 0xb5d   : > { %2157 = vmatpush.msra.mxu0 %v2496_v31 }
 0xbcc   : > { %v1914_v40 = vpop.f32.mrf.mxu0  ;;  %v1952_v52 = vpop.f32.mrf.mxu1 }
 0xbcd   : > { %v1917_v36 = vmul.f32 0.35355338, %v1914_v40  ;;  %v1955_v37 = vmul.f32 0.35355338, %v1952_v52 }
 0xbcf   : > { %v1919_v54 = vsel %vm1918_vm13, %v1917_v36, -inf  ;;  %v1956_v55 = vsel %vm1918_vm13, %v1955_v37, -inf }
 0xbd0   : > { %1920 = vmax.xlane.f32.xlu2 %v1919_v54  ;;  %1957 = vmax.xlane.f32.xlu0 %v1956_v55  ;;  %v2522_v54 = vld [vmem:[%s3323_s13 + $0x38] sm:$0xff]  ;;  %v2520_v55 = vld [vmem:[%s3323_s13 + $0x28] sm:$0xff] }
 0xbd1   : > { %2222 = vmatpush.msra.mxu1 %v2522_v54 }
 0xbd4   : > { %v2035_v63 = vpop.f32.mrf.mxu0 }
 0xbd5   : > { %v2038_v51 = vmul.f32 0.35355338, %v2035_v63  ;;  %v2562_v63 = vld [vmem:[%s3321_s11 + $0x1] ss:$0 sm:$0xff] }
 0xbd7   : > { %v2039_v0 = vsel %vm1918_vm13, %v2038_v51, -inf }
 0xc43   : > { %v1921_v42 = vpop.xlane.xlu2 %1920  ;;  %v1958_v56 = vpop.xlane.xlu0 %1957 }
 0xc44   : > { %v1922_v57 = vsub.f32 %v1917_v36, %v1921_v42  ;;  %v1959_v58 = vsub.f32 %v1955_v37, %v1958_v56  ;;  %v2519_v42 = vld [vmem:[%s3323_s13 + $0x20] sm:$0xff] }
 0xc46   : > { %v1923_v53 = vmul.f32 1.442695, %v1922_v57  ;;  %v1960_v59 = vmul.f32 1.442695, %v1959_v58 }
 0xc48   : > { %2620 = vpow2.f32 %v1923_v53 }
 0xc49   : > { %2622 = vpow2.f32 %v1960_v59 }
 0xc4e   : > { %v2621_v60 = vpop.eup %2620 }
 0xc4f   : > { %v2623_v50 = vpop.eup %2622  ;;  %v1925_v61 = vsel %vm1918_vm13, %v2621_v60, 0.0 }
 0xc50   : > { %v1962_v62 = vsel %vm1918_vm13, %v2623_v50, 0.0  ;;  %1926 = vadd.xlane.f32.xlu2 %v1925_v61 }
 0xc51   : > { %1963 = vadd.xlane.f32.xlu1 %v1962_v62 }
 0xc59   : > { %2040 = vmax.xlane.f32.xlu1 %v2039_v0 }
 0xcc3   : > { %v1927_v1 = vpop.xlane.xlu2 %1926 }
 0xcc4   : > { %v1964_v3 = vpop.xlane.xlu1 %1963  ;;  %2624 = vrcp.f32 %v1927_v1  ;;  %v2563_v1 = vld [vmem:[%s3322_s12 + $0x1] ss:$0 sm:$0xff] }
 0xcc5   : > { %2626 = vrcp.f32 %v1964_v3 }
 0xcca   : > { %v2625_v4 = vpop.eup %2624 }
 0xccb   : > { %v2627_v2 = vpop.eup %2626  ;;  %v1929_v5 = vmul.f32 %v2625_v4, %v2621_v60 }
 0xccc   : > { %v1966_v18 = vmul.f32 %v2627_v2, %v2623_v50  ;;  %v2041_v8 = vpop.xlane.xlu1 %2040  ;;  %v2528_v2 = vld [vmem:[%s3325_s15 + $0x38] sm:$0xff] }
 0xccd   : > { %v2042_v9 = vsub.f32 %v2038_v51, %v2041_v8  ;;  %2509 = vmatmul.msk.f32.vlgmr.msrb.gmra.mxu3 %vm1918_vm13, %v1929_v5  ;;  %v2527_v5 = vld [vmem:[%s3325_s15 + $0x30] sm:$0xff]  ;;  %v2525_v8 = vld [vmem:[%s3325_s15 + $0x20] sm:$0xff] }
 0xcce   : > { %2508 = vmatmul.msk.f32.vlgmr.msrb.gmra.mxu2 %vm1918_vm13, %v1966_v18  ;;  %v2526_v18 = vld [vmem:[%s3325_s15 + $0x28] sm:$0xff] }
 0xccf   : > { %v2043_v10 = vmul.f32 1.442695, %v2042_v9  ;;  %2264 = vmatpush.msrb.mxu2 %v2528_v2  ;;  %v2564_v9 = vld [vmem:[%s3324_s14 + $0x1] ss:$0 sm:$0xff] }
 0xcd1   : > { %2628 = vpow2.f32 %v2043_v10  ;;  %2265 = vmatpush.msrb.mxu2 %v2527_v5 }
 0xcd3   : > { %2266 = vmatpush.msrb.mxu2 %v2526_v18 }
 0xcd5   : > { %2267 = vmatpush.msrb.mxu2 %v2525_v8 }
 0xcd6   : > { %2514 = vmatmul.msk.f32.vlgmr.msra.gmra.mxu2 %vm810_vm2, %v2075_v21 }
 0xcd7   : > { %v2629_v11 = vpop.eup %2628 }
 0xcd8   : > { %v2045_v12 = vsel %vm1918_vm13, %v2629_v11, 0.0 }
 0xcd9   : > { %2046 = vadd.xlane.f32.xlu1 %v2045_v12 }
 0xd4c   : > { %v2047_v22 = vpop.xlane.xlu1 %2046 }
 0xd4d   : > { %2630 = vrcp.f32 %v2047_v22 }
 0xd50   : > { %v2011_v32 = vpop.f32.mrf.mxu3 }
 0xd51   : > { %v1988_v13 = vpop.f32.mrf.mxu2 }
 0xd52   : > { %v2012_v34 = vadd.f32 %v2011_v32, %v1988_v13 }
 0xd53   : > { %v2631_v14 = vpop.eup %2630 }
 0xd54   : > { %v2049_v16 = vmul.f32 %v2631_v14, %v2629_v11 }
 0xd56   : > { %2512 = vmatmul.msk.f32.vlgmr.msrb.gmra.mxu1 %vm1918_vm13, %v2049_v16 }
 0xd59   : > { %v2096_v17 = vpop.f32.mrf.mxu2 }
 0xd5a   : > { %v2099_v19 = vmul.f32 0.35355338, %v2096_v17 }
 0xd5c   : > { %v2100_v6 = vsel %vm1918_vm13, %v2099_v19, -inf }
 0xd5d   : > { %2101 = vmax.xlane.f32.xlu0 %v2100_v6 }
 0xdd0   : > { %v2102_v24 = vpop.xlane.xlu0 %2101 }
 0xdd1   : > { %v2103_v45 = vsub.f32 %v2099_v19, %v2102_v24  ;;  %v2565_v24 = vld [vmem:[%s3326_s16 + $0x1] ss:$0 sm:$0xff] }
 0xdd3   : > { %v2104_v35 = vmul.f32 1.442695, %v2103_v45  ;;  %v2071_v33 = vpop.f32.mrf.mxu1 }
 0xdd4   : > { %v2074_v38 = vadd.f32 %v2071_v33, %v2012_v34 }
 0xdd5   : > { %2632 = vpow2.f32 %v2104_v35 }
 0xddb   : > { %v2633_v15 = vpop.eup %2632 }
 0xddc   : > { %v2106_v20 = vsel %vm1918_vm13, %v2633_v15, 0.0 }
 0xddd   : > { %2107 = vadd.xlane.f32.xlu0 %v2106_v20 }
 0xe50   : > { %v2108_v26 = vpop.xlane.xlu0 %2107 }
 0xe51   : > { %2634 = vrcp.f32 %v2108_v26 }
 0xe57   : > { %v2635_v28 = vpop.eup %2634 }
 0xe58   : > { %v2110_v29 = vmul.f32 %v2635_v28, %v2633_v15 }
 0xe5a   : > { %2515 = vmatmul.msk.f32.vlgmr.msra.gmra.mxu3 %vm1918_vm13, %v2110_v29 }
 0xedd   : > { %v2132_v39 = vpop.f32.mrf.mxu3 }
 0xede   : > { %v2135_v41 = vadd.f32 %v2132_v39, %v2074_v38 }
 0xee0   : > { %2516 = vmatmul.msk.f32.vlgmr.msra.gmra.mxu0 %vm810_vm2, %v2135_v41 }
 0xf5d   : > { %v2159_v44 = vpop.f32.mrf.mxu0 }
 0xf5e   : > { %v2160_v46 = vadd.f32 %v2561_v43, %v2159_v44  ;;  %v2566_v44 = vld [vmem:[%s3327_s17 + $0x1] ss:$0 sm:$0xff] }
 0xf60   : > { %v2162_v47 = vadd.f32 %v2160_v46, %v3172_v27  ;;  %v2521_v27 = vld [vmem:[%s3323_s13 + $0x30] sm:$0xff] }
 0xf61   : > { %2223 = vmatpush.msra.mxu1 %v2521_v27 }
 0xf62   : > { %v2167_v48 = vsel %vm810_vm2, %v2162_v47, 0.0 }
 0xf63   : > { %2168 = vadd.xlane.f32.xlu2 %v2167_v48  ;;  %2224 = vmatpush.msra.mxu1 %v2520_v55  ;;  %v2567_v48 = vld [vmem:[%s3328_s18 + $0x1] ss:$0 sm:$0xff] }
 0xf65   : > { %2225 = vmatpush.msra.mxu1 %v2519_v42 }
 0xfd6   : > { %v2169_v49 = vpop.xlane.xlu2 %2168 }
 0xfd7   : > { %v2170_v40 = vmul.f32 %v2169_v49, %v2979_v7 }
 0xfd9   : > { %v2171_v36 = vsub.f32 %v2162_v47, %v2170_v40 }
 0xfdb   : > { %v2172_v52 = vmul.f32 %v2171_v36, %v2171_v36 }
 0xfdd   : > { %v2173_v37 = vsel %vm810_vm2, %v2172_v52, 0.0 }
 0xfde   : > { %2174 = vadd.xlane.f32.xlu0 %v2173_v37 }
0x1051   : > { %v2175_v56 = vpop.xlane.xlu0 %2174 }
0x1052   : > { %v2176_v57 = vmul.f32 %v2175_v56, %v2979_v7 }
0x1054   : > { %v2177_v58 = vadd.f32 1e-05, %v2176_v57 }
0x1056   : > { %2636 = vrsqrt.f32 %v2177_v58  ;;  %vm2184_vm15 = vweird.f32 %v2177_v58 }
0x105c   : > { %v2637_v53 = vpop.eup %2636 }
0x105d   : > { %v2179_v59 = vmul.f32 %v2637_v53, %v2177_v58  ;;  %vm2185_vm11 = vweird.f32 %v2637_v53 }
0x105e   : > { %vm2186_vm0 = vmor %vm2184_vm15, %vm2185_vm11 }
0x105f   : > { %v2180_v60 = vmul.f32 %v2637_v53, %v2179_v59 }
0x1061   : > { %v2181_v50 = vmul.f32 0.5, %v2180_v60 }
0x1063   : > { %v2182_v61 = vsub.f32 1.5, %v2181_v50 }
0x1065   : > { %v2183_v62 = vmul.f32 %v2637_v53, %v2182_v61 }
0x1067   : > { %v2187_v51 = vsel %vm2186_vm0, %v2637_v53, %v2183_v62  ;;  %v2568_v62 = vld [vmem:[%s3331_s21] ss:$0 sm:$0xff] }
0x1068   : > { %v2188_v0 = vmul.f32 %v2187_v51, %v2171_v36 }
0x106a   : > { %v2192_v3 = vmul.f32 %v2562_v63, %v2188_v0 }
0x106c   : > { %v2196_v4 = vadd.f32 %v2563_v1, %v2192_v3 }
0x106e   : > { %2524 = vmatmul.msk.f32.vlgmr.msra.gmra.mxu1 %vm810_vm2, %v2196_v4 }
0x10eb   : > { %v2227_v10 = vpop.f32.mrf.mxu1 }
0x10ec   : > { %v2228_v21 = vadd.f32 %v2564_v9, %v2227_v10 }
0x10ee   : > { %v2230_v11 = vmul.f32 %v2228_v21, %v2228_v21 }
0x10f0   : > { %v2231_v12 = vmul.f32 %v2230_v11, %v2228_v21 }
0x10f2   : > { %v2232_v22 = vmul.f32 0.044715, %v2231_v12 }
0x10f4   : > { %v2233_v13 = vadd.f32 %v2232_v22, %v2228_v21 }
0x10f6   : > { %v2234_v14 = vmul.f32 0.7978846, %v2233_v13 }
0x10f8   : > { %2638 = vtanh.f32 %v2234_v14 }
0x10fe   : > { %v2639_v16 = vpop.eup %2638 }
0x10ff   : > { %v2236_v17 = vadd.f32 1.0, %v2639_v16 }
0x1101   : > { %v2237_v19 = vmul.f32 0.5, %v2236_v17 }
0x1103   : > { %v2238_v6 = vmul.f32 %v2237_v19, %v2228_v21 }
0x1105   : > { %2530 = vmatmul.msk.f32.vlgmr.msrb.gmra.mxu2 %vm810_vm2, %v2238_v6 }
0x1188   : > { %v2269_v45 = vpop.f32.mrf.mxu2 }
0x1189   : > { %v2270_v35 = vadd.f32 %v2565_v24, %v2269_v45 }
0x118b   : > { %v2272_v15 = vadd.f32 %v2270_v35, %v2196_v4 }
0x118d   : > { %v2277_v20 = vsel %vm810_vm2, %v2272_v15, 0.0 }
0x118e   : > { %2278 = vadd.xlane.f32.xlu1 %v2277_v20 }
0x1201   : > { %v2279_v23 = vpop.xlane.xlu1 %2278 }
0x1202   : > { %v2280_v25 = vmul.f32 %v2279_v23, %v2979_v7 }
0x1204   : > { %v2281_v26 = vsub.f32 %v2272_v15, %v2280_v25 }
0x1206   : > { %v2282_v28 = vmul.f32 %v2281_v26, %v2281_v26 }
0x1208   : > { %v2283_v29 = vsel %vm810_vm2, %v2282_v28, 0.0 }
0x1209   : > { %2284 = vadd.xlane.f32.xlu2 %v2283_v29 }
0x127c   : > { %v2285_v30 = vpop.xlane.xlu2 %2284 }
0x127d   : > { %v2286_v31 = vmul.f32 %v2285_v30, %v2979_v7 }
0x127f   : > { %v2287_v32 = vadd.f32 1e-05, %v2286_v31 }
0x1281   : > { %2640 = vrsqrt.f32 %v2287_v32  ;;  %vm2294_vm3 = vweird.f32 %v2287_v32 }
0x1287   : > { %v2641_v33 = vpop.eup %2640 }
0x1288   : > { %v2289_v34 = vmul.f32 %v2641_v33, %v2287_v32  ;;  %vm2295_vm1 = vweird.f32 %v2641_v33 }
0x1289   : > { %vm2296_vm4 = vmor %vm2294_vm3, %vm2295_vm1 }
0x128a   : > { %v2290_v38 = vmul.f32 %v2641_v33, %v2289_v34 }
0x128c   : > { %v2291_v39 = vmul.f32 0.5, %v2290_v38 }
0x128e   : > { %v2292_v41 = vsub.f32 1.5, %v2291_v39 }
0x1290   : > { %v2293_v43 = vmul.f32 %v2641_v33, %v2292_v41 }
0x1292   : > { %v2297_v46 = vsel %vm2296_vm4, %v2641_v33, %v2293_v43 }
0x1293   : > { %v2298_v47 = vmul.f32 %v2297_v46, %v2281_v26 }
0x1295   : > { %v2302_v49 = vmul.f32 %v2566_v44, %v2298_v47 }
0x1297   : > { %v2306_v40 = vadd.f32 %v2567_v48, %v2302_v49 }
0x1299   : > { %v2309_v36 = vsel %vm810_vm2, %v2306_v40, 0.0 }
0x129a   : > { %2310 = vadd.xlane.f32.xlu0 %v2309_v36 }
0x130d   : > { %v2311_v52 = vpop.xlane.xlu0 %2310 }
0x130e   : > { %v2312_v37 = vmul.f32 %v2311_v52, %v2979_v7 }
0x1310   : > { %v2313_v54 = vsub.f32 %v2306_v40, %v2312_v37 }
0x1312   : > { %v2314_v27 = vmul.f32 %v2313_v54, %v2313_v54 }
0x1314   : > { %v2315_v55 = vsel %vm810_vm2, %v2314_v27, 0.0 }
0x1315   : > { %2316 = vadd.xlane.f32.xlu1 %v2315_v55 }
0x1388   : > { %v2317_v42 = vpop.xlane.xlu1 %2316 }
0x1389   : > { %v2318_v56 = vmul.f32 %v2317_v42, %v2979_v7  ;;  %v2569_v7 = vld [vmem:[%s3332_s22] ss:$0 sm:$0xff] }
0x138b   : > { %v2319_v57 = vadd.f32 1e-05, %v2318_v56 }
0x138d   : > { %2642 = vrsqrt.f32 %v2319_v57  ;;  %vm2326_vm6 = vweird.f32 %v2319_v57 }
0x1393   : > { %v2643_v58 = vpop.eup %2642 }
0x1394   : > { %v2321_v53 = vmul.f32 %v2643_v58, %v2319_v57  ;;  %vm2327_vm5 = vweird.f32 %v2643_v58 }
0x1395   : > { %vm2328_vm7 = vmor %vm2326_vm6, %vm2327_vm5 }
0x1396   : > { %v2322_v59 = vmul.f32 %v2643_v58, %v2321_v53 }
0x1398   : > { %v2323_v60 = vmul.f32 0.5, %v2322_v59 }
0x139a   : > { %v2324_v50 = vsub.f32 1.5, %v2323_v60 }
0x139c   : > { %v2325_v61 = vmul.f32 %v2643_v58, %v2324_v50 }
0x139e   : > { %v2329_v63 = vsel %vm2328_vm7, %v2643_v58, %v2325_v61 }
0x139f   : > { %v2330_v51 = vmul.f32 %v2329_v63, %v2313_v54 }
0x13a1   : > { %v2334_v0 = vmul.f32 %v2568_v62, %v2330_v51 }
0x13a3   : > { %v2338_v1 = vadd.f32 %v2569_v7, %v2334_v0 }
0x13a5   : > { %2339 = vst.msk [vmem:[%s728_s6] sm:$0xff] %vm810_vm2, %v2338_v1 }
0x13a6 PF: > { %s3362_s4 = sld [smem:[#allocation2_spill]] }
0x13ac   : > { %s33_s4 = sadd.s32 1, %s3362_s4  }
0x13ad   : > { %p30_p4 = scmp.ge.s32.totalorder %s33_s4, 4  }
0x13af   :  { %32 = sbr.rel (!%p30_p4) target bundleno = 10 (0xa), region = 163 }

// kernel: informer_forward.3
= control target key start
LH: loop header
LB: loop body
LE: loop exit
PB: predicated region body
PF: predicated region fallthrough
CT: control target
= control target key end

     0   :  { %s3622_s6 = smov 1   ;;  %s3623_s10 = smov 2   ;;  %s4398_s0 = inlined_call_operand.smem [shape: u32[35], index: -1, kind: input, shape index: {}] }
   0x1   :  { %s3667_s5 = sld [smem:[%s4398_s0]]   ;;  %s3624_s14 = smov 3  }
   0x2   :  { %s3672_s9 = sld [smem:[%s4398_s0 + %s3622_s6]]   ;;  %s3625_s18 = smov 4  }
   0x3   :  { %s3677_s13 = sld [smem:[%s4398_s0 + %s3623_s10]]   ;;  %s3626_s22 = smov 5  }
   0x4   :  { %s3682_s17 = sld [smem:[%s4398_s0 + %s3624_s14]]   ;;  %s3627_s26 = smov 6  }
   0x5   :  { %s3687_s21 = sld [smem:[%s4398_s0 + %s3625_s18]]   ;;  %s3628_s30 = smov 7  }
   0x6   :  { %s3692_s25 = sld [smem:[%s4398_s0 + %s3626_s22]]   ;;  %s3629_s4 = smov 8  }
   0x7   :  { %s3697_s29 = sld [smem:[%s4398_s0 + %s3627_s26]]   ;;  %s3630_s10 = smov 9  }
   0x8   :  { %s3702_s3 = sld [smem:[%s4398_s0 + %s3628_s30]]   ;;  %s3631_s15 = smov 10  }
   0x9   :  { %s3707_s8 = sld [smem:[%s4398_s0 + %s3629_s4]]   ;;  %s3632_s20 = smov 11  }
   0xa   :  { %s3712_s14 = sld [smem:[%s4398_s0 + %s3630_s10]]   ;;  %s3633_s26 = smov 12  }
   0xb   :  { %s3717_s19 = sld [smem:[%s4398_s0 + %s3631_s15]]   ;;  %s3634_s1 = smov 13  }
   0xc   :  { %s3722_s24 = sld [smem:[%s4398_s0 + %s3632_s20]]   ;;  %s3635_s7 = smov 14  }
   0xd   :  { %s3727_s30 = sld [smem:[%s4398_s0 + %s3633_s26]]   ;;  %s3636_s15 = smov 15  }
   0xe   :  { %s3732_s6 = sld [smem:[%s4398_s0 + %s3634_s1]]   ;;  %s3637_s22 = smov 16  }
   0xf   :  { %s3737_s12 = sld [smem:[%s4398_s0 + %s3635_s7]]   ;;  %s3638_s28 = smov 17  }
  0x10   :  { %s3742_s20 = sld [smem:[%s4398_s0 + %s3636_s15]]   ;;  %s3639_s7 = smov 18  }
  0x11   :  { %s3747_s27 = sld [smem:[%s4398_s0 + %s3637_s22]]   ;;  %s3640_s15 = smov 19  }
  0x12   :  { %s3752_s4 = sld [smem:[%s4398_s0 + %s3638_s28]]   ;;  %s3641_s22 = smov 20  }
  0x13   :  { %4403 = sst [smem:[#allocation2_spill]] %s3727_s30  ;;  %s3642_s28 = smov 21  }
  0x14   :  { %4404 = sst [smem:[#allocation3_spill]] %s3732_s6 }
  0x15   :  { %s3757_s6 = sld [smem:[%s4398_s0 + %s3639_s7]]   ;;  %s3643_s7 = smov 22  }
  0x16   :  { %4405 = sst [smem:[#allocation4_spill]] %s3742_s20 }
  0x17   :  { %s3762_s20 = sld [smem:[%s4398_s0 + %s3640_s15]]   ;;  %s3644_s15 = smov 23  }
  0x18   :  { %4406 = sst [smem:[#allocation5_spill]] %s3752_s4 }
  0x19   :  { %s3767_s30 = sld [smem:[%s4398_s0 + %s3641_s22]]   ;;  %s3645_s22 = smov 24  }
  0x1a   :  { %s3772_s4 = sld [smem:[%s4398_s0 + %s3642_s28]]   ;;  %s3646_s28 = smov 25  }
  0x1b   :  { %4407 = sst [smem:[#allocation6_spill]] %s3757_s6 }
  0x1c   :  { %s3777_s6 = sld [smem:[%s4398_s0 + %s3643_s7]]   ;;  %s3647_s7 = smov 26  }
  0x1d   :  { %4408 = sst [smem:[#allocation7_spill]] %s3762_s20 }
  0x1e   :  { %s3782_s20 = sld [smem:[%s4398_s0 + %s3644_s15]]   ;;  %s3648_s15 = smov 27  }
  0x1f   :  { %4409 = sst [smem:[#allocation8_spill]] %s3767_s30 }
  0x20   :  { %4410 = sst [smem:[#allocation9_spill]] %s3772_s4 }
  0x21   :  { %s3787_s30 = sld [smem:[%s4398_s0 + %s3645_s22]]   ;;  %s3649_s22 = smov 28  }
  0x22   :  { %4411 = sst [smem:[#allocation10_spill]] %s3777_s6 }
  0x23   :  { %s3792_s4 = sld [smem:[%s4398_s0 + %s3646_s28]]   ;;  %s3650_s28 = smov 29  }
  0x24   :  { %4412 = sst [smem:[#allocation11_spill]] %s3782_s20 }
  0x25   :  { %s3797_s6 = sld [smem:[%s4398_s0 + %s3647_s7]]   ;;  %s3651_s7 = smov 30  }
  0x26   :  { %s3802_s20 = sld [smem:[%s4398_s0 + %s3648_s15]]   ;;  %s3652_s15 = smov 31  }
  0x27   :  { %4413 = sst [smem:[#allocation12_spill]] %s3787_s30 }
  0x28   :  { %s3807_s30 = sld [smem:[%s4398_s0 + %s3649_s22]]   ;;  %s3653_s22 = smov 32  }
  0x29   :  { %4414 = sst [smem:[#allocation13_spill]] %s3792_s4 }
  0x2a   :  { %s3812_s4 = sld [smem:[%s4398_s0 + %s3650_s28]]   ;;  %s3654_s28 = smov 33  }
  0x2b   :  { %4415 = sst [smem:[#allocation14_spill]] %s3797_s6 }
  0x2c   :  { %4416 = sst [smem:[#allocation15_spill]] %s3802_s20 }
  0x2d   :  { %s3817_s6 = sld [smem:[%s4398_s0 + %s3651_s7]]   ;;  %s3655_s7 = smov 34  }
  0x2e   :  { %4417 = sst [smem:[#allocation16_spill]] %s3807_s30 }
  0x2f   :  { %s3822_s20 = sld [smem:[%s4398_s0 + %s3652_s15]]   ;;  %s3839_s15 = smov 0  }
  0x30   :  { %4418 = sst [smem:[#allocation17_spill]] %s3812_s4 }
  0x31   :  { %s3827_s30 = sld [smem:[%s4398_s0 + %s3653_s22]]  }
  0x32   :  { %s3832_s4 = sld [smem:[%s4398_s0 + %s3654_s28]]  }
  0x33   :  { %4419 = sst [smem:[#allocation18_spill]] %s3817_s6 }
  0x34   :  { %s3837_s6 = sld [smem:[%s4398_s0 + %s3655_s7]]  }
  0x35 LB: > { %s3314_s16 = sadd.s32 4294967295, %s3620_s15   ;;  %p3318_p0 = scmp.ge.s32.totalorder %s3620_s15, 1  ;;  %s3620_s15 = sphi %s3839_s15, %s79_s15  }
  0x36   : > { %p966_p1 = scmp.lt.s32.totalorder %s3620_s15, 3 }
  0x38   : > { %p967_p2 = pnand %p3318_p0, %p966_p1 }
  0x39   : > { %p1061_p3 = scmp.lt.s32.totalorder (!%p967_p2), %s3314_s16, 1  ;;  %s4420_s23 = sld [smem:[#allocation2_spill]] (!%p967_p2) }
  0x3a   : > { %970 = sbr.rel (%p967_p2) target bundleno = 4853 (0x12f5), region = 156  ;;  %s4421_s1 = sld [smem:[#allocation8_spill]] (!%p967_p2) }
  0x3b   : > { %s4422_s2 = sld [smem:[#allocation9_spill]] (!%p967_p2) }
  0x3c   : > { %s4423_s7 = sld [smem:[#allocation4_spill]] (!%p967_p2) }
  0x3d   : > { %s4424_s10 = sld [smem:[#allocation5_spill]] (!%p967_p2) }
  0x3e   : > { %s4425_s11 = sld [smem:[#allocation3_spill]] (!%p967_p2) }
  0x3f   : > { %v1101_v0 = vld [vmem:[%s3682_s17 + $0x8] sm:$0xf]  ;;  %vm1111_vm0 = vcmask 1043456   ;;  %v1100_v1 = vld [vmem:[%s3682_s17] sm:$0xff]  ;;  %v1142_v2 = vld [vmem:[%s3687_s21 + $0x18] sm:$0xff]  ;;  %s4438_s16 = smov (!%p1061_p3, %s3314_s16), 1  ;;  %v1080_v23 = vlaneseq }
  0x40   : > { %3326 = vmatpush.msk.msra.mxu0 %vm1111_vm0, %v1101_v0  ;;  %3459 = vmatpush.msk.msra.mxu3 %vm1111_vm0, %v1101_v0  ;;  %v1147_v3 = vld [vmem:[%s3697_s29 + $0x18] sm:$0xff]  ;;  %v1141_v5 = vld [vmem:[%s3687_s21 + $0x10] sm:$0xff]  ;;  %s3858_s0 = sshll.u32 %s4438_s16, 4  ;;  %vm1104_vm1 = vcmask 97280   ;;  %v1140_v10 = vld [vmem:[%s3687_s21 + $0x8] sm:$0xff]  ;;  %vm1157_vm2 = vcmask 261120  }
  0x41   : > { %v1293_v4 = vld [vmem:[%s3707_s8 + $0x18] sm:$0xff]  ;;  %1176 = vmatpush.msra.mxu1 %v1142_v2  ;;  %1202 = vmatpush.msra.mxu2 %v1147_v3  ;;  %v1146_v6 = vld [vmem:[%s3697_s29 + $0x10] sm:$0xff]  ;;  %s1065_s18 = scalar_lea.vmem %s3667_s5, %s3858_s0  ;;  %v1145_v11 = vld [vmem:[%s3697_s29 + $0x8] sm:$0xff]  ;;  %s1070_s22 = scalar_lea.vmem %s3672_s9, %s3858_s0  ;;  %v3887_v26 = vand.u32 127, %v1080_v23  ;;  %v3656_v38 = vmov 0.0   ;;  %v3951_v53 = vshrl.u32 %v1080_v23, 7 }
  0x42   : > { %v1292_v7 = vld [vmem:[%s3707_s8 + $0x10] sm:$0xff]  ;;  %1130 = vmatpush.msra.mxu0 %v1100_v1  ;;  %3460 = vmatpush.msra.mxu3 %v1100_v1  ;;  %v1098_v8 = vld [vmem:[%s1065_s18] sm:$0xff]  ;;  %v1099_v9 = vld [vmem:[%s1065_s18 + $0x8] sm:$0xff]  ;;  %vm1267_vm11 = vcmask 130048   ;;  %s3323_s26 = sshll.u32 %s4438_s16, 3  ;;  %s4426_s16 = sld [smem:[#allocation6_spill]] }
  0x43   : > { %1177 = vmatpush.msra.mxu1 %v1141_v5  ;;  %1203 = vmatpush.msra.mxu2 %v1146_v6  ;;  %v1291_v12 = vld [vmem:[%s3707_s8 + $0x8] sm:$0xff]  ;;  %v1139_v13 = vld [vmem:[%s3687_s21] sm:$0xff]  ;;  %vm1086_vm3 = vcmp.ge.s32.totalorder %v3887_v26, 8  ;;  %vm1087_vm4 = vcmp.lt.s32.totalorder %v3887_v26, 16  ;;  %vm1083_vm5 = vcmp.lt.s32.totalorder %v3887_v26, 8  ;;  %v3348_v37 = vld [vmem:[%s3707_s8 + $0x38] sm:$0xff]  ;;  %vm1216_vm10 = vcmp.gt.s32.totalorder %v3887_v26, %v3951_v53  ;;  %s1074_s28 = scalar_lea.vmem %s3677_s13, %s3323_s26 }
  0x44   : > { %1310 = vmatpush.msrb.mxu0 %v1293_v4  ;;  %3328 = vmatmul.msk.f32.vlgmr.msra.gmra.mxu3 %vm1104_vm1, %v1099_v9  ;;  %v1144_v14 = vld [vmem:[%s3697_s29] sm:$0xff]  ;;  %v1103_v19 = vld [vmem:[%s1070_s22 + $0x8] sm:$0xff]  ;;  %vm1088_vm6 = vmand %vm1086_vm3, %vm1087_vm4  ;;  %v3906_v39 = vsel %vm1083_vm5, 1.0, %v3656_v38  ;;  %vm1090_vm7 = vcmp.ge.s32.totalorder %v3887_v26, 16  ;;  %vm1091_vm8 = vcmp.lt.s32.totalorder %v3887_v26, 24  ;;  %v3959_v58 = vadd.s32 8, %v3951_v53 }
  0x45   : > { %3327 = vmatmul.msk.f32.vlgmr.msra.gmra.mxu0 %vm1104_vm1, %v1098_v8  ;;  %1178 = vmatpush.msra.mxu1 %v1140_v10  ;;  %v1290_v15 = vld [vmem:[%s3707_s8] sm:$0xff]  ;;  %v3909_v40 = vsel %vm1088_vm6, 1.0, %v3656_v38  ;;  %v3347_v43 = vld [vmem:[%s3707_s8 + $0x30] sm:$0xff]  ;;  %v3346_v45 = vld [vmem:[%s3707_s8 + $0x28] sm:$0xff]  ;;  %v3956_v56 = vsel %vm1216_vm10, -1e+30, %v3656_v38  ;;  %vm1350_vm0 = vcmp.eq.s32.totalorder %v3951_v53, %v3887_v26 }
  0x46   : > { %1311 = vmatpush.msrb.mxu0 %v1292_v7  ;;  %1204 = vmatpush.msra.mxu2 %v1145_v11  ;;  %v1102_v16 = vld [vmem:[%s1070_s22] sm:$0xff]  ;;  %vm1092_vm9 = vmand %vm1090_vm7, %vm1091_vm8  ;;  %vm1217_vm12 = vcmp.gt.s32.totalorder %v3887_v26, %v3959_v58  ;;  %vm1094_vm13 = vcmp.ge.s32.totalorder %v3887_v26, 24  ;;  %vm1095_vm14 = vcmp.lt.s32.totalorder %v3887_v26, 32  ;;  %vm1351_vm3 = vcmp.eq.s32.totalorder %v3959_v58, %v3887_v26  ;;  %s4427_s18 = sld [smem:[#allocation7_spill]] }
  0x47   : > { %1179 = vmatpush.msra.mxu1 %v1139_v13  ;;  %v3508_v25 = vld [vmem:[%s3712_s14] ss:$0 sm:$0xff]  ;;  %v3943_v50 = vsel %vm1092_vm9, 1.0, %v3656_v38  ;;  %v3966_v63 = vsel %vm1217_vm12, -1e+30, %v3656_v38  ;;  %vm1096_vm15 = vmand %vm1094_vm13, %vm1095_vm14  ;;  %s4428_s22 = sld [smem:[#allocation14_spill]] }
  0x48   : > { %1312 = vmatpush.msrb.mxu0 %v1291_v12  ;;  %1205 = vmatpush.msra.mxu2 %v1144_v14  ;;  %v3507_v31 = vld [vmem:[%s3702_s3] ss:$0 sm:$0xff]  ;;  %v3509_v4 = vld [vmem:[%s3712_s14 + $0x1] ss:$0 sm:$0xff]  ;;  %s4429_s26 = sld [smem:[#allocation10_spill]] }
  0x49   : > { %v3506_v32 = vld [vmem:[%s3692_s25] ss:$0 sm:$0xff] }
  0x4a   : > { %1313 = vmatpush.msrb.mxu0 %v1290_v15  ;;  %v3345_v47 = vld [vmem:[%s3707_s8 + $0x20] sm:$0xff] }
  0xc2   : > { %v1132_v17 = vpop.f32.mrf.mxu0 }
  0xc3   : > { %v3870_v18 = vadd.f32 %v1132_v17, %v1102_v16 }
  0xc5   : > { %3329 = vmatmul.msk.f32.vlgmr.msra.gmra.mxu1 %vm1157_vm2, %v3870_v18  ;;  %3331 = vmatmul.msk.f32.vlgmr.msra.gmra.mxu2 %vm1157_vm2, %v3870_v18 }
  0xc6   : > { %3337 = vmatmul.msk.f32.vlgmr.msrb.gmra.mxu0 %vm1157_vm2, %v3870_v18 }
  0xc7   : > { %v1135_v20 = vpop.f32.mrf.mxu3 }
  0xc8   : > { %v3878_v21 = vadd.f32 %v1135_v20, %v1103_v19 }
  0xcd   : > { %3330 = vmatmul.msk.f32.gmra.mxu1 %vm1157_vm2, %v3878_v21  ;;  %3332 = vmatmul.msk.f32.gmra.mxu2 %vm1157_vm2, %v3878_v21 }
  0xce   : > { %3338 = vmatmul.msk.f32.gmra.mxu0 %vm1157_vm2, %v3878_v21 }
 0x142   : > { %v1181_v30 = vpop.f32.mrf.mxu1 }
 0x143   : > { %v1315_v22 = vpop.f32.mrf.mxu0  ;;  %v3900_v35 = vadd.f32 %v3506_v32, %v1181_v30 }
 0x144   : > { %v1316_v29 = vadd.f32 %v3508_v25, %v1315_v22 }
 0x145   : > { %v1226_v41 = vmul.f32 %v3900_v35, %v3906_v39  ;;  %v1366_v42 = vmul.f32 %v3900_v35, %v3909_v40  ;;  %v1632_v51 = vmul.f32 %v3900_v35, %v3943_v50 }
 0x148   : > { %v1207_v24 = vpop.f32.mrf.mxu2 }
 0x149   : > { %v3902_v36 = vadd.f32 %v3507_v31, %v1207_v24 }
 0x14a   : > { %v1184_v44 = vpop.f32.mrf.mxu1 }
 0x14b   : > { %v1318_v27 = vpop.f32.mrf.mxu0  ;;  %v3923_v46 = vadd.f32 %v3506_v32, %v1184_v44 }
 0x14c   : > { %v1319_v28 = vadd.f32 %v3508_v25, %v1318_v27 }
 0x14d   : > { %v1227_v48 = vmul.f32 %v3923_v46, %v3906_v39  ;;  %v1367_v49 = vmul.f32 %v3923_v46, %v3909_v40  ;;  %v1633_v52 = vmul.f32 %v3923_v46, %v3943_v50 }
 0x14e   : > { %1341 = vmatpush.msrb.mxu1 %v1319_v28 }
 0x150   : > { %1342 = vmatpush.msrb.mxu1 %v1316_v29  ;;  %v1210_v33 = vpop.f32.mrf.mxu2 }
 0x151   : > { %v3893_v34 = vadd.f32 %v3507_v31, %v1210_v33 }
 0x153   : > { %3333 = vmatpush.xpose.msk.msrb.mxu3 %vm1157_vm2, %v3893_v34  ;;  %3341 = vmatpush.xpose.msk.msrb.mxu2 %vm1157_vm2, %v3893_v34 }
 0x157   : > { %3334 = vmatpush.xpose.msk.msrb.mxu3 %vm1157_vm2, %v3902_v36  ;;  %3342 = vmatpush.xpose.msk.msrb.mxu2 %vm1157_vm2, %v3902_v36 }
 0x15a   : > { %3335 = vmatmul.msk.f32.vlgmr.msrb.gmra.mxu3 %vm1157_vm2, %v1226_v41  ;;  %3343 = vmatmul.msk.f32.vlgmr.msrb.gmra.mxu2 %vm1157_vm2, %v1366_v42 }
 0x15b   : > { %1445 = vmatpush.msra.mxu3 %v3348_v37 }
 0x15d   : > { %1446 = vmatpush.msra.mxu3 %v3347_v43 }
 0x15f   : > { %1447 = vmatpush.msra.mxu3 %v3346_v45 }
 0x161   : > { %1448 = vmatpush.msra.mxu3 %v3345_v47 }
 0x162   : > { %3336 = vmatmul.msk.f32.gmra.mxu3 %vm1157_vm2, %v1227_v48  ;;  %3344 = vmatmul.msk.f32.gmra.mxu2 %vm1157_vm2, %v1367_v49 }
 0x163   : > { %3368 = vmatpush.xpose.msk.msrb.mxu3 %vm1157_vm2, %v3893_v34 }
 0x167   : > { %3369 = vmatpush.xpose.msk.msrb.mxu3 %vm1157_vm2, %v3902_v36 }
 0x16a   : > { %3350 = vmatmul.msk.f32.vlgmr.msra.gmra.mxu3 %vm1157_vm2, %v3870_v18 }
 0x172   : > { %3351 = vmatmul.msk.f32.gmra.mxu3 %vm1157_vm2, %v3878_v21 }
 0x17a   : > { %3370 = vmatmul.msk.f32.vlgmr.msrb.gmra.mxu3 %vm1157_vm2, %v1632_v51 }
 0x182   : > { %3371 = vmatmul.msk.f32.gmra.mxu3 %vm1157_vm2, %v1633_v52 }
 0x1dd   : > { %v1257_v54 = vpop.f32.mrf.mxu3  ;;  %v1391_v55 = vpop.f32.mrf.mxu2 }
 0x1de   : > { %v1397_v57 = vmul.f32 0.35355338, %v1391_v55  ;;  %v1263_v15 = vmul.f32 0.35355338, %v1257_v54 }
 0x1e0   : > { %v1399_v59 = vadd.f32 %v1397_v57, %v3956_v56  ;;  %v1265_v17 = vadd.f32 %v1263_v15, %v3956_v56 }
 0x1e2   : > { %v1401_v60 = vsel %vm1267_vm11, %v1399_v59, -inf  ;;  %v1268_v19 = vsel %vm1267_vm11, %v1265_v17, -inf }
 0x1e3   : > { %1402 = vmax.xlane.f32.xlu0 %v1401_v60 }
 0x1e5   : > { %v1260_v61 = vpop.f32.mrf.mxu3  ;;  %v1394_v62 = vpop.f32.mrf.mxu2 }
 0x1e6   : > { %v1398_v0 = vmul.f32 0.35355338, %v1394_v62  ;;  %v1264_v45 = vmul.f32 0.35355338, %v1260_v61  ;;  %v3375_v61 = vld [vmem:[%s3707_s8 + $0x58] sm:$0xff]  ;;  %v3374_v62 = vld [vmem:[%s3707_s8 + $0x50] sm:$0xff] }
 0x1e8   : > { %v1400_v1 = vadd.f32 %v1398_v0, %v3966_v63  ;;  %v1266_v49 = vadd.f32 %v1264_v45, %v3966_v63  ;;  %v3373_v0 = vld [vmem:[%s3707_s8 + $0x48] sm:$0xff] }
 0x1ea   : > { %v1404_v2 = vsel %vm1267_vm11, %v1400_v1, -inf  ;;  %v1271_v57 = vsel %vm1267_vm11, %v1266_v49, -inf }
 0x1eb   : > { %1405 = vmax.xlane.f32.xlu0 %v1404_v2 }
 0x1ed   : > { %v1450_v3 = vpop.f32.mrf.mxu3 }
 0x1ee   : > { %v1451_v7 = vadd.f32 %v3509_v4, %v1450_v3 }
 0x1f5   : > { %v1453_v5 = vpop.f32.mrf.mxu3 }
 0x1f6   : > { %v1454_v6 = vadd.f32 %v3509_v4, %v1453_v5 }
 0x1f8   : > { %1476 = vmatpush.msra.mxu0 %v1454_v6 }
 0x1fa   : > { %1477 = vmatpush.msra.mxu0 %v1451_v7 }
 0x1fc   : > { %1711 = vmatpush.msrb.mxu0 %v3375_v61 }
 0x1fd   : > { %v1657_v8 = vpop.f32.mrf.mxu3 }
 0x1fe   : > { %v1663_v9 = vmul.f32 0.35355338, %v1657_v8  ;;  %1712 = vmatpush.msrb.mxu0 %v3374_v62  ;;  %v3511_v62 = vld [vmem:[%s3712_s14 + $0x3] ss:$0 sm:$0xff] }
 0x200   : > { %v1665_v10 = vadd.f32 %v1663_v9, %v3956_v56  ;;  %1713 = vmatpush.msrb.mxu0 %v3373_v0 }
 0x202   : > { %v1667_v11 = vsel %vm1267_vm11, %v1665_v10, -inf }
 0x203   : > { %1668 = vmax.xlane.f32.xlu2 %v1667_v11 }
 0x205   : > { %v1660_v12 = vpop.f32.mrf.mxu3 }
 0x206   : > { %v1664_v13 = vmul.f32 0.35355338, %v1660_v12 }
 0x208   : > { %v1666_v14 = vadd.f32 %v1664_v13, %v3966_v63 }
 0x20a   : > { %v1670_v16 = vsel %vm1267_vm11, %v1666_v14, -inf }
 0x20b   : > { %1671 = vmax.xlane.f32.xlu2 %v1670_v16 }
 0x213   : > { %1269 = vmax.xlane.f32.xlu2 %v1268_v19 }
 0x256   : > { %v1403_v20 = vpop.xlane.xlu0 %1402 }
 0x257   : > { %v1407_v22 = vsub.f32 %v1399_v59, %v1403_v20 }
 0x259   : > { %v1409_v23 = vmul.f32 1.442695, %v1407_v22 }
 0x25b   : > { %3528 = vpow2.f32 %v1409_v23  ;;  %v3510_v23 = vld [vmem:[%s3712_s14 + $0x2] ss:$0 sm:$0xff] }
 0x25e   : > { %v1406_v24 = vpop.xlane.xlu0 %1405 }
 0x25f   : > { %v1408_v25 = vsub.f32 %v1400_v1, %v1406_v24  ;;  %v3372_v1 = vld [vmem:[%s3707_s8 + $0x40] sm:$0xff] }
 0x260   : > { %1714 = vmatpush.msrb.mxu0 %v3372_v1 }
 0x261   : > { %v3529_v27 = vpop.eup %3528  ;;  %v1411_v28 = vmul.f32 1.442695, %v1408_v25 }
 0x262   : > { %v1413_v29 = vsel %vm1267_vm11, %v3529_v27, 0.0 }
 0x263   : > { %3530 = vpow2.f32 %v1411_v28  ;;  %1414 = vadd.xlane.f32.xlu1 %v1413_v29 }
 0x269   : > { %v3531_v30 = vpop.eup %3530 }
 0x26a   : > { %v1416_v31 = vsel %vm1267_vm11, %v3531_v30, 0.0 }
 0x26b   : > { %1417 = vadd.xlane.f32.xlu1 %v1416_v31 }
 0x276   : > { %v1669_v32 = vpop.xlane.xlu2 %1668 }
 0x277   : > { %v1673_v33 = vsub.f32 %v1665_v10, %v1669_v32  ;;  %v3392_v32 = vld [vmem:[%s3707_s8 + $0x78] sm:$0xff] }
 0x279   : > { %v1675_v37 = vmul.f32 1.442695, %v1673_v33 }
 0x27b   : > { %3532 = vpow2.f32 %v1675_v37  ;;  %v3391_v37 = vld [vmem:[%s3707_s8 + $0x70] sm:$0xff] }
 0x27e   : > { %v1672_v41 = vpop.xlane.xlu2 %1671 }
 0x27f   : > { %v1674_v42 = vsub.f32 %v1666_v14, %v1672_v41 }
 0x281   : > { %v3979_v43 = vpop.eup %3532  ;;  %v1677_v44 = vmul.f32 1.442695, %v1674_v42  ;;  %v3389_v42 = vld [vmem:[%s3707_s8 + $0x60] sm:$0xff] }
 0x282   : > { %v1679_v47 = vsel %vm1267_vm11, %v3979_v43, 0.0 }
 0x283   : > { %3534 = vpow2.f32 %v1677_v44  ;;  %1680 = vadd.xlane.f32.xlu0 %v1679_v47 }
 0x286   : > { %v1270_v48 = vpop.xlane.xlu2 %1269 }
 0x287   : > { %v1274_v51 = vsub.f32 %v1265_v17, %v1270_v48 }
 0x289   : > { %v3984_v52 = vpop.eup %3534  ;;  %v1276_v54 = vmul.f32 1.442695, %v1274_v51 }
 0x28a   : > { %v1682_v55 = vsel %vm1267_vm11, %v3984_v52, 0.0 }
 0x28b   : > { %3536 = vpow2.f32 %v1276_v54  ;;  %1683 = vadd.xlane.f32.xlu1 %v1682_v55  ;;  %1272 = vmax.xlane.f32.xlu0 %v1271_v57 }
 0x291   : > { %v3537_v59 = vpop.eup %3536 }
 0x292   : > { %v1280_v60 = vsel %vm1267_vm11, %v3537_v59, 0.0 }
 0x293   : > { %1281 = vadd.xlane.f32.xlu1 %v1280_v60 }
 0x2d6   : > { %v1415_v2 = vpop.xlane.xlu1 %1414 }
 0x2d7   : > { %3538 = vrcp.f32 %v1415_v2  ;;  %v4045_v2 = vadd.s32 16, %v3951_v53 }
 0x2d9   : > { %vm1352_vm5 = vcmp.eq.s32.totalorder %v4045_v2, %v3887_v26 }
 0x2dd   : > { %v3539_v3 = vpop.eup %3538 }
 0x2de   : > { %v1421_v4 = vmul.f32 %v3539_v3, %v3529_v27  ;;  %v1418_v5 = vpop.xlane.xlu1 %1417  ;;  %v1358_v3 = vsel %vm1350_vm0, 1.0, %v3656_v38 }
 0x2df   : > { %3540 = vrcp.f32 %v1418_v5  ;;  %v4059_v5 = vadd.s32 24, %v3951_v53 }
 0x2e0   : > { %3352 = vmatmul.msk.f32.vlgmr.msra.gmra.mxu0 %vm1267_vm11, %v1421_v4 }
 0x2e1   : > { %vm1353_vm9 = vcmp.eq.s32.totalorder %v4059_v5, %v3887_v26 }
 0x2e5   : > { %v3541_v6 = vpop.eup %3540 }
 0x2e6   : > { %v1422_v7 = vmul.f32 %v3541_v6, %v3531_v30  ;;  %v1359_v6 = vsel %vm1351_vm3, 1.0, %v3656_v38 }
 0x2e8   : > { %3353 = vmatmul.msk.f32.gmra.mxu0 %vm1267_vm11, %v1422_v7 }
 0x2f0   : > { %3377 = vmatmul.msk.f32.vlgmr.msrb.gmra.mxu0 %vm1157_vm2, %v3870_v18 }
 0x2f6   : > { %v1681_v8 = vpop.xlane.xlu0 %1680 }
 0x2f8   : > { %3378 = vmatmul.msk.f32.gmra.mxu0 %vm1157_vm2, %v3878_v21 }
 0x2fe   : > { %v1684_v9 = vpop.xlane.xlu1 %1683  ;;  %v1273_v10 = vpop.xlane.xlu0 %1272 }
 0x2ff   : > { %v1275_v11 = vsub.f32 %v1266_v49, %v1273_v10 }
 0x301   : > { %v1278_v12 = vmul.f32 1.442695, %v1275_v11 }
 0x303   : > { %3542 = vpow2.f32 %v1278_v12 }
 0x306   : > { %v1282_v13 = vpop.xlane.xlu1 %1281 }
 0x307   : > { %3544 = vrcp.f32 %v1282_v13 }
 0x308   : > { %3546 = vrcp.f32 %v1681_v8  ;;  %v1222_v8 = vadd.s32 32, %v3951_v53 }
 0x309   : > { %v3543_v14 = vpop.eup %3542  ;;  %3548 = vrcp.f32 %v1684_v9  ;;  %v1751_v9 = vadd.s32 32, %v3887_v26 }
 0x30a   : > { %v1283_v15 = vsel %vm1267_vm11, %v3543_v14, 0.0  ;;  %vm1354_vm13 = vcmp.eq.s32.totalorder %v1222_v8, %v3887_v26 }
 0x30b   : > { %1284 = vadd.xlane.f32.xlu2 %v1283_v15  ;;  %vm1756_vm6 = vcmp.eq.s32.totalorder %v1222_v8, %v1751_v9  ;;  %v1223_v15 = vadd.s32 40, %v3951_v53 }
 0x30c   : > { %v1764_v12 = vsel %vm1756_vm6, 1.0, %v3656_v38 }
 0x30d   : > { %v3545_v16 = vpop.eup %3544  ;;  %vm1757_vm8 = vcmp.eq.s32.totalorder %v1223_v15, %v1751_v9 }
 0x30e   : > { %v1288_v17 = vmul.f32 %v3545_v16, %v3537_v59  ;;  %v3547_v25 = vpop.eup %3546 }
 0x30f   : > { %v1687_v29 = vmul.f32 %v3547_v25, %v3979_v43  ;;  %v3549_v30 = vpop.eup %3548  ;;  %v4018_v43 = vsel %vm1096_vm15, 1.0, %v3656_v38  ;;  %v1361_v25 = vsel %vm1353_vm9, 1.0, %v3656_v38  ;;  %vm1355_vm15 = vcmp.eq.s32.totalorder %v1223_v15, %v3887_v26 }
 0x310   : > { %3339 = vmatmul.msk.f32.vlgmr.msrb.gmra.mxu1 %vm1267_vm11, %v1288_v17  ;;  %v1688_v33 = vmul.f32 %v3549_v30, %v3984_v52  ;;  %v1842_v45 = vmul.f32 %v3923_v46, %v4018_v43  ;;  %vm2058_vm9 = vcmask 523264  }
 0x35d   : > { %v1479_v19 = vpop.f32.mrf.mxu0 }
 0x365   : > { %v1482_v20 = vpop.f32.mrf.mxu0 }
 0x366   : > { %1540 = vmatpush.msra.mxu1 %v1482_v20 }
 0x368   : > { %1541 = vmatpush.msra.mxu1 %v1479_v19  ;;  %v1765_v19 = vsel %vm1757_vm8, 1.0, %v3656_v38 }
 0x36d   : > { %v1716_v22 = vpop.f32.mrf.mxu0 }
 0x36e   : > { %v1717_v28 = vadd.f32 %v3510_v23, %v1716_v22 }
 0x375   : > { %v1719_v24 = vpop.f32.mrf.mxu0 }
 0x376   : > { %v1720_v27 = vadd.f32 %v3510_v23, %v1719_v24 }
 0x378   : > { %1742 = vmatpush.msra.mxu3 %v1720_v27  ;;  %v4087_v27 = vadd.s32 48, %v3951_v53 }
 0x37a   : > { %1743 = vmatpush.msra.mxu3 %v1717_v28  ;;  %vm1758_vm12 = vcmp.eq.s32.totalorder %v4087_v27, %v1751_v9  ;;  %vm1356_vm0 = vcmp.eq.s32.totalorder %v4087_v27, %v3887_v26 }
 0x37b   : > { %3379 = vmatmul.msk.f32.vlgmr.msra.gmra.mxu3 %vm1267_vm11, %v1687_v29  ;;  %v1766_v29 = vsel %vm1758_vm12, 1.0, %v3656_v38 }
 0x37c   : > { %3385 = vmatpush.xpose.msk.msrb.mxu3 %vm1157_vm2, %v3893_v34  ;;  %v3390_v34 = vld [vmem:[%s3707_s8 + $0x68] sm:$0xff] }
 0x37e   : > { %v1285_v31 = vpop.xlane.xlu2 %1284 }
 0x37f   : > { %3550 = vrcp.f32 %v1285_v31 }
 0x380   : > { %3386 = vmatpush.xpose.msk.msrb.mxu3 %vm1157_vm2, %v3902_v36  ;;  %v1841_v36 = vmul.f32 %v3900_v35, %v4018_v43 }
 0x383   : > { %3380 = vmatmul.msk.f32.gmra.mxu3 %vm1267_vm11, %v1688_v33 }
 0x384   : > { %1920 = vmatpush.msra.mxu3 %v3392_v32  ;;  %v1362_v32 = vsel %vm1354_vm13, 1.0, %v3656_v38 }
 0x385   : > { %v3551_v41 = vpop.eup %3550 }
 0x386   : > { %1921 = vmatpush.msra.mxu3 %v3391_v37  ;;  %v1289_v44 = vmul.f32 %v3551_v41, %v3543_v14  ;;  %v1360_v14 = vsel %vm1352_vm5, 1.0, %v3656_v38  ;;  %v1363_v37 = vsel %vm1355_vm15, 1.0, %v3656_v38  ;;  %v1225_v41 = vadd.s32 56, %v3951_v53 }
 0x387   : > { %vm2094_vm15 = vcmp.eq.s32.totalorder %v3887_v26, %v3959_v58 }
 0x388   : > { %1922 = vmatpush.msra.mxu3 %v3390_v34  ;;  %3340 = vmatmul.msk.f32.gmra.mxu1 %vm1267_vm11, %v1289_v44  ;;  %v1364_v34 = vsel %vm1356_vm0, 1.0, %v3656_v38  ;;  %vm2190_vm0 = vcmp.eq.s32.totalorder %v3887_v26, %v4045_v2 }
 0x38a   : > { %1923 = vmatpush.msra.mxu3 %v3389_v42 }
 0x38b   : > { %3387 = vmatmul.msk.f32.vlgmr.msrb.gmra.mxu3 %vm1157_vm2, %v1841_v36 }
 0x38d   : > { %v1344_v47 = vpop.f32.mrf.mxu1 }
 0x390   : > { %1542 = vmatmul.f32.vlgmr.msra.gmra.mxu1 %v3656_v38 }
 0x393   : > { %3388 = vmatmul.msk.f32.gmra.mxu3 %vm1157_vm2, %v1842_v45 }
 0x398   : > { %1545 = vmatmul.f32.gmra.mxu1 %v3656_v38 }
 0x39b   : > { %3394 = vmatmul.msk.f32.vlgmr.msra.gmra.mxu3 %vm1157_vm2, %v3870_v18 }
 0x3a3   : > { %3395 = vmatmul.msk.f32.gmra.mxu3 %vm1157_vm2, %v3878_v21 }
 0x3fe   : > { %v1745_v48 = vpop.f32.mrf.mxu3 }
 0x405   : > { %v1347_v35 = vpop.f32.mrf.mxu1 }
 0x406   : > { %1605 = vmatpush.msra.mxu2 %v1347_v35  ;;  %v1748_v49 = vpop.f32.mrf.mxu3 }
 0x407   : > { %1806 = vmatpush.msra.mxu0 %v1748_v49 }
 0x408   : > { %1606 = vmatpush.msra.mxu2 %v1344_v47 }
 0x409   : > { %1807 = vmatpush.msra.mxu0 %v1745_v48  ;;  %3360 = vmatmul.msk.f32.vlgmr.msra.gmra.mxu2 %vm1267_vm11, %v1358_v3 }
 0x40a   : > { %1808 = vmatmul.f32.vlgmr.msra.gmra.mxu0 %v3656_v38 }
 0x40d   : > { %v1543_v45 = vpop.f32.mrf.mxu1 }
 0x40e   : > { %v1866_v46 = vpop.f32.mrf.mxu3 }
 0x40f   : > { %v1872_v51 = vmul.f32 0.35355338, %v1866_v46 }
 0x411   : > { %v1874_v52 = vadd.f32 %v1872_v51, %v3956_v56  ;;  %3361 = vmatmul.msk.f32.gmra.mxu2 %vm1267_vm11, %v1359_v6 }
 0x412   : > { %1811 = vmatmul.f32.gmra.mxu0 %v3656_v38 }
 0x413   : > { %v1876_v54 = vsel %vm1267_vm11, %v1874_v52, -inf }
 0x414   : > { %1877 = vmax.xlane.f32.xlu0 %v1876_v54 }
 0x415   : > { %v1546_v35 = vpop.f32.mrf.mxu1 }
 0x416   : > { %v1869_v55 = vpop.f32.mrf.mxu3 }
 0x417   : > { %v1873_v57 = vmul.f32 0.35355338, %v1869_v55 }
 0x419   : > { %v1875_v59 = vadd.f32 %v1873_v57, %v3966_v63  ;;  %v4048_v63 = vadd.s32 16, %v3887_v26  ;;  %3362 = vmatmul.msk.f32.gmra.mxu2 %vm1267_vm11, %v1360_v14 }
 0x41a   : > { %1814 = vmatmul.f32.gmra.mxu0 %v3656_v38 }
 0x41b   : > { %v1879_v60 = vsel %vm1267_vm11, %v1875_v59, -inf  ;;  %vm1488_vm1 = vcmp.eq.s32.totalorder %v4045_v2, %v4048_v63  ;;  %vm1489_vm4 = vcmp.eq.s32.totalorder %v4059_v5, %v4048_v63  ;;  %vm1490_vm7 = vcmp.eq.s32.totalorder %v1222_v8, %v4048_v63 }
 0x41c   : > { %1880 = vmax.xlane.f32.xlu1 %v1879_v60  ;;  %v1496_v4 = vsel %vm1488_vm1, 1.0, %v3656_v38  ;;  %v1497_v7 = vsel %vm1489_vm4, 1.0, %v3656_v38  ;;  %v1498_v16 = vsel %vm1490_vm7, 1.0, %v3656_v38  ;;  %vm1491_vm10 = vcmp.eq.s32.totalorder %v1223_v15, %v4048_v63 }
 0x41d   : > { %3354 = vmatmul.msk.f32.gmra.mxu1 %vm1267_vm11, %v1496_v4  ;;  %v1499_v28 = vsel %vm1491_vm10, 1.0, %v3656_v38  ;;  %vm1492_vm14 = vcmp.eq.s32.totalorder %v4087_v27, %v4048_v63  ;;  %vm1357_vm1 = vcmp.eq.s32.totalorder %v1225_v41, %v3887_v26  ;;  %vm1493_vm3 = vcmp.eq.s32.totalorder %v1225_v41, %v4048_v63 }
 0x41e   : > { %v1925_v61 = vpop.f32.mrf.mxu3  ;;  %v1500_v33 = vsel %vm1492_vm14, 1.0, %v3656_v38  ;;  %v1365_v42 = vsel %vm1357_vm1, 1.0, %v3656_v38  ;;  %v1501_v44 = vsel %vm1493_vm3, 1.0, %v3656_v38  ;;  %vm1759_vm4 = vcmp.eq.s32.totalorder %v1225_v41, %v1751_v9 }
 0x41f   : > { %v1926_v1 = vadd.f32 %v3511_v62, %v1925_v61  ;;  %v1767_v36 = vsel %vm1759_vm4, 1.0, %v3656_v38  ;;  %vm2056_vm7 = vcmp.eq.s32.totalorder %v3887_v26, %v3951_v53  ;;  %vm2125_vm1 = vcmask 64512  }
 0x421   : > { %3363 = vmatmul.msk.f32.gmra.mxu2 %vm1267_vm11, %v1361_v25 }
 0x422   : > { %1817 = vmatmul.f32.gmra.mxu0 %v3656_v38 }
 0x425   : > { %3355 = vmatmul.msk.f32.gmra.mxu1 %vm1267_vm11, %v1497_v7 }
 0x426   : > { %v1928_v0 = vpop.f32.mrf.mxu3 }
 0x427   : > { %v1929_v56 = vadd.f32 %v3511_v62, %v1928_v0 }
 0x429   : > { %1951 = vmatpush.msrb.mxu1 %v1929_v56  ;;  %3364 = vmatmul.msk.f32.gmra.mxu2 %vm1267_vm11, %v1362_v32 }
 0x42a   : > { %3381 = vmatmul.msk.f32.gmra.mxu0 %vm1267_vm11, %v1764_v12 }
 0x42b   : > { %1952 = vmatpush.msrb.mxu1 %v1926_v1 }
 0x42d   : > { %3356 = vmatmul.msk.f32.gmra.mxu1 %vm1267_vm11, %v1498_v16 }
 0x431   : > { %3365 = vmatmul.msk.f32.gmra.mxu2 %vm1267_vm11, %v1363_v37 }
 0x432   : > { %3382 = vmatmul.msk.f32.gmra.mxu0 %vm1267_vm11, %v1765_v19 }
 0x435   : > { %3357 = vmatmul.msk.f32.gmra.mxu1 %vm1267_vm11, %v1499_v28 }
 0x439   : > { %3366 = vmatmul.msk.f32.gmra.mxu2 %vm1267_vm11, %v1364_v34 }
 0x43a   : > { %3383 = vmatmul.msk.f32.gmra.mxu0 %vm1267_vm11, %v1766_v29 }
 0x43d   : > { %3358 = vmatmul.msk.f32.gmra.mxu1 %vm1267_vm11, %v1500_v33  ;;  %v3657_v33 = vmov 1.0  }
 0x43e   : > { %3407 = vmatpush.msk.msrb.mxu0 %vm2056_vm7, %v3657_v33 }
 0x441   : > { %3367 = vmatmul.msk.f32.gmra.mxu2 %vm1267_vm11, %v1365_v42 }
 0x442   : > { %3384 = vmatmul.msk.f32.gmra.mxu0 %vm1267_vm11, %v1767_v36 }
 0x445   : > { %3359 = vmatmul.msk.f32.gmra.mxu1 %vm1267_vm11, %v1501_v44 }
 0x487   : > { %v1878_v10 = vpop.xlane.xlu0 %1877  ;;  %v1809_v47 = vpop.f32.mrf.mxu0 }
 0x488   : > { %v1882_v11 = vsub.f32 %v1874_v52, %v1878_v10 }
 0x48a   : > { %v1884_v13 = vmul.f32 1.442695, %v1882_v11 }
 0x48c   : > { %3552 = vpow2.f32 %v1884_v13  ;;  %v1608_v48 = vpop.f32.mrf.mxu2 }
 0x48d   : > { %v1609_v49 = vadd.f32 %v1608_v48, %v1543_v45 }
 0x48f   : > { %v1881_v17 = vpop.xlane.xlu1 %1880  ;;  %v1833_v46 = vadd.f32 %v1809_v47, %v1609_v49 }
 0x490   : > { %v1883_v20 = vsub.f32 %v1875_v59, %v1881_v17  ;;  %v1960_v17 = vadd.s32 48, %v3887_v26 }
 0x492   : > { %v3553_v22 = vpop.eup %3552  ;;  %v1886_v23 = vmul.f32 1.442695, %v1883_v20  ;;  %vm1967_vm5 = vcmp.eq.s32.totalorder %v4087_v27, %v1960_v17  ;;  %vm1968_vm6 = vcmp.eq.s32.totalorder %v1225_v41, %v1960_v17 }
 0x493   : > { %v1888_v24 = vsel %vm1267_vm11, %v3553_v22, 0.0  ;;  %v1975_v19 = vsel %vm1967_vm5, 1.0, %v3656_v38  ;;  %v1976_v20 = vsel %vm1968_vm6, 1.0, %v3656_v38  ;;  %vm2258_vm5 = vcmp.eq.s32.totalorder %v3887_v26, %v4059_v5 }
 0x494   : > { %3554 = vpow2.f32 %v1886_v23  ;;  %1889 = vadd.xlane.f32.xlu2 %v1888_v24  ;;  %v1611_v52 = vpop.f32.mrf.mxu2 }
 0x495   : > { %v4119_v55 = vadd.f32 %v1611_v52, %v1546_v35 }
 0x49a   : > { %v3555_v30 = vpop.eup %3554  ;;  %v1549_v54 = vpop.f32.mrf.mxu1 }
 0x49b   : > { %v1891_v31 = vsel %vm1267_vm11, %v3555_v30, 0.0 }
 0x49c   : > { %1892 = vadd.xlane.f32.xlu0 %v1891_v31  ;;  %v1614_v61 = vpop.f32.mrf.mxu2 }
 0x49d   : > { %v4122_v0 = vadd.f32 %v1614_v61, %v1549_v54 }
 0x4a2   : > { %v1552_v62 = vpop.f32.mrf.mxu1 }
 0x4a4   : > { %v1617_v63 = vpop.f32.mrf.mxu2 }
 0x4a5   : > { %v4125_v3 = vadd.f32 %v1617_v63, %v1552_v62 }
 0x4aa   : > { %v1555_v4 = vpop.f32.mrf.mxu1 }
 0x4ac   : > { %v1620_v6 = vpop.f32.mrf.mxu2 }
 0x4ad   : > { %v1621_v7 = vadd.f32 %v1620_v6, %v1555_v4 }
 0x4b2   : > { %v1558_v8 = vpop.f32.mrf.mxu1 }
 0x4b4   : > { %v1623_v9 = vpop.f32.mrf.mxu2 }
 0x4b5   : > { %v1624_v10 = vadd.f32 %v1623_v9, %v1558_v8 }
 0x4ba   : > { %v1561_v11 = vpop.f32.mrf.mxu1 }
 0x4bc   : > { %v1626_v12 = vpop.f32.mrf.mxu2 }
 0x4bd   : > { %v1627_v13 = vadd.f32 %v1626_v12, %v1561_v11 }
 0x4c2   : > { %v1564_v14 = vpop.f32.mrf.mxu1 }
 0x4c4   : > { %v1629_v23 = vpop.f32.mrf.mxu2 }
 0x4c5   : > { %v1630_v36 = vadd.f32 %v1629_v23, %v1564_v14  ;;  %v1151_v23 = vld [vmem:[%s3717_s19 + $0x10] sm:$0xff] }
 0x507   : > { %v1890_v51 = vpop.xlane.xlu2 %1889 }
 0x508   : > { %3556 = vrcp.f32 %v1890_v51 }
 0x50e   : > { %v3557_v57 = vpop.eup %3556 }
 0x50f   : > { %v1896_v59 = vmul.f32 %v3557_v57, %v3553_v22  ;;  %v1893_v60 = vpop.xlane.xlu0 %1892  ;;  %v1812_v22 = vpop.f32.mrf.mxu0  ;;  %v4145_v57 = vmul.u32 4, %v3951_v53 }
 0x510   : > { %3558 = vrcp.f32 %v1893_v60 }
 0x511   : > { %3396 = vmatmul.msk.f32.vlgmr.msrb.gmra.mxu1 %vm1267_vm11, %v1896_v59  ;;  %v2184_v8 = vadd.s32 2, %v4145_v57 }
 0x513   : > { %vm2186_vm13 = vcmp.eq.s32.totalorder %v3887_v26, %v2184_v8  ;;  %v2430_v8 = vld [vmem:[%s3747_s27 + $0x18] sm:$0xff] }
 0x514   : > { %v2188_v9 = vsel %vm2186_vm13, 1.0, %v3656_v38 }
 0x516   : > { %v3559_v56 = vpop.eup %3558 }
 0x517   : > { %v1897_v1 = vmul.f32 %v3559_v56, %v3555_v30  ;;  %v1815_v28 = vpop.f32.mrf.mxu0  ;;  %v2088_v56 = vadd.s32 1, %v4145_v57 }
 0x518   : > { %v1835_v61 = vadd.f32 %v1815_v28, %v4122_v0  ;;  %v2051_v0 = vmul.u32 4, %v3959_v58 }
 0x519   : > { %3397 = vmatmul.msk.f32.gmra.mxu1 %vm1267_vm11, %v1897_v1  ;;  %v1834_v1 = vadd.f32 %v1812_v22, %v4119_v55  ;;  %vm2090_vm8 = vcmp.eq.s32.totalorder %v3887_v26, %v2088_v56  ;;  %v1152_v22 = vld [vmem:[%s3717_s19 + $0x18] sm:$0xff] }
 0x51a   : > { %v2092_v55 = vsel %vm2090_vm8, 1.0, %v3656_v38  ;;  %v2089_v4 = vadd.s32 1, %v2051_v0  ;;  %vm2053_vm10 = vcmp.eq.s32.totalorder %v3887_v26, %v2051_v0  ;;  %v2253_v17 = vadd.s32 3, %v2051_v0 }
 0x51b   : > { %v2055_v6 = vsel %vm2053_vm10, 1.0, %v3656_v38 }
 0x51c   : > { %vm2091_vm12 = vcmp.eq.s32.totalorder %v3887_v26, %v2089_v4  ;;  %vm2255_vm4 = vcmp.eq.s32.totalorder %v3887_v26, %v2253_v17  ;;  %v2422_v17 = vld [vmem:[%s3737_s12] sm:$0xff] }
 0x51f   : > { %v1818_v30 = vpop.f32.mrf.mxu0 }
 0x520   : > { %v1836_v59 = vadd.f32 %v1818_v30, %v4125_v3  ;;  %v1149_v30 = vld [vmem:[%s3717_s19] sm:$0xff] }
 0x527   : > { %v1821_v32 = vpop.f32.mrf.mxu0 }
 0x528   : > { %v1837_v52 = vadd.f32 %v1821_v32, %v1621_v7  ;;  %v2093_v7 = vsel %vm2091_vm12, 1.0, %v3656_v38 }
 0x52f   : > { %v1824_v37 = vpop.f32.mrf.mxu0 }
 0x537   : > { %v1827_v42 = vpop.f32.mrf.mxu0 }
 0x538   : > { %v1839_v35 = vadd.f32 %v1827_v42, %v1627_v13 }
 0x53f   : > { %v1830_v45 = vpop.f32.mrf.mxu0 }
 0x540   : > { %v1840_v47 = vadd.f32 %v1830_v45, %v1630_v36  ;;  %v3512_v45 = vld [vmem:[%s3722_s24] ss:$0 sm:$0xff] }
 0x58e   : > { %v1954_v15 = vpop.f32.mrf.mxu1 }
 0x596   : > { %v1957_v16 = vpop.f32.mrf.mxu1 }
 0x597   : > { %2015 = vmatpush.msrb.mxu2 %v1957_v16 }
 0x599   : > { %2016 = vmatpush.msrb.mxu2 %v1954_v15  ;;  %v2252_v15 = vadd.s32 3, %v4145_v57 }
 0x59a   : > { %2017 = vmatmul.f32.vlgmr.msrb.gmra.mxu2 %v3656_v38 }
 0x59b   : > { %vm2254_vm3 = vcmp.eq.s32.totalorder %v3887_v26, %v2252_v15  ;;  %2510 = vmatpush.msra.mxu2 %v2430_v8  ;;  %v2424_v15 = vld [vmem:[%s3737_s12 + $0x10] sm:$0xff] }
 0x59c   : > { %v2256_v16 = vsel %vm2254_vm3, 1.0, %v3656_v38 }
 0x5a2   : > { %2020 = vmatmul.f32.gmra.mxu2 %v3656_v38 }
 0x5aa   : > { %2023 = vmatmul.f32.gmra.mxu2 %v3656_v38 }
 0x5b2   : > { %2026 = vmatmul.f32.gmra.mxu2 %v3656_v38 }
 0x5ba   : > { %2029 = vmatmul.f32.gmra.mxu2 %v3656_v38 }
 0x5c2   : > { %2032 = vmatmul.f32.gmra.mxu2 %v3656_v38 }
 0x5ca   : > { %3398 = vmatmul.msk.f32.gmra.mxu2 %vm1267_vm11, %v1975_v19 }
 0x5d2   : > { %3399 = vmatmul.msk.f32.gmra.mxu2 %vm1267_vm11, %v1976_v20  ;;  %vm2052_vm11 = vcmp.eq.s32.totalorder %v3887_v26, %v4145_v57  ;;  %v2257_v20 = vsel %vm2255_vm4, 1.0, %v3656_v38  ;;  %v3658_v57 = vmov 32.0  }
 0x5d3   : > { %v2054_v3 = vsel %vm2052_vm11, 1.0, %v3656_v38  ;;  %3560 = vrcp.f32 %v3658_v57 }
 0x61d   : > { %v2018_v24 = vpop.f32.mrf.mxu2 }
 0x61e   : > { %v4139_v25 = vadd.f32 %v2018_v24, %v1833_v46  ;;  %v1838_v46 = vadd.f32 %v1824_v37, %v1624_v10  ;;  %v2185_v10 = vadd.s32 2, %v2051_v0 }
 0x620   : > { %vm2187_vm14 = vcmp.eq.s32.totalorder %v3887_v26, %v2185_v10  ;;  %v2428_v10 = vld [vmem:[%s3747_s27 + $0x8] sm:$0xff] }
 0x621   : > { %v2189_v11 = vsel %vm2187_vm14, 1.0, %v3656_v38  ;;  %v1150_v38 = vld [vmem:[%s3717_s19 + $0x8] sm:$0xff] }
 0x625   : > { %v2021_v29 = vpop.f32.mrf.mxu2 }
 0x626   : > { %v2043_v53 = vadd.f32 %v2021_v29, %v1834_v1 }
 0x62d   : > { %v2024_v31 = vpop.f32.mrf.mxu2 }
 0x62e   : > { %v2044_v63 = vadd.f32 %v2024_v31, %v1835_v61 }
 0x635   : > { %v2027_v27 = vpop.f32.mrf.mxu2 }
 0x636   : > { %v2045_v62 = vadd.f32 %v2027_v27, %v1836_v59  ;;  %v3561_v59 = vpop.eup %3560 }
 0x637   : > { %vm2367_vm6 = vweird.f32 %v3561_v59 }
 0x63d   : > { %v2030_v34 = vpop.f32.mrf.mxu2 }
 0x63e   : > { %v2046_v60 = vadd.f32 %v2030_v34, %v1837_v52 }
 0x645   : > { %v2033_v41 = vpop.f32.mrf.mxu2 }
 0x646   : > { %v2047_v54 = vadd.f32 %v2033_v41, %v1838_v46 }
 0x64d   : > { %v2036_v44 = vpop.f32.mrf.mxu2 }
 0x64e   : > { %v2048_v51 = vadd.f32 %v2036_v44, %v1839_v35 }
 0x655   : > { %v2039_v48 = vpop.f32.mrf.mxu2 }
 0x656   : > { %v2049_v49 = vadd.f32 %v2039_v48, %v1840_v47 }
 0x658   : > { %2073 = vmatpush.msrb.mxu3 %v2049_v49  ;;  %2110 = vmatpush.msra.mxu1 %v2049_v49 }
 0x659   : > { %2274 = vmatpush.msra.mxu0 %v2049_v49 }
 0x65a   : > { %2074 = vmatpush.msrb.mxu3 %v2048_v51  ;;  %2111 = vmatpush.msra.mxu1 %v2048_v51 }
 0x65b   : > { %2275 = vmatpush.msra.mxu0 %v2048_v51 }
 0x65c   : > { %2075 = vmatpush.msrb.mxu3 %v2047_v54  ;;  %2112 = vmatpush.msra.mxu1 %v2047_v54 }
 0x65d   : > { %2276 = vmatpush.msra.mxu0 %v2047_v54 }
 0x65e   : > { %2076 = vmatpush.msrb.mxu3 %v2046_v60  ;;  %2113 = vmatpush.msra.mxu1 %v2046_v60 }
 0x65f   : > { %2277 = vmatpush.msra.mxu0 %v2046_v60 }
 0x660   : > { %2077 = vmatpush.msrb.mxu3 %v2045_v62  ;;  %2114 = vmatpush.msra.mxu1 %v2045_v62 }
 0x661   : > { %2278 = vmatpush.msra.mxu0 %v2045_v62 }
 0x662   : > { %2078 = vmatpush.msrb.mxu3 %v2044_v63  ;;  %2115 = vmatpush.msra.mxu1 %v2044_v63 }
 0x663   : > { %2279 = vmatpush.msra.mxu0 %v2044_v63 }
 0x664   : > { %2079 = vmatpush.msrb.mxu3 %v2043_v53  ;;  %2116 = vmatpush.msra.mxu1 %v2043_v53 }
 0x665   : > { %2280 = vmatpush.msra.mxu0 %v2043_v53 }
 0x666   : > { %2080 = vmatpush.msrb.mxu3 %v4139_v25  ;;  %2117 = vmatpush.msra.mxu1 %v4139_v25 }
 0x667   : > { %2281 = vmatpush.msra.mxu0 %v4139_v25  ;;  %3400 = vmatmul.msk.f32.vlgmr.msrb.gmra.mxu3 %vm2058_vm9, %v2054_v3 }
 0x668   : > { %2206 = vmatpush.msrb.mxu1 %v2049_v49  ;;  %3404 = vmatpush.msk.msra.mxu3 %vm2094_vm15, %v3657_v33 }
 0x669   : > { %3402 = vmatmul.msk.f32.vlgmr.msra.gmra.mxu1 %vm2058_vm9, %v2092_v55 }
 0x66a   : > { %2207 = vmatpush.msrb.mxu1 %v2048_v51  ;;  %3412 = vmatpush.msk.msrb.mxu3 %vm2190_vm0, %v3657_v33 }
 0x66c   : > { %2208 = vmatpush.msrb.mxu1 %v2047_v54 }
 0x66e   : > { %2209 = vmatpush.msrb.mxu1 %v2046_v60  ;;  %v2363_v60 = vmul.f32 32.0, %v3561_v59 }
 0x66f   : > { %3401 = vmatmul.msk.f32.gmra.mxu3 %vm2058_vm9, %v2055_v6 }
 0x670   : > { %2210 = vmatpush.msrb.mxu1 %v2045_v62  ;;  %v2364_v61 = vsub.f32 1.0, %v2363_v60 }
 0x671   : > { %3403 = vmatmul.msk.f32.gmra.mxu1 %vm2058_vm9, %v2093_v7 }
 0x672   : > { %2211 = vmatpush.msrb.mxu1 %v2044_v63  ;;  %v2365_v62 = vmul.f32 %v3561_v59, %v2364_v61 }
 0x674   : > { %2212 = vmatpush.msrb.mxu1 %v2043_v53  ;;  %v2366_v56 = vadd.f32 %v3561_v59, %v2365_v62 }
 0x676   : > { %2213 = vmatpush.msrb.mxu1 %v4139_v25 }
 0x678   : > { %3417 = vmatpush.msk.msra.mxu1 %vm2258_vm5, %v3657_v33 }
 0x679   : > { %3410 = vmatmul.msk.f32.vlgmr.msrb.gmra.mxu1 %vm2058_vm9, %v2188_v9  ;;  %v2429_v9 = vld [vmem:[%s3747_s27 + $0x10] sm:$0xff] }
 0x67a   : > { %2511 = vmatpush.msra.mxu2 %v2429_v9 }
 0x67c   : > { %2512 = vmatpush.msra.mxu2 %v2428_v10 }
 0x681   : > { %3411 = vmatmul.msk.f32.gmra.mxu1 %vm2058_vm9, %v2189_v11  ;;  %v2427_v11 = vld [vmem:[%s3747_s27] sm:$0xff] }
 0x682   : > { %2513 = vmatpush.msra.mxu2 %v2427_v11 }
 0x6e6   : > { %v2119_v12 = vpop.f32.mrf.mxu1 }
 0x6e7   : > { %3405 = vmatmul.msk.f32.vlgmr.msra.gmra.mxu3 %vm2125_vm1, %v2119_v12  ;;  %v1138_v12 = vld [vmem:[%s1074_s28] sm:$0xff]  ;;  %s4430_s28 = sld [smem:[#allocation11_spill]] }
 0x6e8   : > { %2341 = vmatpush.msra.mxu3 %v1152_v22  ;;  %3425 = vmatmul.msk.f32.vlgmr.msra.gmra.mxu2 %vm1157_vm2, %v1138_v12 }
 0x6ea   : > { %v2082_v13 = vpop.f32.mrf.mxu3  ;;  %2342 = vmatpush.msra.mxu3 %v1151_v23 }
 0x6eb   : > { %3408 = vmatmul.msk.f32.vlgmr.msrb.gmra.mxu0 %vm2125_vm1, %v2082_v13  ;;  %v2425_v13 = vld [vmem:[%s3737_s12 + $0x18] sm:$0xff] }
 0x6ec   : > { %2343 = vmatpush.msra.mxu3 %v1150_v38  ;;  %2487 = vmatpush.msrb.mxu1 %v2425_v13 }
 0x6ee   : > { %v2122_v14 = vpop.f32.mrf.mxu1  ;;  %2344 = vmatpush.msra.mxu3 %v1149_v30  ;;  %2488 = vmatpush.msrb.mxu1 %v2424_v15 }
 0x6ef   : > { %3406 = vmatmul.msk.f32.gmra.mxu3 %vm2125_vm1, %v2122_v14  ;;  %v2420_v14 = vld [vmem:[%s4420_s23 + $0x18] sm:$0xff] }
 0x6f0   : > { %2458 = vmatpush.msrb.mxu0 %v2420_v14 }
 0x6f2   : > { %v2085_v58 = vpop.f32.mrf.mxu3 }
 0x6f3   : > { %3409 = vmatmul.msk.f32.gmra.mxu0 %vm2125_vm1, %v2085_v58  ;;  %v2419_v58 = vld [vmem:[%s4420_s23 + $0x10] sm:$0xff] }
 0x6f4   : > { %2459 = vmatpush.msrb.mxu0 %v2419_v58 }
 0x6f6   : > { %v2215_v2 = vpop.f32.mrf.mxu1 }
 0x6f7   : > { %3413 = vmatmul.msk.f32.vlgmr.msrb.gmra.mxu3 %vm2125_vm1, %v2215_v2  ;;  %v2423_v2 = vld [vmem:[%s3737_s12 + $0x8] sm:$0xff] }
 0x6f8   : > { %2489 = vmatpush.msrb.mxu1 %v2423_v2 }
 0x6fa   : > { %2490 = vmatpush.msrb.mxu1 %v2422_v17 }
 0x6fb   : > { %3415 = vmatmul.msk.f32.vlgmr.msra.gmra.mxu0 %vm2058_vm9, %v2256_v16  ;;  %v2418_v16 = vld [vmem:[%s4420_s23 + $0x8] sm:$0xff] }
 0x6fc   : > { %2460 = vmatpush.msrb.mxu0 %v2418_v16 }
 0x6fe   : > { %v2218_v19 = vpop.f32.mrf.mxu1 }
 0x6ff   : > { %3414 = vmatmul.msk.f32.gmra.mxu3 %vm2125_vm1, %v2218_v19  ;;  %v2417_v19 = vld [vmem:[%s4420_s23] sm:$0xff] }
 0x700   : > { %2461 = vmatpush.msrb.mxu0 %v2417_v19 }
 0x703   : > { %3416 = vmatmul.msk.f32.gmra.mxu0 %vm2058_vm9, %v2257_v20 }
 0x768   : > { %v2178_v24 = vpop.f32.mrf.mxu0 }
 0x76a   : > { %v2149_v26 = vpop.f32.mrf.mxu3 }
 0x76b   : > { %v2179_v32 = vadd.f32 %v2178_v24, %v2149_v26  ;;  %v2515_v57 = vpop.f32.mrf.mxu2 }
 0x770   : > { %v2181_v25 = vpop.f32.mrf.mxu0 }
 0x772   : > { %v2152_v5 = vpop.f32.mrf.mxu3 }
 0x773   : > { %v2182_v41 = vadd.f32 %v2181_v25, %v2152_v5 }
 0x778   : > { %v2283_v28 = vpop.f32.mrf.mxu0 }
 0x779   : > { %3418 = vmatmul.msk.f32.vlgmr.msra.gmra.mxu1 %vm2125_vm1, %v2283_v28 }
 0x77a   : > { %v2244_v31 = vpop.f32.mrf.mxu3 }
 0x77b   : > { %v2250_v27 = vadd.f32 %v2244_v31, %v2179_v32 }
 0x780   : > { %v2286_v29 = vpop.f32.mrf.mxu0 }
 0x781   : > { %3419 = vmatmul.msk.f32.gmra.mxu1 %vm2125_vm1, %v2286_v29 }
 0x782   : > { %v2247_v34 = vpop.f32.mrf.mxu3 }
 0x783   : > { %v2251_v42 = vadd.f32 %v2247_v34, %v2182_v41 }
 0x789   : > { %3424 = vmatmul.msk.f32.vlgmr.msrb.gmra.mxu1 %vm1157_vm2, %v1138_v12 }
 0x7f6   : > { %v2312_v33 = vpop.f32.mrf.mxu1 }
 0x7f7   : > { %v2318_v37 = vadd.f32 %v2312_v33, %v2250_v27  ;;  %v3513_v33 = vld [vmem:[%s4421_s1] ss:$0 sm:$0xff]  ;;  %s4431_s1 = sld [smem:[#allocation16_spill]] }
 0x7f9   : > { %3420 = vmatmul.msk.f32.vlgmr.msra.gmra.mxu3 %vm1157_vm2, %v2318_v37 }
 0x7fe   : > { %v2315_v44 = vpop.f32.mrf.mxu1 }
 0x7ff   : > { %v2319_v36 = vadd.f32 %v2315_v44, %v2251_v42  ;;  %v3514_v42 = vld [vmem:[%s4422_s2] ss:$0 sm:$0xff]  ;;  %s4432_s2 = sld [smem:[#allocation15_spill]] }
 0x801   : > { %3421 = vmatmul.msk.f32.gmra.mxu3 %vm1157_vm2, %v2319_v36 }
 0x806   : > { %v2492_v60 = vpop.f32.mrf.mxu1 }
 0x87c   : > { %v2346_v47 = vpop.f32.mrf.mxu3 }
 0x87d   : > { %v2347_v48 = vadd.f32 %v3512_v45, %v2346_v47 }
 0x87f   : > { %v2352_v35 = vadd.f32 %v2347_v48, %v3870_v18  ;;  %v4211_v18 = vsel %vm2367_vm6, %v3561_v59, %v2366_v56  ;;  %v3516_v56 = vld [vmem:[%s4425_s11] ss:$0 sm:$0xff]  ;;  %s4435_s11 = sld [smem:[#allocation13_spill]] }
 0x881   : > { %v2356_v49 = vsel %vm1157_vm2, %v2352_v35, 0.0 }
 0x882   : > { %2357 = vadd.xlane.f32.xlu1 %v2356_v49 }
 0x884   : > { %v2349_v46 = vpop.f32.mrf.mxu3 }
 0x885   : > { %v2350_v51 = vadd.f32 %v3512_v45, %v2349_v46 }
 0x887   : > { %v2353_v52 = vadd.f32 %v2350_v51, %v3878_v21 }
 0x889   : > { %v2359_v54 = vsel %vm1157_vm2, %v2353_v52, 0.0 }
 0x88a   : > { %2360 = vadd.xlane.f32.xlu2 %v2359_v54  ;;  %v3517_v54 = vld [vmem:[%s4424_s10] ss:$0 sm:$0xff]  ;;  %s4434_s10 = sld [smem:[#allocation12_spill]] }
 0x88b   : > { %v4252_v59 = vadd.f32 %v3517_v54, %v2515_v57 }
 0x88d   : > { %v2632_v62 = vmul.f32 %v4252_v59, %v3909_v40 }
 0x88f   : > { %2654 = vmatpush.msrb.mxu2 %v2632_v62 }
 0x8f5   : > { %v2358_v1 = vpop.xlane.xlu1 %2357 }
 0x8f6   : > { %v2369_v63 = vmul.f32 %v4211_v18, %v2358_v1 }
 0x8f8   : > { %v2371_v21 = vsub.f32 %v2352_v35, %v2369_v63 }
 0x8fa   : > { %v2373_v53 = vmul.f32 %v2371_v21, %v2371_v21 }
 0x8fc   : > { %v2375_v0 = vsel %vm1157_vm2, %v2373_v53, 0.0 }
 0x8fd   : > { %2376 = vadd.xlane.f32.xlu0 %v2375_v0  ;;  %v2361_v3 = vpop.xlane.xlu2 %2360 }
 0x8fe   : > { %v2370_v55 = vmul.f32 %v4211_v18, %v2361_v3 }
 0x900   : > { %v4216_v4 = vsub.f32 %v2353_v52, %v2370_v55  ;;  %v3515_v52 = vld [vmem:[%s4423_s7] ss:$0 sm:$0xff]  ;;  %s4433_s7 = sld [smem:[#allocation17_spill]] }
 0x901   : > { %v2493_v61 = vadd.f32 %v3515_v52, %v2492_v60 }
 0x902   : > { %v2374_v6 = vmul.f32 %v4216_v4, %v4216_v4 }
 0x903   : > { %3426 = vmatpush.xpose.msk.msrb.mxu3 %vm1157_vm2, %v2493_v61  ;;  %3429 = vmatpush.xpose.msk.msra.mxu1 %vm1157_vm2, %v2493_v61 }
 0x904   : > { %v2378_v7 = vsel %vm1157_vm2, %v2374_v6, 0.0  ;;  %3441 = vmatpush.xpose.msk.msra.mxu2 %vm1157_vm2, %v2493_v61 }
 0x905   : > { %2379 = vadd.xlane.f32.xlu1 %v2378_v7 }
 0x907   : > { %3436 = vmatpush.xpose.msk.msra.mxu3 %vm1157_vm2, %v2493_v61 }
 0x970   : > { %v2377_v20 = vpop.xlane.xlu0 %2376 }
 0x971   : > { %v2381_v22 = vmul.f32 %v2377_v20, %v4211_v18 }
 0x973   : > { %v2383_v23 = vadd.f32 1e-05, %v2381_v22 }
 0x975   : > { %3562 = vrsqrt.f32 %v2383_v23  ;;  %vm2391_vm11 = vweird.f32 %v2383_v23 }
 0x978   : > { %v2380_v24 = vpop.xlane.xlu1 %2379 }
 0x979   : > { %v2382_v25 = vmul.f32 %v2380_v24, %v4211_v18 }
 0x97b   : > { %v3563_v28 = vpop.eup %3562  ;;  %v2384_v29 = vadd.f32 1e-05, %v2382_v25 }
 0x97c   : > { %v2386_v38 = vmul.f32 %v3563_v28, %v2383_v23  ;;  %vm2392_vm7 = vweird.f32 %v3563_v28 }
 0x97d   : > { %3564 = vrsqrt.f32 %v2384_v29  ;;  %vm2393_vm8 = vmor %vm2391_vm11, %vm2392_vm7  ;;  %vm2401_vm10 = vweird.f32 %v2384_v29 }
 0x97e   : > { %v2387_v30 = vmul.f32 %v3563_v28, %v2386_v38 }
 0x980   : > { %v2388_v26 = vmul.f32 0.5, %v2387_v30 }
 0x982   : > { %v2389_v5 = vsub.f32 1.5, %v2388_v26 }
 0x983   : > { %v3565_v31 = vpop.eup %3564 }
 0x984   : > { %v2390_v32 = vmul.f32 %v3563_v28, %v2389_v5  ;;  %v2396_v27 = vmul.f32 %v3565_v31, %v2384_v29  ;;  %vm2402_vm9 = vweird.f32 %v3565_v31 }
 0x985   : > { %vm2403_vm12 = vmor %vm2401_vm10, %vm2402_vm9 }
 0x986   : > { %v2394_v37 = vsel %vm2393_vm8, %v3563_v28, %v2390_v32  ;;  %v2397_v34 = vmul.f32 %v3565_v31, %v2396_v27 }
 0x987   : > { %v2405_v41 = vmul.f32 %v2394_v37, %v2371_v21  ;;  %v2746_v37 = vmul.f32 %v4252_v59, %v3943_v50 }
 0x988   : > { %v2398_v44 = vmul.f32 0.5, %v2397_v34  ;;  %v2833_v34 = vmul.f32 %v4252_v59, %v4018_v43 }
 0x989   : > { %v2410_v36 = vmul.f32 %v3513_v33, %v2405_v41  ;;  %2768 = vmatpush.msrb.mxu1 %v2746_v37  ;;  %v2435_v37 = vld [vmem:[%s4426_s16 + $0x18] sm:$0xff] }
 0x98a   : > { %v2399_v45 = vsub.f32 1.5, %v2398_v44 }
 0x98b   : > { %v4241_v47 = vadd.f32 %v3514_v42, %v2410_v36 }
 0x98c   : > { %v2400_v48 = vmul.f32 %v3565_v31, %v2399_v45 }
 0x98d   : > { %3422 = vmatmul.msk.f32.vlgmr.msrb.gmra.mxu0 %vm1157_vm2, %v4241_v47 }
 0x98e   : > { %v2404_v35 = vsel %vm2403_vm12, %v3565_v31, %v2400_v48 }
 0x98f   : > { %v2406_v49 = vmul.f32 %v2404_v35, %v4216_v4 }
 0x991   : > { %v2411_v46 = vmul.f32 %v3513_v33, %v2406_v49  ;;  %v2576_v33 = vmul.f32 %v4252_v59, %v3906_v39 }
 0x993   : > { %v4246_v51 = vadd.f32 %v3514_v42, %v2411_v46  ;;  %2683 = vmatpush.msra.mxu0 %v2576_v33 }
 0x995   : > { %3423 = vmatmul.msk.f32.gmra.mxu0 %vm1157_vm2, %v4246_v51 }
 0x996   : > { %2855 = vmatpush.msrb.mxu0 %v2833_v34  ;;  %v2434_v34 = vld [vmem:[%s4426_s16 + $0x10] sm:$0xff] }
 0xa0a   : > { %v2463_v1 = vpop.f32.mrf.mxu0 }
 0xa0b   : > { %v4261_v63 = vadd.f32 %v3516_v56, %v2463_v1 }
 0xa0d   : > { %v2518_v21 = vmul.f32 %v4261_v63, %v3906_v39  ;;  %v2577_v53 = vmul.f32 %v4261_v63, %v3909_v40  ;;  %v2691_v6 = vmul.f32 %v4261_v63, %v3943_v50  ;;  %v2778_v59 = vmul.f32 %v4261_v63, %v4018_v43 }
 0xa0f   : > { %3427 = vmatmul.msk.f32.vlgmr.msrb.gmra.mxu3 %vm1157_vm2, %v2518_v21  ;;  %3430 = vmatmul.msk.f32.vlgmr.msra.gmra.mxu1 %vm1157_vm2, %v2577_v53 }
 0xa10   : > { %2886 = vmatpush.msrb.mxu3 %v2435_v37 }
 0xa12   : > { %v2466_v0 = vpop.f32.mrf.mxu0  ;;  %2887 = vmatpush.msrb.mxu3 %v2434_v34 }
 0xa13   : > { %v4269_v3 = vadd.f32 %v3516_v56, %v2466_v0 }
 0xa15   : > { %v2519_v55 = vmul.f32 %v4269_v3, %v3906_v39  ;;  %v2578_v4 = vmul.f32 %v4269_v3, %v3909_v40  ;;  %v2692_v7 = vmul.f32 %v4269_v3, %v3943_v50  ;;  %v2779_v62 = vmul.f32 %v4269_v3, %v4018_v43 }
 0xa17   : > { %3428 = vmatmul.msk.f32.gmra.mxu3 %vm1157_vm2, %v2519_v55  ;;  %3431 = vmatmul.msk.f32.gmra.mxu1 %vm1157_vm2, %v2578_v4 }
 0xa1f   : > { %3437 = vmatmul.msk.f32.vlgmr.msra.gmra.mxu3 %vm1157_vm2, %v2691_v6 }
 0xa27   : > { %3438 = vmatmul.msk.f32.gmra.mxu3 %vm1157_vm2, %v2692_v7 }
 0xa8c   : > { %v2602_v8 = vpop.f32.mrf.mxu1 }
 0xa8d   : > { %v2608_v9 = vmul.f32 0.35355338, %v2602_v8 }
 0xa8f   : > { %v2610_v10 = vsel %vm2125_vm1, %v2608_v9, -inf }
 0xa90   : > { %2611 = vmax.xlane.f32.xlu2 %v2610_v10 }
 0xa92   : > { %v2546_v13 = vpop.f32.mrf.mxu3 }
 0xa93   : > { %v4285_v14 = vmul.f32 0.35355338, %v2546_v13 }
 0xa94   : > { %v2605_v40 = vpop.f32.mrf.mxu1 }
 0xa95   : > { %v2609_v11 = vmul.f32 0.35355338, %v2605_v40  ;;  %v2554_v15 = vsel %vm2125_vm1, %v4285_v14, -inf }
 0xa97   : > { %v2613_v12 = vsel %vm2125_vm1, %v2609_v11, -inf }
 0xa98   : > { %2614 = vmax.xlane.f32.xlu0 %v2613_v12 }
 0xa9a   : > { %v2549_v2 = vpop.f32.mrf.mxu3 }
 0xa9b   : > { %v2553_v28 = vmul.f32 0.35355338, %v2549_v2 }
 0xa9d   : > { %v2557_v30 = vsel %vm2125_vm1, %v2553_v28, -inf }
 0xaa0   : > { %2555 = vmax.xlane.f32.xlu0 %v2554_v15 }
 0xaa2   : > { %v2716_v23 = vpop.f32.mrf.mxu3 }
 0xaa3   : > { %v2722_v5 = vmul.f32 0.35355338, %v2716_v23 }
 0xaa5   : > { %v2724_v32 = vsel %vm2125_vm1, %v2722_v5, -inf }
 0xaaa   : > { %v2719_v26 = vpop.f32.mrf.mxu3 }
 0xaab   : > { %v2723_v31 = vmul.f32 0.35355338, %v2719_v26 }
 0xaad   : > { %v2727_v27 = vsel %vm2125_vm1, %v2723_v31, -inf }
 0xb03   : > { %v2612_v58 = vpop.xlane.xlu2 %2611 }
 0xb04   : > { %v2616_v16 = vsub.f32 %v2608_v9, %v2612_v58 }
 0xb06   : > { %v2618_v17 = vmul.f32 1.442695, %v2616_v16 }
 0xb08   : > { %3566 = vpow2.f32 %v2618_v17 }
 0xb0b   : > { %v2615_v19 = vpop.xlane.xlu0 %2614 }
 0xb0c   : > { %v2617_v20 = vsub.f32 %v2609_v11, %v2615_v19 }
 0xb0e   : > { %v3567_v22 = vpop.eup %3566  ;;  %v2620_v24 = vmul.f32 1.442695, %v2617_v20 }
 0xb0f   : > { %v2622_v25 = vsel %vm2125_vm1, %v3567_v22, 0.0 }
 0xb10   : > { %3568 = vpow2.f32 %v2620_v24  ;;  %2623 = vadd.xlane.f32.xlu1 %v2622_v25 }
 0xb13   : > { %v2556_v1 = vpop.xlane.xlu0 %2555 }
 0xb14   : > { %v2560_v53 = vsub.f32 %v4285_v14, %v2556_v1 }
 0xb16   : > { %v3569_v29 = vpop.eup %3568  ;;  %v2562_v0 = vmul.f32 1.442695, %v2560_v53  ;;  %v3518_v53 = vld [vmem:[%s4427_s18] ss:$0 sm:$0xff]  ;;  %s4436_s18 = sld [smem:[#allocation18_spill]] }
 0xb17   : > { %v2625_v38 = vsel %vm2125_vm1, %v3569_v29, 0.0 }
 0xb18   : > { %2626 = vadd.xlane.f32.xlu2 %v2625_v38  ;;  %2558 = vmax.xlane.f32.xlu1 %v2557_v30 }
 0xb20   : > { %2725 = vmax.xlane.f32.xlu2 %v2724_v32  ;;  %2728 = vmax.xlane.f32.xlu1 %v2727_v27 }
 0xb83   : > { %v2624_v41 = vpop.xlane.xlu1 %2623 }
 0xb84   : > { %3570 = vrcp.f32 %v2624_v41 }
 0xb8a   : > { %v3571_v42 = vpop.eup %3570 }
 0xb8b   : > { %v2630_v44 = vmul.f32 %v3571_v42, %v3567_v22  ;;  %v2559_v36 = vpop.xlane.xlu1 %2558  ;;  %v2627_v45 = vpop.xlane.xlu2 %2626 }
 0xb8c   : > { %v2561_v48 = vsub.f32 %v2553_v28, %v2559_v36  ;;  %3572 = vrcp.f32 %v2627_v45 }
 0xb8d   : > { %3432 = vmatmul.msk.f32.vlgmr.msrb.gmra.mxu2 %vm2125_vm1, %v2630_v44 }
 0xb8e   : > { %v2564_v39 = vmul.f32 1.442695, %v2561_v48  ;;  %v2433_v48 = vld [vmem:[%s4426_s16 + $0x8] sm:$0xff] }
 0xb8f   : > { %2888 = vmatpush.msrb.mxu3 %v2433_v48 }
 0xb90   : > { %3574 = vpow2.f32 %v2564_v39  ;;  %v2432_v39 = vld [vmem:[%s4426_s16] sm:$0xff] }
 0xb91   : > { %2889 = vmatpush.msrb.mxu3 %v2432_v39 }
 0xb92   : > { %v3573_v35 = vpop.eup %3572 }
 0xb93   : > { %v2729_v50 = vpop.xlane.xlu1 %2728  ;;  %v2631_v49 = vmul.f32 %v3573_v35, %v3569_v29  ;;  %v2726_v63 = vpop.xlane.xlu2 %2725 }
 0xb94   : > { %v2731_v46 = vsub.f32 %v2723_v31, %v2729_v50  ;;  %v2730_v6 = vsub.f32 %v2722_v5, %v2726_v63 }
 0xb95   : > { %3433 = vmatmul.msk.f32.gmra.mxu2 %vm2125_vm1, %v2631_v49 }
 0xb96   : > { %v4302_v52 = vpop.eup %3574  ;;  %v2734_v54 = vmul.f32 1.442695, %v2731_v46  ;;  %v2732_v8 = vmul.f32 1.442695, %v2730_v6 }
 0xb97   : > { %v2569_v57 = vsel %vm2125_vm1, %v4302_v52, 0.0 }
 0xb98   : > { %3576 = vpow2.f32 %v2734_v54  ;;  %2570 = vadd.xlane.f32.xlu1 %v2569_v57 }
 0xb99   : > { %3578 = vpow2.f32 %v2562_v0 }
 0xb9a   : > { %3580 = vpow2.f32 %v2732_v8 }
 0xb9d   : > { %3442 = vmatmul.msk.f32.vlgmr.msra.gmra.mxu2 %vm1157_vm2, %v2778_v59 }
 0xb9e   : > { %v3577_v60 = vpop.eup %3576 }
 0xb9f   : > { %v2739_v61 = vsel %vm2125_vm1, %v3577_v60, 0.0  ;;  %v3579_v43 = vpop.eup %3578 }
 0xba0   : > { %2740 = vadd.xlane.f32.xlu1 %v2739_v61  ;;  %v2566_v10 = vsel %vm2125_vm1, %v3579_v43, 0.0  ;;  %v3581_v11 = vpop.eup %3580 }
 0xba1   : > { %v2736_v12 = vsel %vm2125_vm1, %v3581_v11, 0.0 }
 0xba5   : > { %3443 = vmatmul.msk.f32.gmra.mxu2 %vm1157_vm2, %v2779_v62 }
 0xc0b   : > { %v2571_v17 = vpop.xlane.xlu1 %2570 }
 0xc10   : > { %v4313_v56 = vpop.f32.mrf.mxu2 }
 0xc13   : > { %v2741_v29 = vpop.xlane.xlu1 %2740 }
 0xc18   : > { %v4315_v21 = vpop.f32.mrf.mxu2 }
 0xc20   : > { %v2803_v55 = vpop.f32.mrf.mxu2 }
 0xc21   : > { %v2809_v4 = vmul.f32 0.35355338, %v2803_v55 }
 0xc23   : > { %v2811_v7 = vsel %vm2125_vm1, %v2809_v4, -inf }
 0xc24   : > { %2812 = vmax.xlane.f32.xlu0 %v2811_v7 }
 0xc28   : > { %v2806_v3 = vpop.f32.mrf.mxu2 }
 0xc29   : > { %v2810_v9 = vmul.f32 0.35355338, %v2806_v3 }
 0xc2b   : > { %v2814_v40 = vsel %vm2125_vm1, %v2810_v9, -inf }
 0xc2c   : > { %2567 = vadd.xlane.f32.xlu0 %v2566_v10  ;;  %2815 = vmax.xlane.f32.xlu2 %v2814_v40 }
 0xc34   : > { %2737 = vadd.xlane.f32.xlu2 %v2736_v12 }
 0xc97   : > { %v2813_v13 = vpop.xlane.xlu0 %2812 }
 0xc98   : > { %v2817_v14 = vsub.f32 %v2809_v4, %v2813_v13  ;;  %v2958_v13 = vld [vmem:[%s4428_s22 + $0x18] sm:$0xff] }
 0xc99   : > { %2981 = vmatpush.msra.mxu1 %v2958_v13 }
 0xc9a   : > { %v2819_v15 = vmul.f32 1.442695, %v2817_v14  ;;  %v2957_v14 = vld [vmem:[%s4428_s22 + $0x10] sm:$0xff] }
 0xc9b   : > { %2982 = vmatpush.msra.mxu1 %v2957_v14 }
 0xc9c   : > { %3582 = vpow2.f32 %v2819_v15  ;;  %v2956_v15 = vld [vmem:[%s4428_s22 + $0x8] sm:$0xff] }
 0xc9d   : > { %2983 = vmatpush.msra.mxu1 %v2956_v15 }
 0xc9f   : > { %v2568_v58 = vpop.xlane.xlu0 %2567  ;;  %v2816_v2 = vpop.xlane.xlu2 %2815 }
 0xca0   : > { %3584 = vrcp.f32 %v2568_v58  ;;  %v2818_v16 = vsub.f32 %v2810_v9, %v2816_v2  ;;  %v2955_v58 = vld [vmem:[%s4428_s22] sm:$0xff] }
 0xca1   : > { %2984 = vmatpush.msra.mxu1 %v2955_v58 }
 0xca2   : > { %v3583_v19 = vpop.eup %3582  ;;  %v2821_v20 = vmul.f32 1.442695, %v2818_v16 }
 0xca3   : > { %v2823_v22 = vsel %vm2125_vm1, %v3583_v19, 0.0 }
 0xca4   : > { %3586 = vpow2.f32 %v2821_v20  ;;  %2824 = vadd.xlane.f32.xlu0 %v2823_v22 }
 0xca5   : > { %3588 = vrcp.f32 %v2571_v17 }
 0xca6   : > { %v3585_v23 = vpop.eup %3584 }
 0xca7   : > { %v2574_v24 = vmul.f32 %v3585_v23, %v3579_v43  ;;  %v2738_v25 = vpop.xlane.xlu2 %2737 }
 0xca8   : > { %3590 = vrcp.f32 %v2738_v25 }
 0xca9   : > { %3434 = vmatmul.msk.f32.vlgmr.msra.gmra.mxu0 %vm2125_vm1, %v2574_v24  ;;  %3592 = vrcp.f32 %v2741_v29 }
 0xcaa   : > { %v3587_v28 = vpop.eup %3586 }
 0xcab   : > { %v2826_v38 = vsel %vm2125_vm1, %v3587_v28, 0.0  ;;  %v3589_v30 = vpop.eup %3588 }
 0xcac   : > { %2827 = vadd.xlane.f32.xlu2 %v2826_v38  ;;  %v2575_v31 = vmul.f32 %v3589_v30, %v4302_v52 }
 0xcae   : > { %v3591_v26 = vpop.eup %3590 }
 0xcaf   : > { %v2744_v5 = vmul.f32 %v3591_v26, %v3581_v11  ;;  %v3593_v32 = vpop.eup %3592 }
 0xcb0   : > { %v2745_v27 = vmul.f32 %v3593_v32, %v3577_v60 }
 0xcb1   : > { %3435 = vmatmul.msk.f32.gmra.mxu0 %vm2125_vm1, %v2575_v31  ;;  %3439 = vmatmul.msk.f32.vlgmr.msrb.gmra.mxu1 %vm2125_vm1, %v2744_v5  ;;  %v3519_v5 = vld [vmem:[%s4429_s26] ss:$0 sm:$0xff]  ;;  %s1079_s26 = scalar_lea.vmem %s3837_s6, %s3858_s0 }
 0xcb9   : > { %3440 = vmatmul.msk.f32.gmra.mxu1 %vm2125_vm1, %v2745_v27  ;;  %v3520_v27 = vld [vmem:[%s4430_s28] ss:$0 sm:$0xff] }
 0xd17   : > { %v2825_v33 = vpop.xlane.xlu0 %2824 }
 0xd18   : > { %3594 = vrcp.f32 %v2825_v33 }
 0xd1e   : > { %v3595_v41 = vpop.eup %3594 }
 0xd1f   : > { %v2831_v42 = vmul.f32 %v3595_v41, %v3583_v19  ;;  %v2828_v44 = vpop.xlane.xlu2 %2827 }
 0xd20   : > { %3596 = vrcp.f32 %v2828_v44 }
 0xd21   : > { %3444 = vmatmul.msk.f32.vlgmr.msrb.gmra.mxu0 %vm2125_vm1, %v2831_v42 }
 0xd26   : > { %v3597_v36 = vpop.eup %3596  ;;  %v2685_v35 = vpop.f32.mrf.mxu0 }
 0xd27   : > { %v2832_v45 = vmul.f32 %v3597_v36, %v3587_v28  ;;  %v2686_v46 = vadd.f32 %v2685_v35, %v4313_v56  ;;  %v3013_v35 = vld [vmem:[%s4431_s1 + $0x18] sm:$0xff] }
 0xd28   : > { %3036 = vmatpush.msrb.mxu2 %v3013_v35 }
 0xd29   : > { %3445 = vmatmul.msk.f32.gmra.mxu0 %vm2125_vm1, %v2832_v45 }
 0xd2e   : > { %v2688_v50 = vpop.f32.mrf.mxu0  ;;  %v2770_v49 = vpop.f32.mrf.mxu1 }
 0xd2f   : > { %v2776_v52 = vadd.f32 %v2770_v49, %v2686_v46  ;;  %v2689_v60 = vadd.f32 %v2688_v50, %v4315_v21  ;;  %v3012_v50 = vld [vmem:[%s4431_s1 + $0x10] sm:$0xff]  ;;  %v3011_v49 = vld [vmem:[%s4431_s1 + $0x8] sm:$0xff]  ;;  %v3010_v46 = vld [vmem:[%s4431_s1] sm:$0xff] }
 0xd30   : > { %3037 = vmatpush.msrb.mxu2 %v3012_v50  ;;  %v3524_v50 = vld [vmem:[%s4435_s11] ss:$0 sm:$0xff] }
 0xd32   : > { %3038 = vmatpush.msrb.mxu2 %v3011_v49 }
 0xd34   : > { %3039 = vmatpush.msrb.mxu2 %v3010_v46 }
 0xd36   : > { %v2773_v59 = vpop.f32.mrf.mxu1 }
 0xd37   : > { %v2777_v61 = vadd.f32 %v2773_v59, %v2689_v60 }
 0xd9e   : > { %v2857_v54 = vpop.f32.mrf.mxu0 }
 0xd9f   : > { %v2863_v57 = vadd.f32 %v2857_v54, %v2776_v52  ;;  %v3521_v52 = vld [vmem:[%s4432_s2] ss:$0 sm:$0xff] }
 0xda1   : > { %3446 = vmatmul.msk.f32.vlgmr.msrb.gmra.mxu3 %vm1157_vm2, %v2863_v57 }
 0xda6   : > { %v2860_v62 = vpop.f32.mrf.mxu0 }
 0xda7   : > { %v2864_v1 = vadd.f32 %v2860_v62, %v2777_v61 }
 0xda9   : > { %3447 = vmatmul.msk.f32.gmra.mxu3 %vm1157_vm2, %v2864_v1 }
 0xe24   : > { %v2891_v0 = vpop.f32.mrf.mxu3 }
 0xe25   : > { %v2892_v63 = vadd.f32 %v3518_v53, %v2891_v0 }
 0xe27   : > { %v2897_v55 = vadd.f32 %v2892_v63, %v4241_v47 }
 0xe29   : > { %v2901_v56 = vsel %vm1157_vm2, %v2897_v55, 0.0 }
 0xe2a   : > { %2902 = vadd.xlane.f32.xlu0 %v2901_v56 }
 0xe2c   : > { %v2894_v4 = vpop.f32.mrf.mxu3 }
 0xe2d   : > { %v2895_v6 = vadd.f32 %v3518_v53, %v2894_v4 }
 0xe2f   : > { %v2898_v7 = vadd.f32 %v2895_v6, %v4246_v51 }
 0xe31   : > { %v2904_v21 = vsel %vm1157_vm2, %v2898_v7, 0.0 }
 0xe32   : > { %2905 = vadd.xlane.f32.xlu1 %v2904_v21 }
 0xe9d   : > { %v2903_v8 = vpop.xlane.xlu0 %2902 }
 0xe9e   : > { %v2907_v43 = vmul.f32 %v2903_v8, %v4211_v18 }
 0xea0   : > { %v2909_v3 = vsub.f32 %v2897_v55, %v2907_v43 }
 0xea2   : > { %v2911_v9 = vmul.f32 %v2909_v3, %v2909_v3 }
 0xea4   : > { %v2913_v47 = vsel %vm1157_vm2, %v2911_v9, 0.0 }
 0xea5   : > { %2914 = vadd.xlane.f32.xlu2 %v2913_v47  ;;  %v2906_v10 = vpop.xlane.xlu1 %2905 }
 0xea6   : > { %v2908_v40 = vmul.f32 %v2906_v10, %v4211_v18 }
 0xea8   : > { %v2910_v11 = vsub.f32 %v2898_v7, %v2908_v40  ;;  %v3522_v40 = vld [vmem:[%s4433_s7] ss:$0 sm:$0xff] }
 0xeaa   : > { %v2912_v12 = vmul.f32 %v2910_v11, %v2910_v11 }
 0xeac   : > { %v2916_v51 = vsel %vm1157_vm2, %v2912_v12, 0.0 }
 0xead   : > { %2917 = vadd.xlane.f32.xlu0 %v2916_v51 }
 0xf18   : > { %v2915_v2 = vpop.xlane.xlu2 %2914 }
 0xf19   : > { %v2919_v16 = vmul.f32 %v2915_v2, %v4211_v18 }
 0xf1b   : > { %v2921_v17 = vadd.f32 1e-05, %v2919_v16 }
 0xf1d   : > { %3598 = vrsqrt.f32 %v2921_v17  ;;  %vm2929_vm14 = vweird.f32 %v2921_v17 }
 0xf20   : > { %v2918_v19 = vpop.xlane.xlu0 %2917 }
 0xf21   : > { %v2920_v20 = vmul.f32 %v2918_v19, %v4211_v18 }
 0xf23   : > { %v3599_v22 = vpop.eup %3598  ;;  %v2922_v23 = vadd.f32 1e-05, %v2920_v20 }
 0xf24   : > { %v2924_v24 = vmul.f32 %v3599_v22, %v2921_v17  ;;  %vm2930_vm13 = vweird.f32 %v3599_v22 }
 0xf25   : > { %3600 = vrsqrt.f32 %v2922_v23  ;;  %vm2931_vm15 = vmor %vm2929_vm14, %vm2930_vm13  ;;  %vm2939_vm1 = vweird.f32 %v2922_v23 }
 0xf26   : > { %v2925_v25 = vmul.f32 %v3599_v22, %v2924_v24 }
 0xf28   : > { %v2926_v28 = vmul.f32 0.5, %v2925_v25 }
 0xf2a   : > { %v2927_v29 = vsub.f32 1.5, %v2926_v28 }
 0xf2b   : > { %v3601_v38 = vpop.eup %3600 }
 0xf2c   : > { %v2928_v30 = vmul.f32 %v3599_v22, %v2927_v29  ;;  %v2934_v26 = vmul.f32 %v3601_v38, %v2922_v23  ;;  %vm2940_vm0 = vweird.f32 %v3601_v38 }
 0xf2d   : > { %vm2941_vm3 = vmor %vm2939_vm1, %vm2940_vm0  ;;  %vm3198_vm0 = vcmask 31744  }
 0xf2e   : > { %v2932_v31 = vsel %vm2931_vm15, %v3599_v22, %v2928_v30  ;;  %v2935_v32 = vmul.f32 %v3601_v38, %v2934_v26 }
 0xf2f   : > { %v2943_v33 = vmul.f32 %v2932_v31, %v2909_v3 }
 0xf30   : > { %v2936_v37 = vmul.f32 0.5, %v2935_v32 }
 0xf31   : > { %v2948_v34 = vmul.f32 %v3519_v5, %v2943_v33 }
 0xf32   : > { %v2937_v41 = vsub.f32 1.5, %v2936_v37 }
 0xf33   : > { %v2953_v42 = vadd.f32 %v3520_v27, %v2948_v34 }
 0xf34   : > { %v2938_v44 = vmul.f32 %v3601_v38, %v2937_v41 }
 0xf35   : > { %3448 = vmatmul.msk.f32.vlgmr.msra.gmra.mxu1 %vm1157_vm2, %v2953_v42 }
 0xf36   : > { %v2942_v36 = vsel %vm2941_vm3, %v3601_v38, %v2938_v44 }
 0xf37   : > { %v2944_v45 = vmul.f32 %v2942_v36, %v2910_v11 }
 0xf39   : > { %v2949_v48 = vmul.f32 %v3519_v5, %v2944_v45  ;;  %v3523_v45 = vld [vmem:[%s4434_s10] ss:$0 sm:$0xff] }
 0xf3b   : > { %v2954_v39 = vadd.f32 %v3520_v27, %v2949_v48 }
 0xf3d   : > { %3449 = vmatmul.msk.f32.gmra.mxu1 %vm1157_vm2, %v2954_v39 }
 0xfb2   : > { %v2986_v54 = vpop.f32.mrf.mxu1 }
 0xfb3   : > { %v2987_v57 = vadd.f32 %v3521_v52, %v2986_v54 }
 0xfb5   : > { %v2992_v59 = vmul.f32 %v2987_v57, %v2987_v57 }
 0xfb7   : > { %v2994_v60 = vmul.f32 %v2992_v59, %v2987_v57 }
 0xfb9   : > { %v2996_v61 = vmul.f32 0.044715, %v2994_v60 }
 0xfba   : > { %v2989_v62 = vpop.f32.mrf.mxu1 }
 0xfbb   : > { %v2998_v1 = vadd.f32 %v2996_v61, %v2987_v57  ;;  %v2990_v53 = vadd.f32 %v3521_v52, %v2989_v62 }
 0xfbd   : > { %v3000_v0 = vmul.f32 0.7978846, %v2998_v1  ;;  %v2993_v63 = vmul.f32 %v2990_v53, %v2990_v53 }
 0xfbf   : > { %3602 = vtanh.f32 %v3000_v0  ;;  %v2995_v55 = vmul.f32 %v2993_v63, %v2990_v53 }
 0xfc1   : > { %v2997_v56 = vmul.f32 0.044715, %v2995_v55 }
 0xfc3   : > { %v2999_v4 = vadd.f32 %v2997_v56, %v2990_v53 }
 0xfc5   : > { %v3603_v6 = vpop.eup %3602  ;;  %v3001_v7 = vmul.f32 0.7978846, %v2999_v4 }
 0xfc6   : > { %v3004_v21 = vadd.f32 1.0, %v3603_v6 }
 0xfc7   : > { %3604 = vtanh.f32 %v3001_v7 }
 0xfc8   : > { %v3006_v8 = vmul.f32 0.5, %v3004_v21 }
 0xfca   : > { %v3008_v43 = vmul.f32 %v3006_v8, %v2987_v57 }
 0xfcc   : > { %3450 = vmatmul.msk.f32.vlgmr.msrb.gmra.mxu2 %vm1157_vm2, %v3008_v43 }
 0xfcd   : > { %v3605_v3 = vpop.eup %3604 }
 0xfce   : > { %v3005_v9 = vadd.f32 1.0, %v3605_v3  ;;  %v3164_v3 = vld [vmem:[%s3827_s30 + $0x18] sm:$0xff] }
 0xfcf   : > { %3187 = vmatpush.msra.mxu0 %v3164_v3 }
 0xfd0   : > { %v3007_v47 = vmul.f32 0.5, %v3005_v9  ;;  %v3163_v9 = vld [vmem:[%s3827_s30 + $0x10] sm:$0xff] }
 0xfd1   : > { %3188 = vmatpush.msra.mxu0 %v3163_v9 }
 0xfd2   : > { %v3009_v10 = vmul.f32 %v3007_v47, %v2990_v53  ;;  %v3162_v47 = vld [vmem:[%s3827_s30 + $0x8] sm:$0xff] }
 0xfd3   : > { %3189 = vmatpush.msra.mxu0 %v3162_v47 }
 0xfd4   : > { %3451 = vmatmul.msk.f32.gmra.mxu2 %vm1157_vm2, %v3009_v10  ;;  %v3161_v10 = vld [vmem:[%s3827_s30] sm:$0xff] }
 0xfd5   : > { %3190 = vmatpush.msra.mxu0 %v3161_v10 }
0x104f   : > { %v3041_v11 = vpop.f32.mrf.mxu2 }
0x1050   : > { %v3042_v12 = vadd.f32 %v3522_v40, %v3041_v11 }
0x1052   : > { %v3047_v51 = vadd.f32 %v3042_v12, %v2953_v42 }
0x1054   : > { %v3051_v13 = vsel %vm1157_vm2, %v3047_v51, 0.0 }
0x1055   : > { %3052 = vadd.xlane.f32.xlu1 %v3051_v13 }
0x1057   : > { %v3044_v14 = vpop.f32.mrf.mxu2 }
0x1058   : > { %v3045_v15 = vadd.f32 %v3522_v40, %v3044_v14 }
0x105a   : > { %v3048_v58 = vadd.f32 %v3045_v15, %v2954_v39 }
0x105c   : > { %v3054_v2 = vsel %vm1157_vm2, %v3048_v58, 0.0 }
0x105d   : > { %3055 = vadd.xlane.f32.xlu2 %v3054_v2 }
0x10c8   : > { %v3053_v16 = vpop.xlane.xlu1 %3052 }
0x10c9   : > { %v3057_v17 = vmul.f32 %v3053_v16, %v4211_v18 }
0x10cb   : > { %v3059_v19 = vsub.f32 %v3047_v51, %v3057_v17 }
0x10cd   : > { %v3061_v20 = vmul.f32 %v3059_v19, %v3059_v19 }
0x10cf   : > { %v3063_v22 = vsel %vm1157_vm2, %v3061_v20, 0.0 }
0x10d0   : > { %v3056_v23 = vpop.xlane.xlu2 %3055  ;;  %3064 = vadd.xlane.f32.xlu0 %v3063_v22 }
0x10d1   : > { %v3058_v24 = vmul.f32 %v3056_v23, %v4211_v18  ;;  %v3525_v23 = vld [vmem:[%s4436_s18] ss:$0 sm:$0xff] }
0x10d3   : > { %v3060_v25 = vsub.f32 %v3048_v58, %v3058_v24 }
0x10d5   : > { %v3062_v28 = vmul.f32 %v3060_v25, %v3060_v25 }
0x10d7   : > { %v3066_v29 = vsel %vm1157_vm2, %v3062_v28, 0.0  ;;  %v3526_v28 = vld [vmem:[%s3822_s20] ss:$0 sm:$0xff] }
0x10d8   : > { %3067 = vadd.xlane.f32.xlu1 %v3066_v29 }
0x1143   : > { %v3065_v38 = vpop.xlane.xlu0 %3064 }
0x1144   : > { %v3069_v30 = vmul.f32 %v3065_v38, %v4211_v18 }
0x1146   : > { %v3071_v26 = vadd.f32 1e-05, %v3069_v30 }
0x1148   : > { %3606 = vrsqrt.f32 %v3071_v26  ;;  %vm3079_vm5 = vweird.f32 %v3071_v26 }
0x114b   : > { %v3068_v5 = vpop.xlane.xlu1 %3067 }
0x114c   : > { %v3070_v31 = vmul.f32 %v3068_v5, %v4211_v18 }
0x114e   : > { %v3607_v32 = vpop.eup %3606  ;;  %v3072_v27 = vadd.f32 1e-05, %v3070_v31 }
0x114f   : > { %v3074_v33 = vmul.f32 %v3607_v32, %v3071_v26  ;;  %vm3080_vm4 = vweird.f32 %v3607_v32 }
0x1150   : > { %3608 = vrsqrt.f32 %v3072_v27  ;;  %vm3081_vm6 = vmor %vm3079_vm5, %vm3080_vm4  ;;  %vm3089_vm11 = vweird.f32 %v3072_v27 }
0x1151   : > { %v3075_v37 = vmul.f32 %v3607_v32, %v3074_v33 }
0x1153   : > { %v3076_v34 = vmul.f32 0.5, %v3075_v37  ;;  %v3527_v37 = vld [vmem:[%s3832_s4] ss:$0 sm:$0xff] }
0x1155   : > { %v3077_v41 = vsub.f32 1.5, %v3076_v34 }
0x1156   : > { %v3609_v42 = vpop.eup %3608 }
0x1157   : > { %v3078_v44 = vmul.f32 %v3607_v32, %v3077_v41  ;;  %v3084_v36 = vmul.f32 %v3609_v42, %v3072_v27  ;;  %vm3090_vm7 = vweird.f32 %v3609_v42 }
0x1158   : > { %vm3091_vm8 = vmor %vm3089_vm11, %vm3090_vm7 }
0x1159   : > { %v3085_v48 = vmul.f32 %v3609_v42, %v3084_v36  ;;  %v3082_v39 = vsel %vm3081_vm6, %v3607_v32, %v3078_v44 }
0x115a   : > { %v3093_v35 = vmul.f32 %v3082_v39, %v3059_v19 }
0x115b   : > { %v3086_v49 = vmul.f32 0.5, %v3085_v48 }
0x115c   : > { %v3098_v46 = vmul.f32 %v3523_v45, %v3093_v35 }
0x115d   : > { %v3087_v52 = vsub.f32 1.5, %v3086_v49 }
0x115e   : > { %v3103_v54 = vadd.f32 %v3524_v50, %v3098_v46 }
0x115f   : > { %v3088_v57 = vmul.f32 %v3609_v42, %v3087_v52 }
0x1160   : > { %v3107_v59 = vsel %vm1157_vm2, %v3103_v54, 0.0 }
0x1161   : > { %3108 = vadd.xlane.f32.xlu2 %v3107_v59  ;;  %v3092_v60 = vsel %vm3091_vm8, %v3609_v42, %v3088_v57 }
0x1162   : > { %v3094_v61 = vmul.f32 %v3092_v60, %v3060_v25 }
0x1164   : > { %v3099_v62 = vmul.f32 %v3523_v45, %v3094_v61 }
0x1166   : > { %v3104_v1 = vadd.f32 %v3524_v50, %v3099_v62 }
0x1168   : > { %v3110_v53 = vsel %vm1157_vm2, %v3104_v1, 0.0 }
0x1169   : > { %3111 = vadd.xlane.f32.xlu0 %v3110_v53 }
0x11d4   : > { %v3109_v0 = vpop.xlane.xlu2 %3108 }
0x11d5   : > { %v3113_v63 = vmul.f32 %v3109_v0, %v4211_v18 }
0x11d7   : > { %v3115_v55 = vsub.f32 %v3103_v54, %v3113_v63 }
0x11d9   : > { %v3117_v56 = vmul.f32 %v3115_v55, %v3115_v55 }
0x11db   : > { %v3119_v4 = vsel %vm1157_vm2, %v3117_v56, 0.0 }
0x11dc   : > { %3120 = vadd.xlane.f32.xlu1 %v3119_v4  ;;  %v3112_v6 = vpop.xlane.xlu0 %3111 }
0x11dd   : > { %v3114_v7 = vmul.f32 %v3112_v6, %v4211_v18 }
0x11df   : > { %v3116_v21 = vsub.f32 %v3104_v1, %v3114_v7 }
0x11e1   : > { %v3118_v8 = vmul.f32 %v3116_v21, %v3116_v21 }
0x11e3   : > { %v3122_v43 = vsel %vm1157_vm2, %v3118_v8, 0.0 }
0x11e4   : > { %3123 = vadd.xlane.f32.xlu2 %v3122_v43 }
0x124f   : > { %v3121_v40 = vpop.xlane.xlu1 %3120 }
0x1250   : > { %v3125_v11 = vmul.f32 %v3121_v40, %v4211_v18 }
0x1252   : > { %v3127_v12 = vadd.f32 1e-05, %v3125_v11 }
0x1254   : > { %3610 = vrsqrt.f32 %v3127_v12  ;;  %vm3135_vm10 = vweird.f32 %v3127_v12 }
0x1257   : > { %v3124_v51 = vpop.xlane.xlu2 %3123 }
0x1258   : > { %v3126_v13 = vmul.f32 %v3124_v51, %v4211_v18 }
0x125a   : > { %v3611_v14 = vpop.eup %3610  ;;  %v3128_v15 = vadd.f32 1e-05, %v3126_v13 }
0x125b   : > { %v3130_v58 = vmul.f32 %v3611_v14, %v3127_v12  ;;  %vm3136_vm9 = vweird.f32 %v3611_v14 }
0x125c   : > { %3612 = vrsqrt.f32 %v3128_v15  ;;  %vm3137_vm12 = vmor %vm3135_vm10, %vm3136_vm9  ;;  %vm3145_vm14 = vweird.f32 %v3128_v15 }
0x125d   : > { %v3131_v2 = vmul.f32 %v3611_v14, %v3130_v58 }
0x125f   : > { %v3132_v16 = vmul.f32 0.5, %v3131_v2 }
0x1261   : > { %v3133_v17 = vsub.f32 1.5, %v3132_v16 }
0x1262   : > { %v3613_v19 = vpop.eup %3612 }
0x1263   : > { %v3134_v20 = vmul.f32 %v3611_v14, %v3133_v17  ;;  %v3140_v22 = vmul.f32 %v3613_v19, %v3128_v15  ;;  %vm3146_vm13 = vweird.f32 %v3613_v19 }
0x1264   : > { %vm3147_vm15 = vmor %vm3145_vm14, %vm3146_vm13 }
0x1265   : > { %v3138_v24 = vsel %vm3137_vm12, %v3611_v14, %v3134_v20  ;;  %v3141_v25 = vmul.f32 %v3613_v19, %v3140_v22 }
0x1266   : > { %v3149_v18 = vmul.f32 %v3138_v24, %v3115_v55 }
0x1267   : > { %v3142_v29 = vmul.f32 0.5, %v3141_v25 }
0x1268   : > { %v3154_v38 = vmul.f32 %v3525_v23, %v3149_v18 }
0x1269   : > { %v3143_v30 = vsub.f32 1.5, %v3142_v29 }
0x126a   : > { %v3159_v26 = vadd.f32 %v3526_v28, %v3154_v38 }
0x126b   : > { %v3144_v5 = vmul.f32 %v3613_v19, %v3143_v30 }
0x126c   : > { %3452 = vmatmul.msk.f32.vlgmr.msra.gmra.mxu0 %vm1157_vm2, %v3159_v26 }
0x126d   : > { %v3148_v31 = vsel %vm3147_vm15, %v3613_v19, %v3144_v5 }
0x126e   : > { %v3150_v32 = vmul.f32 %v3148_v31, %v3116_v21 }
0x1270   : > { %v3155_v27 = vmul.f32 %v3525_v23, %v3150_v32 }
0x1272   : > { %v3160_v33 = vadd.f32 %v3526_v28, %v3155_v27 }
0x1274   : > { %3453 = vmatmul.msk.f32.gmra.mxu0 %vm1157_vm2, %v3160_v33 }
0x12e9   : > { %v3192_v34 = vpop.f32.mrf.mxu0 }
0x12ea   : > { %v3193_v41 = vadd.f32 %v3527_v37, %v3192_v34 }
0x12ec   : > { %3199 = vst.msk [vmem:[%s1079_s26] sm:$0xff] %vm3198_vm0, %v3193_v41 }
0x12f1   : > { %v3195_v42 = vpop.f32.mrf.mxu0 }
0x12f2   : > { %v3196_v44 = vadd.f32 %v3527_v37, %v3195_v42 }
0x12f4   : > { %3200 = vst.msk [vmem:[%s1079_s26 + $0x8] sm:$0xff] %vm3198_vm0, %v3196_v44 }
0x12f5 PF: > { %s79_s15 = sadd.s32 1, %s3620_s15  }
0x12f6   : > { %p76_p4 = scmp.ge.s32.totalorder %s79_s15, 4  }
0x12f8   :  { %78 = sbr.rel (!%p76_p4) target bundleno = 53 (0x35), region = 232 }

</bundles_post_ra>
